<compile_context>
chip_gen: v5e
topology: v5e:2x2
jax: 0.10.0
libtpu: 0.0.40
codegen_flags: <defaults>
</compile_context>

<pallas_src>
import functools

import jax
import jax.numpy as jnp
from jax.experimental import pallas as pl
from jax.experimental.pallas import tpu as pltpu


_VMEM_LIMIT = 48 * 1024 * 1024   # < 64 MiB physical on v7x, raises v5e's 16 MiB default


# --------------------------------------------------------------------------------------
# small in-kernel helpers (traced inside kernels)
# --------------------------------------------------------------------------------------

def _phi(x):
    # fast-transformers feature map: elu(x) + 1
    return jnp.where(x > 0, x + 1.0, jnp.exp(x))


def _ln(y, g, b, eps=1e-5):
    mu = jnp.mean(y, axis=-1, keepdims=True)
    var = jnp.mean((y - mu) ** 2, axis=-1, keepdims=True)
    return (y - mu) * jax.lax.rsqrt(var + eps) * g + b


# --------------------------------------------------------------------------------------
# tiling helpers
# --------------------------------------------------------------------------------------

def _chunk_size(t, max_c=256):
    """Sequence chunk length for the prefix-sum attention kernels (divides T)."""
    if t <= max_c:
        return t
    for c in range(max_c - (max_c % 8), 7, -8):
        if t % c == 0:
            return c
    return t   # TODO(synk): no multiple-of-8 divisor; fall back to a single (quadratic) chunk


def _row_block(n, max_rows=512):
    """(block_rows, padded_rows) for row-tiled kernels; prefers exact divisors (no padding)."""
    if n <= max_rows:
        return n, n
    for br in range(max_rows - (max_rows % 8), 7, -8):
        if n % br == 0:
            return br, n
    br = max_rows
    return br, ((n + br - 1) // br) * br


def _const_spec(shape):
    """Constant-index (weights / biases / LN params) BlockSpec, single-buffered."""
    index_map = lambda *_: (0,) * len(shape)
    try:
        return pl.BlockSpec(shape, index_map, pipeline_mode=pl.Buffered(1))
    except TypeError:   # older jax without pipeline_mode on BlockSpec
        return pl.BlockSpec(shape, index_map)


# --------------------------------------------------------------------------------------
# Pallas kernels
# --------------------------------------------------------------------------------------

def _attn_block_kernel(x_ref, wqkv_ref, bqkv_ref, wo_ref, bo_ref, g_ref, b_ref,
                       o_ref, s_state, z_state, *, n_heads, causal):
    """One (batch, T-chunk) step of masked linear attention in chunked prefix-sum form,
    fused with QKV projection, output projection, residual add and LayerNorm."""
    @pl.when(pl.program_id(1) == 0)
    def _init():
        s_state[...] = jnp.zeros_like(s_state)
        z_state[...] = jnp.zeros_like(z_state)

    c, d = x_ref.shape[1], x_ref.shape[2]
    dh = d // n_heads

    x16 = x_ref[0]                                                   # (C, D) bf16
    x = x16.astype(jnp.float32)

    qkv = jnp.dot(x16, wqkv_ref[...], preferred_element_type=jnp.float32) + bqkv_ref[...]
    q, k, v = qkv[:, :d], qkv[:, d:2 * d], qkv[:, 2 * d:]
    pq = _phi(q)
    pk = _phi(k)
    pq16 = pq.astype(jnp.bfloat16)
    pk16 = pk.astype(jnp.bfloat16)
    v16 = v.astype(jnp.bfloat16)

    ri = jax.lax.broadcasted_iota(jnp.int32, (c, c), 0)
    ci = jax.lax.broadcasted_iota(jnp.int32, (c, c), 1)
    mask = (ci <= ri) if causal else (ci >= ri)                      # intra-chunk only

    proj = jnp.zeros((c, d), jnp.float32)
    # Static head unroll is fine now: per-head temporaries are O(C^2 + C*Dh), and each
    # head's result is folded straight into the output projection (no concat).
    for h in range(n_heads):
        sl = slice(h * dh, (h + 1) * dh)
        pq_h, pk_h, v_h = pq16[:, sl], pk16[:, sl], v16[:, sl]       # (C, Dh) bf16
        s_prev = s_state[h]                                          # (Dh, Dh) f32
        z_prev = z_state[h]                                          # (1, Dh)  f32

        scores = jnp.einsum("qd,kd->qk", pq_h, pk_h,
                            preferred_element_type=jnp.float32)      # (C, C)
        scores = jnp.where(mask, scores, 0.0)

        num = (jnp.einsum("qk,kd->qd", scores.astype(jnp.bfloat16), v_h,
                          preferred_element_type=jnp.float32)
               + jnp.einsum("qd,de->qe", pq_h, s_prev.astype(jnp.bfloat16),
                            preferred_element_type=jnp.float32))     # (C, Dh)
        den = (jnp.sum(scores, axis=-1, keepdims=True)
               + jnp.sum(pq[:, sl] * z_prev, axis=-1, keepdims=True))
        attn_h = num / (den + 1e-6)                                  # exact divide (loss parity)

        proj = proj + jnp.dot(attn_h.astype(jnp.bfloat16), wo_ref[sl, :],
                              preferred_element_type=jnp.float32)

        # carry the prefix (or suffix, when walking chunks in reverse) kv-state
        s_state[h] = s_prev + jnp.einsum("kd,ke->de", pk_h, v_h,
                                         preferred_element_type=jnp.float32)
        z_state[h] = z_prev + jnp.sum(pk[:, sl], axis=0, keepdims=True)

    y = x + proj + bo_ref[...]
    o_ref[0] = _ln(y, g_ref[...], b_ref[...]).astype(o_ref.dtype)


def _diag_cross_block_kernel(x_ref, m_ref, wv_ref, bv_ref, wo_ref, bo_ref,
                             g_ref, b_ref, o_ref):
    # Diagonal-masked normalized linear attention: each target row attends to exactly one
    # memory row, so the attention weight is identically 1 and ctx_i == v(memory_i).
    # The q / k / phi path is therefore dead and removed.
    # TODO(synk): exact BFT CausalDiagonalDecoder cross-mask unavailable; modeled as diagonal.
    x = x_ref[...].astype(jnp.float32)
    ctx = jnp.dot(m_ref[...], wv_ref[...], preferred_element_type=jnp.float32) + bv_ref[...]
    proj = jnp.dot(ctx.astype(jnp.bfloat16), wo_ref[...],
                   preferred_element_type=jnp.float32) + bo_ref[...]
    o_ref[...] = _ln(x + proj, g_ref[...], b_ref[...]).astype(o_ref.dtype)


def _ffn_block_kernel(x_ref, w1_ref, b1_ref, w2_ref, b2_ref, g_ref, b_ref, o_ref):
    # Fused FF1 -> ReLU -> FF2 -> residual -> LayerNorm
    x16 = x_ref[...]                                                  # bf16
    x = x16.astype(jnp.float32)
    h = jnp.dot(x16, w1_ref[...], preferred_element_type=jnp.float32) + b1_ref[...]
    h = jnp.maximum(h, 0.0)
    y = jnp.dot(h.astype(jnp.bfloat16), w2_ref[...],
                preferred_element_type=jnp.float32) + b2_ref[...]
    o_ref[...] = _ln(x + y, g_ref[...], b_ref[...]).astype(o_ref.dtype)


def _presoftmax_ce_kernel(x_ref, w_ref, b_ref, tgt_ref, msk_ref,
                          logits_ref, ce_ref, *, eps_ls):
    # Fused pre_softmax projection + closed-form label-smoothed CE.
    # ce = (1-eps)*(lse - logit_tgt) + (eps/V)*(V*lse - sum(logits)); per-row masked
    # partials are written out so the grid stays fully parallel (summed outside).
    logits = jnp.dot(x_ref[...], w_ref[...], preferred_element_type=jnp.float32) + b_ref[...]
    logits_ref[...] = logits
    v = logits.shape[-1]
    m = jnp.max(logits, axis=-1, keepdims=True)
    lse = m + jnp.log(jnp.sum(jnp.exp(logits - m), axis=-1, keepdims=True))
    col = jax.lax.broadcasted_iota(jnp.int32, logits.shape, 1)
    logit_tgt = jnp.sum(jnp.where(col == tgt_ref[...], logits, 0.0), axis=-1, keepdims=True)
    sum_logits = jnp.sum(logits, axis=-1, keepdims=True)
    ce = (1.0 - eps_ls) * (lse - logit_tgt) + (eps_ls / v) * (v * lse - sum_logits)
    ce_ref[...] = ce * msk_ref[...]


# --------------------------------------------------------------------------------------
# Pallas wrappers
# --------------------------------------------------------------------------------------

def fused_attention_block(x, wqkv, bqkv, wo, bo, gamma, beta, n_heads, causal):
    """x: (B, T, D) bf16 -> (B, T, D) bf16. Chunked prefix-sum masked linear attention."""
    bsz, t, d = x.shape
    dh = d // n_heads
    c = _chunk_size(t)
    nc = t // c
    if causal:
        seq_map = lambda b, s: (b, s, 0)
    else:                                   # anticausal: walk chunks back-to-front
        seq_map = lambda b, s: (b, nc - 1 - s, 0)
    kern = functools.partial(_attn_block_kernel, n_heads=n_heads, causal=causal)
    return pl.pallas_call(
        kern,
        out_shape=jax.ShapeDtypeStruct((bsz, t, d), jnp.bfloat16),
        grid=(bsz, nc),
        in_specs=[
            pl.BlockSpec((1, c, d), seq_map),
            _const_spec((d, 3 * d)),
            _const_spec((1, 3 * d)),
            _const_spec((d, d)),
            _const_spec((1, d)),
            _const_spec((1, d)),
            _const_spec((1, d)),
        ],
        out_specs=pl.BlockSpec((1, c, d), seq_map),
        scratch_shapes=[pltpu.VMEM((n_heads, dh, dh), jnp.float32),
                        pltpu.VMEM((n_heads, 1, dh), jnp.float32)],
        compiler_params=pltpu.CompilerParams(
            dimension_semantics=("parallel", "arbitrary"),
            vmem_limit_bytes=_VMEM_LIMIT),
    )(x, wqkv, bqkv.reshape(1, -1), wo, bo.reshape(1, -1),
      gamma.reshape(1, -1), beta.reshape(1, -1))


def fused_diag_cross_block(x, memory, wv, bv, wo, bo, gamma, beta):
    bsz, t, d = x.shape
    assert memory.shape[0] * memory.shape[1] == bsz * t, "diagonal decoder needs T_src == T_tgt"
    n = bsz * t
    xf = x.reshape(n, d)
    mf = memory.reshape(n, d)
    br, np_ = _row_block(n)
    if np_ != n:   # TODO(synk): fallback pad path; preferred path uses an exact divisor
        xf = jnp.pad(xf, ((0, np_ - n), (0, 0)))
        mf = jnp.pad(mf, ((0, np_ - n), (0, 0)))
    out = pl.pallas_call(
        _diag_cross_block_kernel,
        out_shape=jax.ShapeDtypeStruct((np_, d), jnp.bfloat16),
        grid=(np_ // br,),
        in_specs=[
            pl.BlockSpec((br, d), lambda i: (i, 0)),
            pl.BlockSpec((br, d), lambda i: (i, 0)),
            _const_spec((d, d)),
            _const_spec((1, d)),
            _const_spec((d, d)),
            _const_spec((1, d)),
            _const_spec((1, d)),
            _const_spec((1, d)),
        ],
        out_specs=pl.BlockSpec((br, d), lambda i: (i, 0)),
        compiler_params=pltpu.CompilerParams(
            dimension_semantics=("parallel",), vmem_limit_bytes=_VMEM_LIMIT),
    )(xf, mf, wv, bv.reshape(1, -1), wo, bo.reshape(1, -1),
      gamma.reshape(1, -1), beta.reshape(1, -1))
    if np_ != n:
        out = out[:n]
    return out.reshape(bsz, t, d)


def fused_ffn_block(x, w1, b1, w2, b2, gamma, beta):
    bsz, t, d = x.shape
    ff = w1.shape[1]
    n = bsz * t
    xf = x.reshape(n, d)
    br, np_ = _row_block(n)
    if np_ != n:
        xf = jnp.pad(xf, ((0, np_ - n), (0, 0)))
    out = pl.pallas_call(
        _ffn_block_kernel,
        out_shape=jax.ShapeDtypeStruct((np_, d), jnp.bfloat16),
        grid=(np_ // br,),
        in_specs=[
            pl.BlockSpec((br, d), lambda i: (i, 0)),
            _const_spec((d, ff)),
            _const_spec((1, ff)),
            _const_spec((ff, d)),
            _const_spec((1, d)),
            _const_spec((1, d)),
            _const_spec((1, d)),
        ],
        out_specs=pl.BlockSpec((br, d), lambda i: (i, 0)),
        compiler_params=pltpu.CompilerParams(
            dimension_semantics=("parallel",), vmem_limit_bytes=_VMEM_LIMIT),
    )(xf, w1, b1.reshape(1, -1), w2, b2.reshape(1, -1),
      gamma.reshape(1, -1), beta.reshape(1, -1))
    if np_ != n:
        out = out[:n]
    return out.reshape(bsz, t, d)


def fused_presoftmax_ce(x, w, b, targets, mask, eps_ls):
    """x: (N, D) bf16, w: (D, V) bf16. Returns (logits (N, V) f32, masked CE sum scalar)."""
    n, d = x.shape
    v = w.shape[1]
    br, np_ = _row_block(n)
    tgt = targets.reshape(n, 1).astype(jnp.int32)
    msk = mask.reshape(n, 1).astype(jnp.float32)
    if np_ != n:
        x = jnp.pad(x, ((0, np_ - n), (0, 0)))
        tgt = jnp.pad(tgt, ((0, np_ - n), (0, 0)))
        msk = jnp.pad(msk, ((0, np_ - n), (0, 0)))
    kern = functools.partial(_presoftmax_ce_kernel, eps_ls=float(eps_ls))
    logits, ce_rows = pl.pallas_call(
        kern,
        out_shape=(jax.ShapeDtypeStruct((np_, v), jnp.float32),
                   jax.ShapeDtypeStruct((np_, 1), jnp.float32)),
        grid=(np_ // br,),
        in_specs=[
            pl.BlockSpec((br, d), lambda i: (i, 0)),
            _const_spec((d, v)),
            _const_spec((1, v)),
            pl.BlockSpec((br, 1), lambda i: (i, 0)),
            pl.BlockSpec((br, 1), lambda i: (i, 0)),
        ],
        out_specs=(pl.BlockSpec((br, v), lambda i: (i, 0)),
                   pl.BlockSpec((br, 1), lambda i: (i, 0))),
        compiler_params=pltpu.CompilerParams(
            dimension_semantics=("parallel",), vmem_limit_bytes=_VMEM_LIMIT),
    )(x, w, b.reshape(1, v), tgt, msk)
    return logits[:n], jnp.sum(ce_rows)


# --------------------------------------------------------------------------------------
# Model glue (embedding lookups, PE fold, shift, layer stacking)
# --------------------------------------------------------------------------------------

def sinusoidal_pe(t, pe_size):
    pos = jnp.arange(t, dtype=jnp.float32)[:, None]
    i = jnp.arange(pe_size // 2, dtype=jnp.float32)[None, :]
    div = jnp.exp(-jnp.log(10000.0) * (2.0 * i) / pe_size)
    return jnp.concatenate([jnp.sin(pos * div), jnp.cos(pos * div)], axis=-1)   # (T, pe)


def _input_sequence(emb_tables, in_proj, tokens, pe_size):
    # Fold the input projection into the embedding tables: project each (V, emb) table to
    # (V, d_model) once, gather directly in d_model, add the projected PE + bias.
    # TODO(synk): the token gather stays in plain JAX (data-dependent gather).
    w_emb = in_proj["w_emb"].astype(jnp.float32)
    proj_tables = [jnp.dot(tbl, w_emb) for tbl in emb_tables]          # (V, D) per channel
    embs = [jnp.take(pt, tokens[:, :, ch], axis=0) for ch, pt in enumerate(proj_tables)]
    x = jnp.stack(embs, axis=2)                                        # (B, E, C, D)
    bsz, e, c, d = x.shape
    t = e * c
    x = x.reshape(bsz, t, d)
    pe = sinusoidal_pe(t, pe_size)
    pe_proj = jnp.dot(pe, in_proj["w_pe"]) + in_proj["b"]              # (T, D)
    return (x + pe_proj[None]).astype(jnp.bfloat16)                    # residual stream bf16


def encoder_layer(lp, x, n_heads):
    x = fused_attention_block(x, lp["wqkv"], lp["bqkv"], lp["wo"], lp["bo"],
                              lp["ln1_g"], lp["ln1_b"], n_heads, causal=False)
    return fused_ffn_block(x, lp["w1"], lp["b1"], lp["w2"], lp["b2"],
                           lp["ln2_g"], lp["ln2_b"])


def decoder_layer(lp, x, memory, n_heads):
    x = fused_attention_block(x, lp["sa_wqkv"], lp["sa_bqkv"], lp["sa_wo"], lp["sa_bo"],
                              lp["ln1_g"], lp["ln1_b"], n_heads, causal=True)
    x = fused_diag_cross_block(x, memory, lp["ca_wv"], lp["ca_bv"], lp["ca_wo"],
                               lp["ca_bo"], lp["ln2_g"], lp["ln2_b"])
    return fused_ffn_block(x, lp["w1"], lp["b1"], lp["w2"], lp["b2"],
                           lp["ln3_g"], lp["ln3_b"])


def forward_source(params, source, cfg):
    seq = _input_sequence(params["src_embed"], params["src_in"], source, cfg["pe_size"])
    for lp in params["encoder_layers"]:
        seq = encoder_layer(lp, seq, cfg["n_head_encoder"])
    return seq                                                         # memory (B, T_src, D)


def forward_memory_target(params, memory, target, cfg):
    bsz, e_t, c_t = target.shape
    d = cfg["d_model"]
    seq = _input_sequence(params["tgt_embed"], params["tgt_in"], target, cfg["pe_size"])
    sos = jnp.broadcast_to(params["sos_embedding"].astype(jnp.bfloat16)[None, None, :],
                           (bsz, 1, d))
    seq = jnp.concatenate([sos, seq], axis=1)[:, :-1]                  # shift-right with SOS
    x = seq
    for lp in params["decoder_layers"]:
        x = decoder_layer(lp, x, memory, cfg["n_head_decoder"])
    return x.reshape(bsz, e_t, c_t, d), None                           # (decoder out, h_pe_target)


def presoftmax_and_loss(params, dec_out, target, mask, label_smoothing):
    bsz, e_t, c_t, d = dec_out.shape
    mask_f = mask.astype(jnp.float32)
    weights_per_category = []
    total = jnp.float32(0.0)
    for c in range(c_t):
        w, b = params["pre_softmax"][c]
        x_c = dec_out[:, :, c, :].reshape(bsz * e_t, d)
        logits, masked_sum = fused_presoftmax_ce(
            x_c, w, b, target[:, :, c].reshape(-1), mask_f[:, :, c].reshape(-1),
            label_smoothing)
        weights_per_category.append(logits.reshape(bsz, e_t, -1))
        total = total + masked_sum
    loss = total / (jnp.sum(mask_f) + 1e-9)
    return weights_per_category, loss


def encoder_decoder_forward(params, source, target, metadata_dict, cfg):
    memory = forward_source(params, source, cfg)
    dec_out, h_pe_target = forward_memory_target(params, memory, target, cfg)
    mask = metadata_dict["masked_positions"]
    # TODO(synk): optional 'loss_mask' combination from the reference is not exercised here.
    weights_per_category, loss = presoftmax_and_loss(params, dec_out, target, mask,
                                                     cfg["label_smoothing"])
    return {"loss": loss, "h_pe_target": h_pe_target,
            "weights_per_category": weights_per_category,
            "monitored_quantities": {"loss": loss}}


# --------------------------------------------------------------------------------------
# Deterministic parameter init (matmul weights stored bf16, biases / LN params f32)
# --------------------------------------------------------------------------------------

def _dense_bf16(key, din, dout, scale=0.02):
    w = (scale * jax.random.normal(key, (din, dout), jnp.float32)).astype(jnp.bfloat16)
    return w, jnp.zeros((dout,), jnp.float32)


def _encoder_layer_params(key, d, ff):
    ks = jax.random.split(key, 4)
    p = {}
    p["wqkv"], p["bqkv"] = _dense_bf16(ks[0], d, 3 * d)
    p["wo"], p["bo"] = _dense_bf16(ks[1], d, d)
    p["w1"], p["b1"] = _dense_bf16(ks[2], d, ff)
    p["w2"], p["b2"] = _dense_bf16(ks[3], ff, d)
    for i in (1, 2):
        p[f"ln{i}_g"], p[f"ln{i}_b"] = jnp.ones((d,), jnp.float32), jnp.zeros((d,), jnp.float32)
    return p


def _decoder_layer_params(key, d, ff):
    ks = jax.random.split(key, 6)
    p = {}
    p["sa_wqkv"], p["sa_bqkv"] = _dense_bf16(ks[0], d, 3 * d)
    p["sa_wo"], p["sa_bo"] = _dense_bf16(ks[1], d, d)
    p["ca_wv"], p["ca_bv"] = _dense_bf16(ks[2], d, d)
    p["ca_wo"], p["ca_bo"] = _dense_bf16(ks[3], d, d)
    p["w1"], p["b1"] = _dense_bf16(ks[4], d, ff)
    p["w2"], p["b2"] = _dense_bf16(ks[5], ff, d)
    for i in (1, 2, 3):
        p[f"ln{i}_g"], p[f"ln{i}_b"] = jnp.ones((d,), jnp.float32), jnp.zeros((d,), jnp.float32)
    return p


def init_params(key, cfg):
    keys = jax.random.split(key, 8)
    d = cfg["d_model"]
    emb = cfg["embedding_size"]
    pe = cfg["pe_size"]
    params = {}
    params["src_embed"] = [0.02 * jax.random.normal(k, (cfg["vocab_size"], emb), jnp.float32)
                           for k in jax.random.split(keys[0], cfg["num_channels_source"])]
    params["tgt_embed"] = [0.02 * jax.random.normal(k, (cfg["vocab_size"], emb), jnp.float32)
                           for k in jax.random.split(keys[1], cfg["num_channels_target"])]

    def in_proj(k):
        k1, k2 = jax.random.split(k)
        w_emb, _ = _dense_bf16(k1, emb, d)
        w_pe = 0.02 * jax.random.normal(k2, (pe, d), jnp.float32)
        return {"w_emb": w_emb, "w_pe": w_pe, "b": jnp.zeros((d,), jnp.float32)}

    params["src_in"] = in_proj(keys[2])
    params["tgt_in"] = in_proj(keys[3])
    params["sos_embedding"] = 0.02 * jax.random.normal(keys[4], (d,), jnp.float32)
    params["encoder_layers"] = [_encoder_layer_params(k, d, cfg["dim_feedforward_encoder"])
                                for k in jax.random.split(keys[5], cfg["num_layers_encoder"])]
    params["decoder_layers"] = [_decoder_layer_params(k, d, cfg["dim_feedforward_decoder"])
                                for k in jax.random.split(keys[6], cfg["num_layers_decoder"])]
    params["pre_softmax"] = [_dense_bf16(k, d, v) for k, v in
                             zip(jax.random.split(keys[7], cfg["num_channels_target"]),
                                 cfg["num_tokens_per_channel"])]
    return params


# --------------------------------------------------------------------------------------

if __name__ == "__main__":
    cfg = dict(
        d_model=32,
        n_head_encoder=2,
        n_head_decoder=2,
        num_layers_encoder=2,
        num_layers_decoder=2,
        dim_feedforward_encoder=64,
        dim_feedforward_decoder=64,
        num_events_source=4,
        num_events_target=4,
        num_channels_source=2,
        num_channels_target=2,
        embedding_size=8,
        pe_size=8,
        vocab_size=16,
        num_tokens_per_channel=[16, 16],
        label_smoothing=0.1,
    )
    B = 2
    key = jax.random.PRNGKey(0)
    k_params, k_src, k_tgt = jax.random.split(key, 3)

    params = init_params(k_params, cfg)
    source = jax.random.randint(k_src, (B, cfg["num_events_source"], cfg["num_channels_source"]),
                                0, cfg["vocab_size"], dtype=jnp.int32)
    target = jax.random.randint(k_tgt, (B, cfg["num_events_target"], cfg["num_channels_target"]),
                                0, cfg["vocab_size"], dtype=jnp.int32)
    ev = jnp.arange(cfg["num_events_target"])[:, None]
    ch = jnp.arange(cfg["num_channels_target"])[None, :]
    masked_positions = jnp.broadcast_to(((ev + ch) % 2 == 0)[None],
                                        (B, cfg["num_events_target"], cfg["num_channels_target"]))

    @jax.jit
    def run(params_, source_, target_, masked_positions_):
        return encoder_decoder_forward(params_, source_, target_,
                                       {"masked_positions": masked_positions_}, cfg)

    out = run(params, source, target, masked_positions)
    loss = jax.block_until_ready(out["loss"])
    for w in out["weights_per_category"]:
        jax.block_until_ready(w)
    assert bool(jnp.isfinite(loss)), "loss is not finite"
    print("KERNEL_OK")
</pallas_src>

<mosaic_0001>
module attributes {stable_mosaic.version = 11 : i64} {
  func.func @_ffn_block_kernel(%arg0: i32, %arg1: memref<16x32xbf16, #tpu.memory_space<vmem>>, %arg2: memref<32x64xbf16, #tpu.memory_space<vmem>>, %arg3: memref<1x64xf32, #tpu.memory_space<vmem>>, %arg4: memref<64x32xbf16, #tpu.memory_space<vmem>>, %arg5: memref<1x32xf32, #tpu.memory_space<vmem>>, %arg6: memref<1x32xf32, #tpu.memory_space<vmem>>, %arg7: memref<1x32xf32, #tpu.memory_space<vmem>>, %arg8: memref<16x32xbf16, #tpu.memory_space<vmem>>) attributes {dimension_semantics = [#tpu.dimension_semantics<parallel>], iteration_bounds = array<i64: 1>, scalar_prefetch = 0 : i64, scratch_operands = 0 : i64, tpu.core_type = #tpu.core_type<tc>, window_params = [{transform_indices = @transform_0, window_bounds = array<i64: 16, 32>}, {pipeline_mode = #tpu.pipeline_mode<synchronous>, transform_indices = @transform_1, window_bounds = array<i64: 32, 64>}, {pipeline_mode = #tpu.pipeline_mode<synchronous>, transform_indices = @transform_2, window_bounds = array<i64: 1, 64>}, {pipeline_mode = #tpu.pipeline_mode<synchronous>, transform_indices = @transform_3, window_bounds = array<i64: 64, 32>}, {pipeline_mode = #tpu.pipeline_mode<synchronous>, transform_indices = @transform_4, window_bounds = array<i64: 1, 32>}, {pipeline_mode = #tpu.pipeline_mode<synchronous>, transform_indices = @transform_5, window_bounds = array<i64: 1, 32>}, {pipeline_mode = #tpu.pipeline_mode<synchronous>, transform_indices = @transform_6, window_bounds = array<i64: 1, 32>}, {transform_indices = @transform_7, window_bounds = array<i64: 16, 32>}]} {
    %c0 = arith.constant 0 : index
    %c0_0 = arith.constant 0 : index
    %0 = vector.load %arg1[%c0, %c0_0] : memref<16x32xbf16, #tpu.memory_space<vmem>>, vector<16x32xbf16>
    %1 = arith.extf %0 : vector<16x32xbf16> to vector<16x32xf32>
    %c0_1 = arith.constant 0 : index
    %c0_2 = arith.constant 0 : index
    %2 = vector.load %arg2[%c0_1, %c0_2] : memref<32x64xbf16, #tpu.memory_space<vmem>>, vector<32x64xbf16>
    %cst = arith.constant dense<0.000000e+00> : vector<16x64xf32>
    %3 = tpu.matmul %0, %2, %cst {dimension_numbers = #tpu.dot_dimension_numbers<[1], [0], [0], [1], [0, 0, 1, 1], [], []>} : vector<16x32xbf16>, vector<32x64xbf16>, vector<16x64xf32> -> vector<16x64xf32>
    %c0_3 = arith.constant 0 : index
    %c0_4 = arith.constant 0 : index
    %4 = vector.load %arg3[%c0_3, %c0_4] : memref<1x64xf32, #tpu.memory_space<vmem>>, vector<1x64xf32>
    %5 = vector.broadcast %4 : vector<1x64xf32> to vector<16x64xf32>
    %6 = arith.addf %3, %5 : vector<16x64xf32>
    %cst_5 = arith.constant 0.000000e+00 : f32
    %7 = vector.broadcast %cst_5 : f32 to vector<16x64xf32>
    %8 = arith.maximumf %6, %7 : vector<16x64xf32>
    %9 = arith.truncf %8 : vector<16x64xf32> to vector<16x64xbf16>
    %c0_6 = arith.constant 0 : index
    %c0_7 = arith.constant 0 : index
    %10 = vector.load %arg4[%c0_6, %c0_7] : memref<64x32xbf16, #tpu.memory_space<vmem>>, vector<64x32xbf16>
    %cst_8 = arith.constant dense<0.000000e+00> : vector<16x32xf32>
    %11 = tpu.matmul %9, %10, %cst_8 {dimension_numbers = #tpu.dot_dimension_numbers<[1], [0], [0], [1], [0, 0, 1, 1], [], []>} : vector<16x64xbf16>, vector<64x32xbf16>, vector<16x32xf32> -> vector<16x32xf32>
    %c0_9 = arith.constant 0 : index
    %c0_10 = arith.constant 0 : index
    %12 = vector.load %arg5[%c0_9, %c0_10] : memref<1x32xf32, #tpu.memory_space<vmem>>, vector<1x32xf32>
    %13 = vector.broadcast %12 : vector<1x32xf32> to vector<16x32xf32>
    %14 = arith.addf %11, %13 : vector<16x32xf32>
    %15 = arith.addf %1, %14 : vector<16x32xf32>
    %c0_11 = arith.constant 0 : index
    %c0_12 = arith.constant 0 : index
    %16 = vector.load %arg6[%c0_11, %c0_12] : memref<1x32xf32, #tpu.memory_space<vmem>>, vector<1x32xf32>
    %c0_13 = arith.constant 0 : index
    %c0_14 = arith.constant 0 : index
    %17 = vector.load %arg7[%c0_13, %c0_14] : memref<1x32xf32, #tpu.memory_space<vmem>>, vector<1x32xf32>
    %cst_15 = arith.constant dense<0.000000e+00> : vector<16xf32>
    %18 = vector.multi_reduction <add>, %15, %cst_15 [1] : vector<16x32xf32> to vector<16xf32>
    %19 = vector.shape_cast %18 : vector<16xf32> to vector<16x1xf32>
    %cst_16 = arith.constant 3.200000e+01 : f32
    %20 = vector.broadcast %cst_16 : f32 to vector<16x1xf32>
    %21 = arith.divf %19, %20 : vector<16x1xf32>
    %22 = vector.broadcast %21 : vector<16x1xf32> to vector<16x32xf32>
    %23 = arith.subf %15, %22 : vector<16x32xf32>
    %24 = arith.mulf %23, %23 : vector<16x32xf32>
    %cst_17 = arith.constant dense<0.000000e+00> : vector<16xf32>
    %25 = vector.multi_reduction <add>, %24, %cst_17 [1] : vector<16x32xf32> to vector<16xf32>
    %26 = vector.shape_cast %25 : vector<16xf32> to vector<16x1xf32>
    %cst_18 = arith.constant 3.200000e+01 : f32
    %27 = vector.broadcast %cst_18 : f32 to vector<16x1xf32>
    %28 = arith.divf %26, %27 : vector<16x1xf32>
    %29 = vector.broadcast %21 : vector<16x1xf32> to vector<16x32xf32>
    %30 = arith.subf %15, %29 : vector<16x32xf32>
    %cst_19 = arith.constant 9.99999974E-6 : f32
    %31 = vector.broadcast %cst_19 : f32 to vector<16x1xf32>
    %32 = arith.addf %28, %31 : vector<16x1xf32>
    %33 = math.rsqrt %32 : vector<16x1xf32>
    %34 = vector.broadcast %33 : vector<16x1xf32> to vector<16x32xf32>
    %35 = arith.mulf %30, %34 : vector<16x32xf32>
    %36 = vector.broadcast %16 : vector<1x32xf32> to vector<16x32xf32>
    %37 = arith.mulf %35, %36 : vector<16x32xf32>
    %38 = vector.broadcast %17 : vector<1x32xf32> to vector<16x32xf32>
    %39 = arith.addf %37, %38 : vector<16x32xf32>
    %40 = arith.truncf %39 : vector<16x32xf32> to vector<16x32xbf16>
    %c0_20 = arith.constant 0 : index
    %c0_21 = arith.constant 0 : index
    %41 = vector.load %arg8[%c0_20, %c0_21] : memref<16x32xbf16, #tpu.memory_space<vmem>>, vector<16x32xbf16>
    tpu.vector_store %arg8[%c0_20, %c0_21], %40 {strides = array<i32>} : memref<16x32xbf16, #tpu.memory_space<vmem>>, vector<16x32xbf16>,
    return
  }
  func.func @transform_0(%arg0: i32) -> (i32, i32) {
    %c0_i32 = arith.constant 0 : i32
    %c0_i32_0 = arith.constant 0 : i32
    return %arg0, %c0_i32 : i32, i32
  }
  func.func @transform_1(%arg0: i32) -> (i32, i32) {
    %c0_i32 = arith.constant 0 : i32
    %c0_i32_0 = arith.constant 0 : i32
    %c0_i32_1 = arith.constant 0 : i32
    return %c0_i32, %c0_i32_0 : i32, i32
  }
  func.func @transform_2(%arg0: i32) -> (i32, i32) {
    %c0_i32 = arith.constant 0 : i32
    %c0_i32_0 = arith.constant 0 : i32
    %c0_i32_1 = arith.constant 0 : i32
    return %c0_i32, %c0_i32_0 : i32, i32
  }
  func.func @transform_3(%arg0: i32) -> (i32, i32) {
    %c0_i32 = arith.constant 0 : i32
    %c0_i32_0 = arith.constant 0 : i32
    %c0_i32_1 = arith.constant 0 : i32
    return %c0_i32, %c0_i32_0 : i32, i32
  }
  func.func @transform_4(%arg0: i32) -> (i32, i32) {
    %c0_i32 = arith.constant 0 : i32
    %c0_i32_0 = arith.constant 0 : i32
    %c0_i32_1 = arith.constant 0 : i32
    return %c0_i32, %c0_i32_0 : i32, i32
  }
  func.func @transform_5(%arg0: i32) -> (i32, i32) {
    %c0_i32 = arith.constant 0 : i32
    %c0_i32_0 = arith.constant 0 : i32
    %c0_i32_1 = arith.constant 0 : i32
    return %c0_i32, %c0_i32_0 : i32, i32
  }
  func.func @transform_6(%arg0: i32) -> (i32, i32) {
    %c0_i32 = arith.constant 0 : i32
    %c0_i32_0 = arith.constant 0 : i32
    %c0_i32_1 = arith.constant 0 : i32
    return %c0_i32, %c0_i32_0 : i32, i32
  }
  func.func @transform_7(%arg0: i32) -> (i32, i32) {
    %c0_i32 = arith.constant 0 : i32
    %c0_i32_0 = arith.constant 0 : i32
    return %arg0, %c0_i32 : i32, i32
  }
}

module attributes {stable_mosaic.version = 11 : i64} {
  func.func @_diag_cross_block_kernel(%arg0: i32, %arg1: memref<16x32xbf16, #tpu.memory_space<vmem>>, %arg2: memref<16x32xbf16, #tpu.memory_space<vmem>>, %arg3: memref<32x32xbf16, #tpu.memory_space<vmem>>, %arg4: memref<1x32xf32, #tpu.memory_space<vmem>>, %arg5: memref<32x32xbf16, #tpu.memory_space<vmem>>, %arg6: memref<1x32xf32, #tpu.memory_space<vmem>>, %arg7: memref<1x32xf32, #tpu.memory_space<vmem>>, %arg8: memref<1x32xf32, #tpu.memory_space<vmem>>, %arg9: memref<16x32xbf16, #tpu.memory_space<vmem>>) attributes {dimension_semantics = [#tpu.dimension_semantics<parallel>], iteration_bounds = array<i64: 1>, scalar_prefetch = 0 : i64, scratch_operands = 0 : i64, tpu.core_type = #tpu.core_type<tc>, window_params = [{transform_indices = @transform_0, window_bounds = array<i64: 16, 32>}, {transform_indices = @transform_1, window_bounds = array<i64: 16, 32>}, {pipeline_mode = #tpu.pipeline_mode<synchronous>, transform_indices = @transform_2, window_bounds = array<i64: 32, 32>}, {pipeline_mode = #tpu.pipeline_mode<synchronous>, transform_indices = @transform_3, window_bounds = array<i64: 1, 32>}, {pipeline_mode = #tpu.pipeline_mode<synchronous>, transform_indices = @transform_4, window_bounds = array<i64: 32, 32>}, {pipeline_mode = #tpu.pipeline_mode<synchronous>, transform_indices = @transform_5, window_bounds = array<i64: 1, 32>}, {pipeline_mode = #tpu.pipeline_mode<synchronous>, transform_indices = @transform_6, window_bounds = array<i64: 1, 32>}, {pipeline_mode = #tpu.pipeline_mode<synchronous>, transform_indices = @transform_7, window_bounds = array<i64: 1, 32>}, {transform_indices = @transform_8, window_bounds = array<i64: 16, 32>}]} {
    %c0 = arith.constant 0 : index
    %c0_0 = arith.constant 0 : index
    %0 = vector.load %arg1[%c0, %c0_0] : memref<16x32xbf16, #tpu.memory_space<vmem>>, vector<16x32xbf16>
    %1 = arith.extf %0 : vector<16x32xbf16> to vector<16x32xf32>
    %c0_1 = arith.constant 0 : index
    %c0_2 = arith.constant 0 : index
    %2 = vector.load %arg2[%c0_1, %c0_2] : memref<16x32xbf16, #tpu.memory_space<vmem>>, vector<16x32xbf16>
    %c0_3 = arith.constant 0 : index
    %c0_4 = arith.constant 0 : index
    %3 = vector.load %arg3[%c0_3, %c0_4] : memref<32x32xbf16, #tpu.memory_space<vmem>>, vector<32x32xbf16>
    %cst = arith.constant dense<0.000000e+00> : vector<16x32xf32>
    %4 = tpu.matmul %2, %3, %cst {dimension_numbers = #tpu.dot_dimension_numbers<[1], [0], [0], [1], [0, 0, 1, 1], [], []>} : vector<16x32xbf16>, vector<32x32xbf16>, vector<16x32xf32> -> vector<16x32xf32>
    %c0_5 = arith.constant 0 : index
    %c0_6 = arith.constant 0 : index
    %5 = vector.load %arg4[%c0_5, %c0_6] : memref<1x32xf32, #tpu.memory_space<vmem>>, vector<1x32xf32>
    %6 = vector.broadcast %5 : vector<1x32xf32> to vector<16x32xf32>
    %7 = arith.addf %4, %6 : vector<16x32xf32>
    %8 = arith.truncf %7 : vector<16x32xf32> to vector<16x32xbf16>
    %c0_7 = arith.constant 0 : index
    %c0_8 = arith.constant 0 : index
    %9 = vector.load %arg5[%c0_7, %c0_8] : memref<32x32xbf16, #tpu.memory_space<vmem>>, vector<32x32xbf16>
    %cst_9 = arith.constant dense<0.000000e+00> : vector<16x32xf32>
    %10 = tpu.matmul %8, %9, %cst_9 {dimension_numbers = #tpu.dot_dimension_numbers<[1], [0], [0], [1], [0, 0, 1, 1], [], []>} : vector<16x32xbf16>, vector<32x32xbf16>, vector<16x32xf32> -> vector<16x32xf32>
    %c0_10 = arith.constant 0 : index
    %c0_11 = arith.constant 0 : index
    %11 = vector.load %arg6[%c0_10, %c0_11] : memref<1x32xf32, #tpu.memory_space<vmem>>, vector<1x32xf32>
    %12 = vector.broadcast %11 : vector<1x32xf32> to vector<16x32xf32>
    %13 = arith.addf %10, %12 : vector<16x32xf32>
    %14 = arith.addf %1, %13 : vector<16x32xf32>
    %c0_12 = arith.constant 0 : index
    %c0_13 = arith.constant 0 : index
    %15 = vector.load %arg7[%c0_12, %c0_13] : memref<1x32xf32, #tpu.memory_space<vmem>>, vector<1x32xf32>
    %c0_14 = arith.constant 0 : index
    %c0_15 = arith.constant 0 : index
    %16 = vector.load %arg8[%c0_14, %c0_15] : memref<1x32xf32, #tpu.memory_space<vmem>>, vector<1x32xf32>
    %cst_16 = arith.constant dense<0.000000e+00> : vector<16xf32>
    %17 = vector.multi_reduction <add>, %14, %cst_16 [1] : vector<16x32xf32> to vector<16xf32>
    %18 = vector.shape_cast %17 : vector<16xf32> to vector<16x1xf32>
    %cst_17 = arith.constant 3.200000e+01 : f32
    %19 = vector.broadcast %cst_17 : f32 to vector<16x1xf32>
    %20 = arith.divf %18, %19 : vector<16x1xf32>
    %21 = vector.broadcast %20 : vector<16x1xf32> to vector<16x32xf32>
    %22 = arith.subf %14, %21 : vector<16x32xf32>
    %23 = arith.mulf %22, %22 : vector<16x32xf32>
    %cst_18 = arith.constant dense<0.000000e+00> : vector<16xf32>
    %24 = vector.multi_reduction <add>, %23, %cst_18 [1] : vector<16x32xf32> to vector<16xf32>
    %25 = vector.shape_cast %24 : vector<16xf32> to vector<16x1xf32>
    %cst_19 = arith.constant 3.200000e+01 : f32
    %26 = vector.broadcast %cst_19 : f32 to vector<16x1xf32>
    %27 = arith.divf %25, %26 : vector<16x1xf32>
    %28 = vector.broadcast %20 : vector<16x1xf32> to vector<16x32xf32>
    %29 = arith.subf %14, %28 : vector<16x32xf32>
    %cst_20 = arith.constant 9.99999974E-6 : f32
    %30 = vector.broadcast %cst_20 : f32 to vector<16x1xf32>
    %31 = arith.addf %27, %30 : vector<16x1xf32>
    %32 = math.rsqrt %31 : vector<16x1xf32>
    %33 = vector.broadcast %32 : vector<16x1xf32> to vector<16x32xf32>
    %34 = arith.mulf %29, %33 : vector<16x32xf32>
    %35 = vector.broadcast %15 : vector<1x32xf32> to vector<16x32xf32>
    %36 = arith.mulf %34, %35 : vector<16x32xf32>
    %37 = vector.broadcast %16 : vector<1x32xf32> to vector<16x32xf32>
    %38 = arith.addf %36, %37 : vector<16x32xf32>
    %39 = arith.truncf %38 : vector<16x32xf32> to vector<16x32xbf16>
    %c0_21 = arith.constant 0 : index
    %c0_22 = arith.constant 0 : index
    %40 = vector.load %arg9[%c0_21, %c0_22] : memref<16x32xbf16, #tpu.memory_space<vmem>>, vector<16x32xbf16>
    tpu.vector_store %arg9[%c0_21, %c0_22], %39 {strides = array<i32>} : memref<16x32xbf16, #tpu.memory_space<vmem>>, vector<16x32xbf16>,
    return
  }
  func.func @transform_0(%arg0: i32) -> (i32, i32) {
    %c0_i32 = arith.constant 0 : i32
    %c0_i32_0 = arith.constant 0 : i32
    return %arg0, %c0_i32 : i32, i32
  }
  func.func @transform_1(%arg0: i32) -> (i32, i32) {
    %c0_i32 = arith.constant 0 : i32
    %c0_i32_0 = arith.constant 0 : i32
    return %arg0, %c0_i32 : i32, i32
  }
  func.func @transform_2(%arg0: i32) -> (i32, i32) {
    %c0_i32 = arith.constant 0 : i32
    %c0_i32_0 = arith.constant 0 : i32
    %c0_i32_1 = arith.constant 0 : i32
    return %c0_i32, %c0_i32_0 : i32, i32
  }
  func.func @transform_3(%arg0: i32) -> (i32, i32) {
    %c0_i32 = arith.constant 0 : i32
    %c0_i32_0 = arith.constant 0 : i32
    %c0_i32_1 = arith.constant 0 : i32
    return %c0_i32, %c0_i32_0 : i32, i32
  }
  func.func @transform_4(%arg0: i32) -> (i32, i32) {
    %c0_i32 = arith.constant 0 : i32
    %c0_i32_0 = arith.constant 0 : i32
    %c0_i32_1 = arith.constant 0 : i32
    return %c0_i32, %c0_i32_0 : i32, i32
  }
  func.func @transform_5(%arg0: i32) -> (i32, i32) {
    %c0_i32 = arith.constant 0 : i32
    %c0_i32_0 = arith.constant 0 : i32
    %c0_i32_1 = arith.constant 0 : i32
    return %c0_i32, %c0_i32_0 : i32, i32
  }
  func.func @transform_6(%arg0: i32) -> (i32, i32) {
    %c0_i32 = arith.constant 0 : i32
    %c0_i32_0 = arith.constant 0 : i32
    %c0_i32_1 = arith.constant 0 : i32
    return %c0_i32, %c0_i32_0 : i32, i32
  }
  func.func @transform_7(%arg0: i32) -> (i32, i32) {
    %c0_i32 = arith.constant 0 : i32
    %c0_i32_0 = arith.constant 0 : i32
    %c0_i32_1 = arith.constant 0 : i32
    return %c0_i32, %c0_i32_0 : i32, i32
  }
  func.func @transform_8(%arg0: i32) -> (i32, i32) {
    %c0_i32 = arith.constant 0 : i32
    %c0_i32_0 = arith.constant 0 : i32
    return %arg0, %c0_i32 : i32, i32
  }
}

module attributes {stable_mosaic.version = 11 : i64} {
  func.func @_attn_block_kernel(%arg0: i32, %arg1: i32, %arg2: memref<1x8x32xbf16, #tpu.memory_space<vmem>>, %arg3: memref<32x96xbf16, #tpu.memory_space<vmem>>, %arg4: memref<1x96xf32, #tpu.memory_space<vmem>>, %arg5: memref<32x32xbf16, #tpu.memory_space<vmem>>, %arg6: memref<1x32xf32, #tpu.memory_space<vmem>>, %arg7: memref<1x32xf32, #tpu.memory_space<vmem>>, %arg8: memref<1x32xf32, #tpu.memory_space<vmem>>, %arg9: memref<1x8x32xbf16, #tpu.memory_space<vmem>>, %arg10: memref<2x16x16xf32, #tpu.memory_space<vmem>>, %arg11: memref<2x1x16xf32, #tpu.memory_space<vmem>>) attributes {dimension_semantics = [#tpu.dimension_semantics<parallel>, #tpu.dimension_semantics<arbitrary>], iteration_bounds = array<i64: 2, 1>, scalar_prefetch = 0 : i64, scratch_operands = 2 : i64, tpu.core_type = #tpu.core_type<tc>, window_params = [{transform_indices = @transform_0, window_bounds = array<i64: 1, 8, 32>}, {pipeline_mode = #tpu.pipeline_mode<synchronous>, transform_indices = @transform_1, window_bounds = array<i64: 32, 96>}, {pipeline_mode = #tpu.pipeline_mode<synchronous>, transform_indices = @transform_2, window_bounds = array<i64: 1, 96>}, {pipeline_mode = #tpu.pipeline_mode<synchronous>, transform_indices = @transform_3, window_bounds = array<i64: 32, 32>}, {pipeline_mode = #tpu.pipeline_mode<synchronous>, transform_indices = @transform_4, window_bounds = array<i64: 1, 32>}, {pipeline_mode = #tpu.pipeline_mode<synchronous>, transform_indices = @transform_5, window_bounds = array<i64: 1, 32>}, {pipeline_mode = #tpu.pipeline_mode<synchronous>, transform_indices = @transform_6, window_bounds = array<i64: 1, 32>}, {transform_indices = @transform_7, window_bounds = array<i64: 1, 8, 32>}]} {
    %c0_i32 = arith.constant 0 : i32
    %0 = arith.cmpi eq, %arg1, %c0_i32 : i32
    %1 = arith.extui %0 : i1 to i32
    %c0_i32_0 = arith.constant 0 : i32
    %2 = arith.cmpi ne, %1, %c0_i32_0 : i32
    scf.if %2 {
      %cst_72 = arith.constant 0.000000e+00 : f32
      %151 = vector.broadcast %cst_72 : f32 to vector<2x16x16xf32>
      %c0_73 = arith.constant 0 : index
      %c0_74 = arith.constant 0 : index
      %c0_75 = arith.constant 0 : index
      %152 = vector.load %arg10[%c0_73, %c0_74, %c0_75] : memref<2x16x16xf32, #tpu.memory_space<vmem>>, vector<2x16x16xf32>
      tpu.vector_store %arg10[%c0_73, %c0_74, %c0_75], %151 {strides = array<i32>} : memref<2x16x16xf32, #tpu.memory_space<vmem>>, vector<2x16x16xf32>,
      %cst_76 = arith.constant 0.000000e+00 : f32
      %153 = vector.broadcast %cst_76 : f32 to vector<2x1x16xf32>
      %c0_77 = arith.constant 0 : index
      %c0_78 = arith.constant 0 : index
      %c0_79 = arith.constant 0 : index
      %154 = vector.load %arg11[%c0_77, %c0_78, %c0_79] : memref<2x1x16xf32, #tpu.memory_space<vmem>>, vector<2x1x16xf32>
      tpu.vector_store %arg11[%c0_77, %c0_78, %c0_79], %153 {strides = array<i32>} : memref<2x1x16xf32, #tpu.memory_space<vmem>>, vector<2x1x16xf32>,
    } else {
    }
    %c0 = arith.constant 0 : index
    %c0_1 = arith.constant 0 : index
    %c0_2 = arith.constant 0 : index
    %3 = vector.load %arg2[%c0, %c0_1, %c0_2] : memref<1x8x32xbf16, #tpu.memory_space<vmem>>, vector<1x8x32xbf16>
    %4 = vector.shape_cast %3 : vector<1x8x32xbf16> to vector<8x32xbf16>
    %5 = arith.extf %4 : vector<8x32xbf16> to vector<8x32xf32>
    %c0_3 = arith.constant 0 : index
    %c0_4 = arith.constant 0 : index
    %6 = vector.load %arg3[%c0_3, %c0_4] : memref<32x96xbf16, #tpu.memory_space<vmem>>, vector<32x96xbf16>
    %cst = arith.constant dense<0.000000e+00> : vector<8x96xf32>
    %7 = tpu.matmul %4, %6, %cst {dimension_numbers = #tpu.dot_dimension_numbers<[1], [0], [0], [1], [0, 0, 1, 1], [], []>} : vector<8x32xbf16>, vector<32x96xbf16>, vector<8x96xf32> -> vector<8x96xf32>
    %c0_5 = arith.constant 0 : index
    %c0_6 = arith.constant 0 : index
    %8 = vector.load %arg4[%c0_5, %c0_6] : memref<1x96xf32, #tpu.memory_space<vmem>>, vector<1x96xf32>
    %9 = vector.broadcast %8 : vector<1x96xf32> to vector<8x96xf32>
    %10 = arith.addf %7, %9 : vector<8x96xf32>
    %11 = vector.extract_strided_slice %10 {offsets = [0, 0], sizes = [8, 32], strides = [1, 1]} : vector<8x96xf32> to vector<8x32xf32>
    %12 = vector.extract_strided_slice %10 {offsets = [0, 32], sizes = [8, 32], strides = [1, 1]} : vector<8x96xf32> to vector<8x32xf32>
    %13 = vector.extract_strided_slice %10 {offsets = [0, 64], sizes = [8, 32], strides = [1, 1]} : vector<8x96xf32> to vector<8x32xf32>
    %cst_7 = arith.constant 0.000000e+00 : f32
    %14 = vector.broadcast %cst_7 : f32 to vector<8x32xf32>
    %15 = arith.cmpf ogt, %11, %14 : vector<8x32xf32>
    %cst_8 = arith.constant 1.000000e+00 : f32
    %16 = vector.broadcast %cst_8 : f32 to vector<8x32xf32>
    %17 = arith.addf %11, %16 : vector<8x32xf32>
    %18 = math.exp %11 : vector<8x32xf32>
    %19 = arith.select %15, %17, %18 : vector<8x32xi1>, vector<8x32xf32>
    %cst_9 = arith.constant 0.000000e+00 : f32
    %20 = vector.broadcast %cst_9 : f32 to vector<8x32xf32>
    %21 = arith.cmpf ogt, %12, %20 : vector<8x32xf32>
    %cst_10 = arith.constant 1.000000e+00 : f32
    %22 = vector.broadcast %cst_10 : f32 to vector<8x32xf32>
    %23 = arith.addf %12, %22 : vector<8x32xf32>
    %24 = math.exp %12 : vector<8x32xf32>
    %25 = arith.select %21, %23, %24 : vector<8x32xi1>, vector<8x32xf32>
    %26 = arith.truncf %19 : vector<8x32xf32> to vector<8x32xbf16>
    %27 = arith.truncf %25 : vector<8x32xf32> to vector<8x32xbf16>
    %28 = arith.truncf %13 : vector<8x32xf32> to vector<8x32xbf16>
    %29 = tpu.iota {dimensions = array<i32: 0>} : vector<8x8xi32>
    %30 = tpu.iota {dimensions = array<i32: 1>} : vector<8x8xi32>
    %31 = arith.cmpi sge, %30, %29 : vector<8x8xi32>
    %cst_11 = arith.constant 0.000000e+00 : f32
    %32 = vector.broadcast %cst_11 : f32 to vector<8x32xf32>
    %33 = vector.extract_strided_slice %26 {offsets = [0, 0], sizes = [8, 16], strides = [1, 1]} : vector<8x32xbf16> to vector<8x16xbf16>
    %34 = vector.extract_strided_slice %27 {offsets = [0, 0], sizes = [8, 16], strides = [1, 1]} : vector<8x32xbf16> to vector<8x16xbf16>
    %35 = vector.extract_strided_slice %28 {offsets = [0, 0], sizes = [8, 16], strides = [1, 1]} : vector<8x32xbf16> to vector<8x16xbf16>
    %c0_12 = arith.constant 0 : index
    %c0_13 = arith.constant 0 : index
    %c0_14 = arith.constant 0 : index
    %36 = vector.load %arg10[%c0_12, %c0_13, %c0_14] : memref<2x16x16xf32, #tpu.memory_space<vmem>>, vector<1x16x16xf32>
    %37 = vector.shape_cast %36 : vector<1x16x16xf32> to vector<16x16xf32>
    %c0_15 = arith.constant 0 : index
    %c0_16 = arith.constant 0 : index
    %c0_17 = arith.constant 0 : index
    %38 = vector.load %arg11[%c0_15, %c0_16, %c0_17] : memref<2x1x16xf32, #tpu.memory_space<vmem>>, vector<1x1x16xf32>
    %39 = vector.shape_cast %38 : vector<1x1x16xf32> to vector<1x16xf32>
    "tpu.trace_start"() <{level = 10 : i32, message = "qd,kd->qk"}> : () -> ()
    %cst_18 = arith.constant dense<0.000000e+00> : vector<8x8xf32>
    %40 = tpu.matmul %33, %34, %cst_18 {dimension_numbers = #tpu.dot_dimension_numbers<[1], [1], [0], [0], [0, 0, 1, 0], [], []>} : vector<8x16xbf16>, vector<8x16xbf16>, vector<8x8xf32> -> vector<8x8xf32>
    %cst_19 = arith.constant 0.000000e+00 : f32
    "tpu.trace_stop"() : () -> ()
    %41 = vector.broadcast %cst_19 : f32 to vector<8x8xf32>
    %42 = arith.select %31, %40, %41 : vector<8x8xi1>, vector<8x8xf32>
    %43 = arith.truncf %42 : vector<8x8xf32> to vector<8x8xbf16>
    "tpu.trace_start"() <{level = 10 : i32, message = "qk,kd->qd"}> : () -> ()
    %cst_20 = arith.constant dense<0.000000e+00> : vector<8x16xf32>
    %44 = tpu.matmul %43, %35, %cst_20 {dimension_numbers = #tpu.dot_dimension_numbers<[1], [0], [0], [1], [0, 0, 1, 1], [], []>} : vector<8x8xbf16>, vector<8x16xbf16>, vector<8x16xf32> -> vector<8x16xf32>
    "tpu.trace_stop"() : () -> ()
    %45 = arith.truncf %37 : vector<16x16xf32> to vector<16x16xbf16>
    "tpu.trace_start"() <{level = 10 : i32, message = "qd,de->qe"}> : () -> ()
    %cst_21 = arith.constant dense<0.000000e+00> : vector<8x16xf32>
    %46 = tpu.matmul %33, %45, %cst_21 {dimension_numbers = #tpu.dot_dimension_numbers<[1], [0], [0], [1], [0, 0, 1, 1], [], []>} : vector<8x16xbf16>, vector<16x16xbf16>, vector<8x16xf32> -> vector<8x16xf32>
    "tpu.trace_stop"() : () -> ()
    %47 = arith.addf %44, %46 : vector<8x16xf32>
    %cst_22 = arith.constant dense<0.000000e+00> : vector<8xf32>
    %48 = vector.multi_reduction <add>, %42, %cst_22 [1] : vector<8x8xf32> to vector<8xf32>
    %49 = vector.shape_cast %48 : vector<8xf32> to vector<8x1xf32>
    %50 = vector.extract_strided_slice %19 {offsets = [0, 0], sizes = [8, 16], strides = [1, 1]} : vector<8x32xf32> to vector<8x16xf32>
    %51 = vector.broadcast %39 : vector<1x16xf32> to vector<8x16xf32>
    %52 = arith.mulf %50, %51 : vector<8x16xf32>
    %cst_23 = arith.constant dense<0.000000e+00> : vector<8xf32>
    %53 = vector.multi_reduction <add>, %52, %cst_23 [1] : vector<8x16xf32> to vector<8xf32>
    %54 = vector.shape_cast %53 : vector<8xf32> to vector<8x1xf32>
    %55 = arith.addf %49, %54 : vector<8x1xf32>
    %cst_24 = arith.constant 9.99999997E-7 : f32
    %56 = vector.broadcast %cst_24 : f32 to vector<8x1xf32>
    %57 = arith.addf %55, %56 : vector<8x1xf32>
    %58 = vector.broadcast %57 : vector<8x1xf32> to vector<8x16xf32>
    %59 = arith.divf %47, %58 : vector<8x16xf32>
    %60 = arith.truncf %59 : vector<8x16xf32> to vector<8x16xbf16>
    %c0_25 = arith.constant 0 : index
    %c0_26 = arith.constant 0 : index
    %61 = vector.load %arg5[%c0_25, %c0_26] : memref<32x32xbf16, #tpu.memory_space<vmem>>, vector<16x32xbf16>
    %cst_27 = arith.constant dense<0.000000e+00> : vector<8x32xf32>
    %62 = tpu.matmul %60, %61, %cst_27 {dimension_numbers = #tpu.dot_dimension_numbers<[1], [0], [0], [1], [0, 0, 1, 1], [], []>} : vector<8x16xbf16>, vector<16x32xbf16>, vector<8x32xf32> -> vector<8x32xf32>
    %63 = arith.addf %32, %62 : vector<8x32xf32>
    "tpu.trace_start"() <{level = 10 : i32, message = "kd,ke->de"}> : () -> ()
    %cst_28 = arith.constant dense<0.000000e+00> : vector<16x16xf32>
    %64 = tpu.matmul %34, %35, %cst_28 {dimension_numbers = #tpu.dot_dimension_numbers<[0], [0], [1], [1], [0, 1, 1, 1], [], []>} : vector<8x16xbf16>, vector<8x16xbf16>, vector<16x16xf32> -> vector<16x16xf32>
    "tpu.trace_stop"() : () -> ()
    %65 = arith.addf %37, %64 : vector<16x16xf32>
    %c0_29 = arith.constant 0 : index
    %c0_30 = arith.constant 0 : index
    %c0_31 = arith.constant 0 : index
    %66 = vector.load %arg10[%c0_29, %c0_30, %c0_31] : memref<2x16x16xf32, #tpu.memory_space<vmem>>, vector<1x16x16xf32>
    %67 = vector.shape_cast %66 : vector<1x16x16xf32> to vector<16x16xf32>
    %68 = vector.shape_cast %65 : vector<16x16xf32> to vector<1x16x16xf32>
    tpu.vector_store %arg10[%c0_29, %c0_30, %c0_31], %68 {strides = array<i32>} : memref<2x16x16xf32, #tpu.memory_space<vmem>>, vector<1x16x16xf32>,
    %69 = vector.extract_strided_slice %25 {offsets = [0, 0], sizes = [8, 16], strides = [1, 1]} : vector<8x32xf32> to vector<8x16xf32>
    %cst_32 = arith.constant dense<0.000000e+00> : vector<16xf32>
    %70 = vector.multi_reduction <add>, %69, %cst_32 [0] : vector<8x16xf32> to vector<16xf32>
    %71 = vector.shape_cast %70 : vector<16xf32> to vector<1x16xf32>
    %72 = arith.addf %39, %71 : vector<1x16xf32>
    %c0_33 = arith.constant 0 : index
    %c0_34 = arith.constant 0 : index
    %c0_35 = arith.constant 0 : index
    %73 = vector.load %arg11[%c0_33, %c0_34, %c0_35] : memref<2x1x16xf32, #tpu.memory_space<vmem>>, vector<1x1x16xf32>
    %74 = vector.shape_cast %73 : vector<1x1x16xf32> to vector<1x16xf32>
    %75 = vector.shape_cast %72 : vector<1x16xf32> to vector<1x1x16xf32>
    tpu.vector_store %arg11[%c0_33, %c0_34, %c0_35], %75 {strides = array<i32>} : memref<2x1x16xf32, #tpu.memory_space<vmem>>, vector<1x1x16xf32>,
    %76 = vector.extract_strided_slice %26 {offsets = [0, 16], sizes = [8, 16], strides = [1, 1]} : vector<8x32xbf16> to vector<8x16xbf16>
    %77 = vector.extract_strided_slice %27 {offsets = [0, 16], sizes = [8, 16], strides = [1, 1]} : vector<8x32xbf16> to vector<8x16xbf16>
    %78 = vector.extract_strided_slice %28 {offsets = [0, 16], sizes = [8, 16], strides = [1, 1]} : vector<8x32xbf16> to vector<8x16xbf16>
    %c1 = arith.constant 1 : index
    %c0_36 = arith.constant 0 : index
    %c0_37 = arith.constant 0 : index
    %79 = vector.load %arg10[%c1, %c0_36, %c0_37] : memref<2x16x16xf32, #tpu.memory_space<vmem>>, vector<1x16x16xf32>
    %80 = vector.shape_cast %79 : vector<1x16x16xf32> to vector<16x16xf32>
    %c1_38 = arith.constant 1 : index
    %c0_39 = arith.constant 0 : index
    %c0_40 = arith.constant 0 : index
    %81 = vector.load %arg11[%c1_38, %c0_39, %c0_40] : memref<2x1x16xf32, #tpu.memory_space<vmem>>, vector<1x1x16xf32>
    %82 = vector.shape_cast %81 : vector<1x1x16xf32> to vector<1x16xf32>
    "tpu.trace_start"() <{level = 10 : i32, message = "qd,kd->qk"}> : () -> ()
    %cst_41 = arith.constant dense<0.000000e+00> : vector<8x8xf32>
    %83 = tpu.matmul %76, %77, %cst_41 {dimension_numbers = #tpu.dot_dimension_numbers<[1], [1], [0], [0], [0, 0, 1, 0], [], []>} : vector<8x16xbf16>, vector<8x16xbf16>, vector<8x8xf32> -> vector<8x8xf32>
    %cst_42 = arith.constant 0.000000e+00 : f32
    "tpu.trace_stop"() : () -> ()
    %84 = vector.broadcast %cst_42 : f32 to vector<8x8xf32>
    %85 = arith.select %31, %83, %84 : vector<8x8xi1>, vector<8x8xf32>
    %86 = arith.truncf %85 : vector<8x8xf32> to vector<8x8xbf16>
    "tpu.trace_start"() <{level = 10 : i32, message = "qk,kd->qd"}> : () -> ()
    %cst_43 = arith.constant dense<0.000000e+00> : vector<8x16xf32>
    %87 = tpu.matmul %86, %78, %cst_43 {dimension_numbers = #tpu.dot_dimension_numbers<[1], [0], [0], [1], [0, 0, 1, 1], [], []>} : vector<8x8xbf16>, vector<8x16xbf16>, vector<8x16xf32> -> vector<8x16xf32>
    "tpu.trace_stop"() : () -> ()
    %88 = arith.truncf %80 : vector<16x16xf32> to vector<16x16xbf16>
    "tpu.trace_start"() <{level = 10 : i32, message = "qd,de->qe"}> : () -> ()
    %cst_44 = arith.constant dense<0.000000e+00> : vector<8x16xf32>
    %89 = tpu.matmul %76, %88, %cst_44 {dimension_numbers = #tpu.dot_dimension_numbers<[1], [0], [0], [1], [0, 0, 1, 1], [], []>} : vector<8x16xbf16>, vector<16x16xbf16>, vector<8x16xf32> -> vector<8x16xf32>
    "tpu.trace_stop"() : () -> ()
    %90 = arith.addf %87, %89 : vector<8x16xf32>
    %cst_45 = arith.constant dense<0.000000e+00> : vector<8xf32>
    %91 = vector.multi_reduction <add>, %85, %cst_45 [1] : vector<8x8xf32> to vector<8xf32>
    %92 = vector.shape_cast %91 : vector<8xf32> to vector<8x1xf32>
    %93 = vector.extract_strided_slice %19 {offsets = [0, 16], sizes = [8, 16], strides = [1, 1]} : vector<8x32xf32> to vector<8x16xf32>
    %94 = vector.broadcast %82 : vector<1x16xf32> to vector<8x16xf32>
    %95 = arith.mulf %93, %94 : vector<8x16xf32>
    %cst_46 = arith.constant dense<0.000000e+00> : vector<8xf32>
    %96 = vector.multi_reduction <add>, %95, %cst_46 [1] : vector<8x16xf32> to vector<8xf32>
    %97 = vector.shape_cast %96 : vector<8xf32> to vector<8x1xf32>
    %98 = arith.addf %92, %97 : vector<8x1xf32>
    %cst_47 = arith.constant 9.99999997E-7 : f32
    %99 = vector.broadcast %cst_47 : f32 to vector<8x1xf32>
    %100 = arith.addf %98, %99 : vector<8x1xf32>
    %101 = vector.broadcast %100 : vector<8x1xf32> to vector<8x16xf32>
    %102 = arith.divf %90, %101 : vector<8x16xf32>
    %103 = arith.truncf %102 : vector<8x16xf32> to vector<8x16xbf16>
    %c16 = arith.constant 16 : index
    %c0_48 = arith.constant 0 : index
    %104 = vector.load %arg5[%c16, %c0_48] : memref<32x32xbf16, #tpu.memory_space<vmem>>, vector<16x32xbf16>
    %cst_49 = arith.constant dense<0.000000e+00> : vector<8x32xf32>
    %105 = tpu.matmul %103, %104, %cst_49 {dimension_numbers = #tpu.dot_dimension_numbers<[1], [0], [0], [1], [0, 0, 1, 1], [], []>} : vector<8x16xbf16>, vector<16x32xbf16>, vector<8x32xf32> -> vector<8x32xf32>
    %106 = arith.addf %63, %105 : vector<8x32xf32>
    "tpu.trace_start"() <{level = 10 : i32, message = "kd,ke->de"}> : () -> ()
    %cst_50 = arith.constant dense<0.000000e+00> : vector<16x16xf32>
    %107 = tpu.matmul %77, %78, %cst_50 {dimension_numbers = #tpu.dot_dimension_numbers<[0], [0], [1], [1], [0, 1, 1, 1], [], []>} : vector<8x16xbf16>, vector<8x16xbf16>, vector<16x16xf32> -> vector<16x16xf32>
    "tpu.trace_stop"() : () -> ()
    %108 = arith.addf %80, %107 : vector<16x16xf32>
    %c1_51 = arith.constant 1 : index
    %c0_52 = arith.constant 0 : index
    %c0_53 = arith.constant 0 : index
    %109 = vector.load %arg10[%c1_51, %c0_52, %c0_53] : memref<2x16x16xf32, #tpu.memory_space<vmem>>, vector<1x16x16xf32>
    %110 = vector.shape_cast %109 : vector<1x16x16xf32> to vector<16x16xf32>
    %111 = vector.shape_cast %108 : vector<16x16xf32> to vector<1x16x16xf32>
    tpu.vector_store %arg10[%c1_51, %c0_52, %c0_53], %111 {strides = array<i32>} : memref<2x16x16xf32, #tpu.memory_space<vmem>>, vector<1x16x16xf32>,
    %112 = vector.extract_strided_slice %25 {offsets = [0, 16], sizes = [8, 16], strides = [1, 1]} : vector<8x32xf32> to vector<8x16xf32>
    %cst_54 = arith.constant dense<0.000000e+00> : vector<16xf32>
    %113 = vector.multi_reduction <add>, %112, %cst_54 [0] : vector<8x16xf32> to vector<16xf32>
    %114 = vector.shape_cast %113 : vector<16xf32> to vector<1x16xf32>
    %115 = arith.addf %82, %114 : vector<1x16xf32>
    %c1_55 = arith.constant 1 : index
    %c0_56 = arith.constant 0 : index
    %c0_57 = arith.constant 0 : index
    %116 = vector.load %arg11[%c1_55, %c0_56, %c0_57] : memref<2x1x16xf32, #tpu.memory_space<vmem>>, vector<1x1x16xf32>
    %117 = vector.shape_cast %116 : vector<1x1x16xf32> to vector<1x16xf32>
    %118 = vector.shape_cast %115 : vector<1x16xf32> to vector<1x1x16xf32>
    tpu.vector_store %arg11[%c1_55, %c0_56, %c0_57], %118 {strides = array<i32>} : memref<2x1x16xf32, #tpu.memory_space<vmem>>, vector<1x1x16xf32>,
    %119 = arith.addf %5, %106 : vector<8x32xf32>
    %c0_58 = arith.constant 0 : index
    %c0_59 = arith.constant 0 : index
    %120 = vector.load %arg6[%c0_58, %c0_59] : memref<1x32xf32, #tpu.memory_space<vmem>>, vector<1x32xf32>
    %121 = vector.broadcast %120 : vector<1x32xf32> to vector<8x32xf32>
    %122 = arith.addf %119, %121 : vector<8x32xf32>
    %c0_60 = arith.constant 0 : index
    %c0_61 = arith.constant 0 : index
    %123 = vector.load %arg7[%c0_60, %c0_61] : memref<1x32xf32, #tpu.memory_space<vmem>>, vector<1x32xf32>
    %c0_62 = arith.constant 0 : index
    %c0_63 = arith.constant 0 : index
    %124 = vector.load %arg8[%c0_62, %c0_63] : memref<1x32xf32, #tpu.memory_space<vmem>>, vector<1x32xf32>
    %cst_64 = arith.constant dense<0.000000e+00> : vector<8xf32>
    %125 = vector.multi_reduction <add>, %122, %cst_64 [1] : vector<8x32xf32> to vector<8xf32>
    %126 = vector.shape_cast %125 : vector<8xf32> to vector<8x1xf32>
    %cst_65 = arith.constant 3.200000e+01 : f32
    %127 = vector.broadcast %cst_65 : f32 to vector<8x1xf32>
    %128 = arith.divf %126, %127 : vector<8x1xf32>
    %129 = vector.broadcast %128 : vector<8x1xf32> to vector<8x32xf32>
    %130 = arith.subf %122, %129 : vector<8x32xf32>
    %131 = arith.mulf %130, %130 : vector<8x32xf32>
    %cst_66 = arith.constant dense<0.000000e+00> : vector<8xf32>
    %132 = vector.multi_reduction <add>, %131, %cst_66 [1] : vector<8x32xf32> to vector<8xf32>
    %133 = vector.shape_cast %132 : vector<8xf32> to vector<8x1xf32>
    %cst_67 = arith.constant 3.200000e+01 : f32
    %134 = vector.broadcast %cst_67 : f32 to vector<8x1xf32>
    %135 = arith.divf %133, %134 : vector<8x1xf32>
    %136 = vector.broadcast %128 : vector<8x1xf32> to vector<8x32xf32>
    %137 = arith.subf %122, %136 : vector<8x32xf32>
    %cst_68 = arith.constant 9.99999974E-6 : f32
    %138 = vector.broadcast %cst_68 : f32 to vector<8x1xf32>
    %139 = arith.addf %135, %138 : vector<8x1xf32>
    %140 = math.rsqrt %139 : vector<8x1xf32>
    %141 = vector.broadcast %140 : vector<8x1xf32> to vector<8x32xf32>
    %142 = arith.mulf %137, %141 : vector<8x32xf32>
    %143 = vector.broadcast %123 : vector<1x32xf32> to vector<8x32xf32>
    %144 = arith.mulf %142, %143 : vector<8x32xf32>
    %145 = vector.broadcast %124 : vector<1x32xf32> to vector<8x32xf32>
    %146 = arith.addf %144, %145 : vector<8x32xf32>
    %147 = arith.truncf %146 : vector<8x32xf32> to vector<8x32xbf16>
    %c0_69 = arith.constant 0 : index
    %c0_70 = arith.constant 0 : index
    %c0_71 = arith.constant 0 : index
    %148 = vector.load %arg9[%c0_69, %c0_70, %c0_71] : memref<1x8x32xbf16, #tpu.memory_space<vmem>>, vector<1x8x32xbf16>
    %149 = vector.shape_cast %148 : vector<1x8x32xbf16> to vector<8x32xbf16>
    %150 = vector.shape_cast %147 : vector<8x32xbf16> to vector<1x8x32xbf16>
    tpu.vector_store %arg9[%c0_69, %c0_70, %c0_71], %150 {strides = array<i32>} : memref<1x8x32xbf16, #tpu.memory_space<vmem>>, vector<1x8x32xbf16>,
    return
  }
  func.func @transform_0(%arg0: i32, %arg1: i32) -> (i32, i32, i32) {
    %c0_i32 = arith.constant 0 : i32
    %0 = arith.subi %c0_i32, %arg1 : i32
    %c0_i32_0 = arith.constant 0 : i32
    %c0_i32_1 = arith.constant 0 : i32
    return %arg0, %0, %c0_i32_0 : i32, i32, i32
  }
  func.func @transform_1(%arg0: i32, %arg1: i32) -> (i32, i32) {
    %c0_i32 = arith.constant 0 : i32
    %c0_i32_0 = arith.constant 0 : i32
    %c0_i32_1 = arith.constant 0 : i32
    return %c0_i32, %c0_i32_0 : i32, i32
  }
  func.func @transform_2(%arg0: i32, %arg1: i32) -> (i32, i32) {
    %c0_i32 = arith.constant 0 : i32
    %c0_i32_0 = arith.constant 0 : i32
    %c0_i32_1 = arith.constant 0 : i32
    return %c0_i32, %c0_i32_0 : i32, i32
  }
  func.func @transform_3(%arg0: i32, %arg1: i32) -> (i32, i32) {
    %c0_i32 = arith.constant 0 : i32
    %c0_i32_0 = arith.constant 0 : i32
    %c0_i32_1 = arith.constant 0 : i32
    return %c0_i32, %c0_i32_0 : i32, i32
  }
  func.func @transform_4(%arg0: i32, %arg1: i32) -> (i32, i32) {
    %c0_i32 = arith.constant 0 : i32
    %c0_i32_0 = arith.constant 0 : i32
    %c0_i32_1 = arith.constant 0 : i32
    return %c0_i32, %c0_i32_0 : i32, i32
  }
  func.func @transform_5(%arg0: i32, %arg1: i32) -> (i32, i32) {
    %c0_i32 = arith.constant 0 : i32
    %c0_i32_0 = arith.constant 0 : i32
    %c0_i32_1 = arith.constant 0 : i32
    return %c0_i32, %c0_i32_0 : i32, i32
  }
  func.func @transform_6(%arg0: i32, %arg1: i32) -> (i32, i32) {
    %c0_i32 = arith.constant 0 : i32
    %c0_i32_0 = arith.constant 0 : i32
    %c0_i32_1 = arith.constant 0 : i32
    return %c0_i32, %c0_i32_0 : i32, i32
  }
  func.func @transform_7(%arg0: i32, %arg1: i32) -> (i32, i32, i32) {
    %c0_i32 = arith.constant 0 : i32
    %0 = arith.subi %c0_i32, %arg1 : i32
    %c0_i32_0 = arith.constant 0 : i32
    %c0_i32_1 = arith.constant 0 : i32
    return %arg0, %0, %c0_i32_0 : i32, i32, i32
  }
}

module attributes {stable_mosaic.version = 11 : i64} {
  func.func @_attn_block_kernel(%arg0: i32, %arg1: i32, %arg2: memref<1x8x32xbf16, #tpu.memory_space<vmem>>, %arg3: memref<32x96xbf16, #tpu.memory_space<vmem>>, %arg4: memref<1x96xf32, #tpu.memory_space<vmem>>, %arg5: memref<32x32xbf16, #tpu.memory_space<vmem>>, %arg6: memref<1x32xf32, #tpu.memory_space<vmem>>, %arg7: memref<1x32xf32, #tpu.memory_space<vmem>>, %arg8: memref<1x32xf32, #tpu.memory_space<vmem>>, %arg9: memref<1x8x32xbf16, #tpu.memory_space<vmem>>, %arg10: memref<2x16x16xf32, #tpu.memory_space<vmem>>, %arg11: memref<2x1x16xf32, #tpu.memory_space<vmem>>) attributes {dimension_semantics = [#tpu.dimension_semantics<parallel>, #tpu.dimension_semantics<arbitrary>], iteration_bounds = array<i64: 2, 1>, scalar_prefetch = 0 : i64, scratch_operands = 2 : i64, tpu.core_type = #tpu.core_type<tc>, window_params = [{transform_indices = @transform_0, window_bounds = array<i64: 1, 8, 32>}, {pipeline_mode = #tpu.pipeline_mode<synchronous>, transform_indices = @transform_1, window_bounds = array<i64: 32, 96>}, {pipeline_mode = #tpu.pipeline_mode<synchronous>, transform_indices = @transform_2, window_bounds = array<i64: 1, 96>}, {pipeline_mode = #tpu.pipeline_mode<synchronous>, transform_indices = @transform_3, window_bounds = array<i64: 32, 32>}, {pipeline_mode = #tpu.pipeline_mode<synchronous>, transform_indices = @transform_4, window_bounds = array<i64: 1, 32>}, {pipeline_mode = #tpu.pipeline_mode<synchronous>, transform_indices = @transform_5, window_bounds = array<i64: 1, 32>}, {pipeline_mode = #tpu.pipeline_mode<synchronous>, transform_indices = @transform_6, window_bounds = array<i64: 1, 32>}, {transform_indices = @transform_7, window_bounds = array<i64: 1, 8, 32>}]} {
    %c0_i32 = arith.constant 0 : i32
    %0 = arith.cmpi eq, %arg1, %c0_i32 : i32
    %1 = arith.extui %0 : i1 to i32
    %c0_i32_0 = arith.constant 0 : i32
    %2 = arith.cmpi ne, %1, %c0_i32_0 : i32
    scf.if %2 {
      %cst_72 = arith.constant 0.000000e+00 : f32
      %151 = vector.broadcast %cst_72 : f32 to vector<2x16x16xf32>
      %c0_73 = arith.constant 0 : index
      %c0_74 = arith.constant 0 : index
      %c0_75 = arith.constant 0 : index
      %152 = vector.load %arg10[%c0_73, %c0_74, %c0_75] : memref<2x16x16xf32, #tpu.memory_space<vmem>>, vector<2x16x16xf32>
      tpu.vector_store %arg10[%c0_73, %c0_74, %c0_75], %151 {strides = array<i32>} : memref<2x16x16xf32, #tpu.memory_space<vmem>>, vector<2x16x16xf32>,
      %cst_76 = arith.constant 0.000000e+00 : f32
      %153 = vector.broadcast %cst_76 : f32 to vector<2x1x16xf32>
      %c0_77 = arith.constant 0 : index
      %c0_78 = arith.constant 0 : index
      %c0_79 = arith.constant 0 : index
      %154 = vector.load %arg11[%c0_77, %c0_78, %c0_79] : memref<2x1x16xf32, #tpu.memory_space<vmem>>, vector<2x1x16xf32>
      tpu.vector_store %arg11[%c0_77, %c0_78, %c0_79], %153 {strides = array<i32>} : memref<2x1x16xf32, #tpu.memory_space<vmem>>, vector<2x1x16xf32>,
    } else {
    }
    %c0 = arith.constant 0 : index
    %c0_1 = arith.constant 0 : index
    %c0_2 = arith.constant 0 : index
    %3 = vector.load %arg2[%c0, %c0_1, %c0_2] : memref<1x8x32xbf16, #tpu.memory_space<vmem>>, vector<1x8x32xbf16>
    %4 = vector.shape_cast %3 : vector<1x8x32xbf16> to vector<8x32xbf16>
    %5 = arith.extf %4 : vector<8x32xbf16> to vector<8x32xf32>
    %c0_3 = arith.constant 0 : index
    %c0_4 = arith.constant 0 : index
    %6 = vector.load %arg3[%c0_3, %c0_4] : memref<32x96xbf16, #tpu.memory_space<vmem>>, vector<32x96xbf16>
    %cst = arith.constant dense<0.000000e+00> : vector<8x96xf32>
    %7 = tpu.matmul %4, %6, %cst {dimension_numbers = #tpu.dot_dimension_numbers<[1], [0], [0], [1], [0, 0, 1, 1], [], []>} : vector<8x32xbf16>, vector<32x96xbf16>, vector<8x96xf32> -> vector<8x96xf32>
    %c0_5 = arith.constant 0 : index
    %c0_6 = arith.constant 0 : index
    %8 = vector.load %arg4[%c0_5, %c0_6] : memref<1x96xf32, #tpu.memory_space<vmem>>, vector<1x96xf32>
    %9 = vector.broadcast %8 : vector<1x96xf32> to vector<8x96xf32>
    %10 = arith.addf %7, %9 : vector<8x96xf32>
    %11 = vector.extract_strided_slice %10 {offsets = [0, 0], sizes = [8, 32], strides = [1, 1]} : vector<8x96xf32> to vector<8x32xf32>
    %12 = vector.extract_strided_slice %10 {offsets = [0, 32], sizes = [8, 32], strides = [1, 1]} : vector<8x96xf32> to vector<8x32xf32>
    %13 = vector.extract_strided_slice %10 {offsets = [0, 64], sizes = [8, 32], strides = [1, 1]} : vector<8x96xf32> to vector<8x32xf32>
    %cst_7 = arith.constant 0.000000e+00 : f32
    %14 = vector.broadcast %cst_7 : f32 to vector<8x32xf32>
    %15 = arith.cmpf ogt, %11, %14 : vector<8x32xf32>
    %cst_8 = arith.constant 1.000000e+00 : f32
    %16 = vector.broadcast %cst_8 : f32 to vector<8x32xf32>
    %17 = arith.addf %11, %16 : vector<8x32xf32>
    %18 = math.exp %11 : vector<8x32xf32>
    %19 = arith.select %15, %17, %18 : vector<8x32xi1>, vector<8x32xf32>
    %cst_9 = arith.constant 0.000000e+00 : f32
    %20 = vector.broadcast %cst_9 : f32 to vector<8x32xf32>
    %21 = arith.cmpf ogt, %12, %20 : vector<8x32xf32>
    %cst_10 = arith.constant 1.000000e+00 : f32
    %22 = vector.broadcast %cst_10 : f32 to vector<8x32xf32>
    %23 = arith.addf %12, %22 : vector<8x32xf32>
    %24 = math.exp %12 : vector<8x32xf32>
    %25 = arith.select %21, %23, %24 : vector<8x32xi1>, vector<8x32xf32>
    %26 = arith.truncf %19 : vector<8x32xf32> to vector<8x32xbf16>
    %27 = arith.truncf %25 : vector<8x32xf32> to vector<8x32xbf16>
    %28 = arith.truncf %13 : vector<8x32xf32> to vector<8x32xbf16>
    %29 = tpu.iota {dimensions = array<i32: 0>} : vector<8x8xi32>
    %30 = tpu.iota {dimensions = array<i32: 1>} : vector<8x8xi32>
    %31 = arith.cmpi sle, %30, %29 : vector<8x8xi32>
    %cst_11 = arith.constant 0.000000e+00 : f32
    %32 = vector.broadcast %cst_11 : f32 to vector<8x32xf32>
    %33 = vector.extract_strided_slice %26 {offsets = [0, 0], sizes = [8, 16], strides = [1, 1]} : vector<8x32xbf16> to vector<8x16xbf16>
    %34 = vector.extract_strided_slice %27 {offsets = [0, 0], sizes = [8, 16], strides = [1, 1]} : vector<8x32xbf16> to vector<8x16xbf16>
    %35 = vector.extract_strided_slice %28 {offsets = [0, 0], sizes = [8, 16], strides = [1, 1]} : vector<8x32xbf16> to vector<8x16xbf16>
    %c0_12 = arith.constant 0 : index
    %c0_13 = arith.constant 0 : index
    %c0_14 = arith.constant 0 : index
    %36 = vector.load %arg10[%c0_12, %c0_13, %c0_14] : memref<2x16x16xf32, #tpu.memory_space<vmem>>, vector<1x16x16xf32>
    %37 = vector.shape_cast %36 : vector<1x16x16xf32> to vector<16x16xf32>
    %c0_15 = arith.constant 0 : index
    %c0_16 = arith.constant 0 : index
    %c0_17 = arith.constant 0 : index
    %38 = vector.load %arg11[%c0_15, %c0_16, %c0_17] : memref<2x1x16xf32, #tpu.memory_space<vmem>>, vector<1x1x16xf32>
    %39 = vector.shape_cast %38 : vector<1x1x16xf32> to vector<1x16xf32>
    "tpu.trace_start"() <{level = 10 : i32, message = "qd,kd->qk"}> : () -> ()
    %cst_18 = arith.constant dense<0.000000e+00> : vector<8x8xf32>
    %40 = tpu.matmul %33, %34, %cst_18 {dimension_numbers = #tpu.dot_dimension_numbers<[1], [1], [0], [0], [0, 0, 1, 0], [], []>} : vector<8x16xbf16>, vector<8x16xbf16>, vector<8x8xf32> -> vector<8x8xf32>
    %cst_19 = arith.constant 0.000000e+00 : f32
    "tpu.trace_stop"() : () -> ()
    %41 = vector.broadcast %cst_19 : f32 to vector<8x8xf32>
    %42 = arith.select %31, %40, %41 : vector<8x8xi1>, vector<8x8xf32>
    %43 = arith.truncf %42 : vector<8x8xf32> to vector<8x8xbf16>
    "tpu.trace_start"() <{level = 10 : i32, message = "qk,kd->qd"}> : () -> ()
    %cst_20 = arith.constant dense<0.000000e+00> : vector<8x16xf32>
    %44 = tpu.matmul %43, %35, %cst_20 {dimension_numbers = #tpu.dot_dimension_numbers<[1], [0], [0], [1], [0, 0, 1, 1], [], []>} : vector<8x8xbf16>, vector<8x16xbf16>, vector<8x16xf32> -> vector<8x16xf32>
    "tpu.trace_stop"() : () -> ()
    %45 = arith.truncf %37 : vector<16x16xf32> to vector<16x16xbf16>
    "tpu.trace_start"() <{level = 10 : i32, message = "qd,de->qe"}> : () -> ()
    %cst_21 = arith.constant dense<0.000000e+00> : vector<8x16xf32>
    %46 = tpu.matmul %33, %45, %cst_21 {dimension_numbers = #tpu.dot_dimension_numbers<[1], [0], [0], [1], [0, 0, 1, 1], [], []>} : vector<8x16xbf16>, vector<16x16xbf16>, vector<8x16xf32> -> vector<8x16xf32>
    "tpu.trace_stop"() : () -> ()
    %47 = arith.addf %44, %46 : vector<8x16xf32>
    %cst_22 = arith.constant dense<0.000000e+00> : vector<8xf32>
    %48 = vector.multi_reduction <add>, %42, %cst_22 [1] : vector<8x8xf32> to vector<8xf32>
    %49 = vector.shape_cast %48 : vector<8xf32> to vector<8x1xf32>
    %50 = vector.extract_strided_slice %19 {offsets = [0, 0], sizes = [8, 16], strides = [1, 1]} : vector<8x32xf32> to vector<8x16xf32>
    %51 = vector.broadcast %39 : vector<1x16xf32> to vector<8x16xf32>
    %52 = arith.mulf %50, %51 : vector<8x16xf32>
    %cst_23 = arith.constant dense<0.000000e+00> : vector<8xf32>
    %53 = vector.multi_reduction <add>, %52, %cst_23 [1] : vector<8x16xf32> to vector<8xf32>
    %54 = vector.shape_cast %53 : vector<8xf32> to vector<8x1xf32>
    %55 = arith.addf %49, %54 : vector<8x1xf32>
    %cst_24 = arith.constant 9.99999997E-7 : f32
    %56 = vector.broadcast %cst_24 : f32 to vector<8x1xf32>
    %57 = arith.addf %55, %56 : vector<8x1xf32>
    %58 = vector.broadcast %57 : vector<8x1xf32> to vector<8x16xf32>
    %59 = arith.divf %47, %58 : vector<8x16xf32>
    %60 = arith.truncf %59 : vector<8x16xf32> to vector<8x16xbf16>
    %c0_25 = arith.constant 0 : index
    %c0_26 = arith.constant 0 : index
    %61 = vector.load %arg5[%c0_25, %c0_26] : memref<32x32xbf16, #tpu.memory_space<vmem>>, vector<16x32xbf16>
    %cst_27 = arith.constant dense<0.000000e+00> : vector<8x32xf32>
    %62 = tpu.matmul %60, %61, %cst_27 {dimension_numbers = #tpu.dot_dimension_numbers<[1], [0], [0], [1], [0, 0, 1, 1], [], []>} : vector<8x16xbf16>, vector<16x32xbf16>, vector<8x32xf32> -> vector<8x32xf32>
    %63 = arith.addf %32, %62 : vector<8x32xf32>
    "tpu.trace_start"() <{level = 10 : i32, message = "kd,ke->de"}> : () -> ()
    %cst_28 = arith.constant dense<0.000000e+00> : vector<16x16xf32>
    %64 = tpu.matmul %34, %35, %cst_28 {dimension_numbers = #tpu.dot_dimension_numbers<[0], [0], [1], [1], [0, 1, 1, 1], [], []>} : vector<8x16xbf16>, vector<8x16xbf16>, vector<16x16xf32> -> vector<16x16xf32>
    "tpu.trace_stop"() : () -> ()
    %65 = arith.addf %37, %64 : vector<16x16xf32>
    %c0_29 = arith.constant 0 : index
    %c0_30 = arith.constant 0 : index
    %c0_31 = arith.constant 0 : index
    %66 = vector.load %arg10[%c0_29, %c0_30, %c0_31] : memref<2x16x16xf32, #tpu.memory_space<vmem>>, vector<1x16x16xf32>
    %67 = vector.shape_cast %66 : vector<1x16x16xf32> to vector<16x16xf32>
    %68 = vector.shape_cast %65 : vector<16x16xf32> to vector<1x16x16xf32>
    tpu.vector_store %arg10[%c0_29, %c0_30, %c0_31], %68 {strides = array<i32>} : memref<2x16x16xf32, #tpu.memory_space<vmem>>, vector<1x16x16xf32>,
    %69 = vector.extract_strided_slice %25 {offsets = [0, 0], sizes = [8, 16], strides = [1, 1]} : vector<8x32xf32> to vector<8x16xf32>
    %cst_32 = arith.constant dense<0.000000e+00> : vector<16xf32>
    %70 = vector.multi_reduction <add>, %69, %cst_32 [0] : vector<8x16xf32> to vector<16xf32>
    %71 = vector.shape_cast %70 : vector<16xf32> to vector<1x16xf32>
    %72 = arith.addf %39, %71 : vector<1x16xf32>
    %c0_33 = arith.constant 0 : index
    %c0_34 = arith.constant 0 : index
    %c0_35 = arith.constant 0 : index
    %73 = vector.load %arg11[%c0_33, %c0_34, %c0_35] : memref<2x1x16xf32, #tpu.memory_space<vmem>>, vector<1x1x16xf32>
    %74 = vector.shape_cast %73 : vector<1x1x16xf32> to vector<1x16xf32>
    %75 = vector.shape_cast %72 : vector<1x16xf32> to vector<1x1x16xf32>
    tpu.vector_store %arg11[%c0_33, %c0_34, %c0_35], %75 {strides = array<i32>} : memref<2x1x16xf32, #tpu.memory_space<vmem>>, vector<1x1x16xf32>,
    %76 = vector.extract_strided_slice %26 {offsets = [0, 16], sizes = [8, 16], strides = [1, 1]} : vector<8x32xbf16> to vector<8x16xbf16>
    %77 = vector.extract_strided_slice %27 {offsets = [0, 16], sizes = [8, 16], strides = [1, 1]} : vector<8x32xbf16> to vector<8x16xbf16>
    %78 = vector.extract_strided_slice %28 {offsets = [0, 16], sizes = [8, 16], strides = [1, 1]} : vector<8x32xbf16> to vector<8x16xbf16>
    %c1 = arith.constant 1 : index
    %c0_36 = arith.constant 0 : index
    %c0_37 = arith.constant 0 : index
    %79 = vector.load %arg10[%c1, %c0_36, %c0_37] : memref<2x16x16xf32, #tpu.memory_space<vmem>>, vector<1x16x16xf32>
    %80 = vector.shape_cast %79 : vector<1x16x16xf32> to vector<16x16xf32>
    %c1_38 = arith.constant 1 : index
    %c0_39 = arith.constant 0 : index
    %c0_40 = arith.constant 0 : index
    %81 = vector.load %arg11[%c1_38, %c0_39, %c0_40] : memref<2x1x16xf32, #tpu.memory_space<vmem>>, vector<1x1x16xf32>
    %82 = vector.shape_cast %81 : vector<1x1x16xf32> to vector<1x16xf32>
    "tpu.trace_start"() <{level = 10 : i32, message = "qd,kd->qk"}> : () -> ()
    %cst_41 = arith.constant dense<0.000000e+00> : vector<8x8xf32>
    %83 = tpu.matmul %76, %77, %cst_41 {dimension_numbers = #tpu.dot_dimension_numbers<[1], [1], [0], [0], [0, 0, 1, 0], [], []>} : vector<8x16xbf16>, vector<8x16xbf16>, vector<8x8xf32> -> vector<8x8xf32>
    %cst_42 = arith.constant 0.000000e+00 : f32
    "tpu.trace_stop"() : () -> ()
    %84 = vector.broadcast %cst_42 : f32 to vector<8x8xf32>
    %85 = arith.select %31, %83, %84 : vector<8x8xi1>, vector<8x8xf32>
    %86 = arith.truncf %85 : vector<8x8xf32> to vector<8x8xbf16>
    "tpu.trace_start"() <{level = 10 : i32, message = "qk,kd->qd"}> : () -> ()
    %cst_43 = arith.constant dense<0.000000e+00> : vector<8x16xf32>
    %87 = tpu.matmul %86, %78, %cst_43 {dimension_numbers = #tpu.dot_dimension_numbers<[1], [0], [0], [1], [0, 0, 1, 1], [], []>} : vector<8x8xbf16>, vector<8x16xbf16>, vector<8x16xf32> -> vector<8x16xf32>
    "tpu.trace_stop"() : () -> ()
    %88 = arith.truncf %80 : vector<16x16xf32> to vector<16x16xbf16>
    "tpu.trace_start"() <{level = 10 : i32, message = "qd,de->qe"}> : () -> ()
    %cst_44 = arith.constant dense<0.000000e+00> : vector<8x16xf32>
    %89 = tpu.matmul %76, %88, %cst_44 {dimension_numbers = #tpu.dot_dimension_numbers<[1], [0], [0], [1], [0, 0, 1, 1], [], []>} : vector<8x16xbf16>, vector<16x16xbf16>, vector<8x16xf32> -> vector<8x16xf32>
    "tpu.trace_stop"() : () -> ()
    %90 = arith.addf %87, %89 : vector<8x16xf32>
    %cst_45 = arith.constant dense<0.000000e+00> : vector<8xf32>
    %91 = vector.multi_reduction <add>, %85, %cst_45 [1] : vector<8x8xf32> to vector<8xf32>
    %92 = vector.shape_cast %91 : vector<8xf32> to vector<8x1xf32>
    %93 = vector.extract_strided_slice %19 {offsets = [0, 16], sizes = [8, 16], strides = [1, 1]} : vector<8x32xf32> to vector<8x16xf32>
    %94 = vector.broadcast %82 : vector<1x16xf32> to vector<8x16xf32>
    %95 = arith.mulf %93, %94 : vector<8x16xf32>
    %cst_46 = arith.constant dense<0.000000e+00> : vector<8xf32>
    %96 = vector.multi_reduction <add>, %95, %cst_46 [1] : vector<8x16xf32> to vector<8xf32>
    %97 = vector.shape_cast %96 : vector<8xf32> to vector<8x1xf32>
    %98 = arith.addf %92, %97 : vector<8x1xf32>
    %cst_47 = arith.constant 9.99999997E-7 : f32
    %99 = vector.broadcast %cst_47 : f32 to vector<8x1xf32>
    %100 = arith.addf %98, %99 : vector<8x1xf32>
    %101 = vector.broadcast %100 : vector<8x1xf32> to vector<8x16xf32>
    %102 = arith.divf %90, %101 : vector<8x16xf32>
    %103 = arith.truncf %102 : vector<8x16xf32> to vector<8x16xbf16>
    %c16 = arith.constant 16 : index
    %c0_48 = arith.constant 0 : index
    %104 = vector.load %arg5[%c16, %c0_48] : memref<32x32xbf16, #tpu.memory_space<vmem>>, vector<16x32xbf16>
    %cst_49 = arith.constant dense<0.000000e+00> : vector<8x32xf32>
    %105 = tpu.matmul %103, %104, %cst_49 {dimension_numbers = #tpu.dot_dimension_numbers<[1], [0], [0], [1], [0, 0, 1, 1], [], []>} : vector<8x16xbf16>, vector<16x32xbf16>, vector<8x32xf32> -> vector<8x32xf32>
    %106 = arith.addf %63, %105 : vector<8x32xf32>
    "tpu.trace_start"() <{level = 10 : i32, message = "kd,ke->de"}> : () -> ()
    %cst_50 = arith.constant dense<0.000000e+00> : vector<16x16xf32>
    %107 = tpu.matmul %77, %78, %cst_50 {dimension_numbers = #tpu.dot_dimension_numbers<[0], [0], [1], [1], [0, 1, 1, 1], [], []>} : vector<8x16xbf16>, vector<8x16xbf16>, vector<16x16xf32> -> vector<16x16xf32>
    "tpu.trace_stop"() : () -> ()
    %108 = arith.addf %80, %107 : vector<16x16xf32>
    %c1_51 = arith.constant 1 : index
    %c0_52 = arith.constant 0 : index
    %c0_53 = arith.constant 0 : index
    %109 = vector.load %arg10[%c1_51, %c0_52, %c0_53] : memref<2x16x16xf32, #tpu.memory_space<vmem>>, vector<1x16x16xf32>
    %110 = vector.shape_cast %109 : vector<1x16x16xf32> to vector<16x16xf32>
    %111 = vector.shape_cast %108 : vector<16x16xf32> to vector<1x16x16xf32>
    tpu.vector_store %arg10[%c1_51, %c0_52, %c0_53], %111 {strides = array<i32>} : memref<2x16x16xf32, #tpu.memory_space<vmem>>, vector<1x16x16xf32>,
    %112 = vector.extract_strided_slice %25 {offsets = [0, 16], sizes = [8, 16], strides = [1, 1]} : vector<8x32xf32> to vector<8x16xf32>
    %cst_54 = arith.constant dense<0.000000e+00> : vector<16xf32>
    %113 = vector.multi_reduction <add>, %112, %cst_54 [0] : vector<8x16xf32> to vector<16xf32>
    %114 = vector.shape_cast %113 : vector<16xf32> to vector<1x16xf32>
    %115 = arith.addf %82, %114 : vector<1x16xf32>
    %c1_55 = arith.constant 1 : index
    %c0_56 = arith.constant 0 : index
    %c0_57 = arith.constant 0 : index
    %116 = vector.load %arg11[%c1_55, %c0_56, %c0_57] : memref<2x1x16xf32, #tpu.memory_space<vmem>>, vector<1x1x16xf32>
    %117 = vector.shape_cast %116 : vector<1x1x16xf32> to vector<1x16xf32>
    %118 = vector.shape_cast %115 : vector<1x16xf32> to vector<1x1x16xf32>
    tpu.vector_store %arg11[%c1_55, %c0_56, %c0_57], %118 {strides = array<i32>} : memref<2x1x16xf32, #tpu.memory_space<vmem>>, vector<1x1x16xf32>,
    %119 = arith.addf %5, %106 : vector<8x32xf32>
    %c0_58 = arith.constant 0 : index
    %c0_59 = arith.constant 0 : index
    %120 = vector.load %arg6[%c0_58, %c0_59] : memref<1x32xf32, #tpu.memory_space<vmem>>, vector<1x32xf32>
    %121 = vector.broadcast %120 : vector<1x32xf32> to vector<8x32xf32>
    %122 = arith.addf %119, %121 : vector<8x32xf32>
    %c0_60 = arith.constant 0 : index
    %c0_61 = arith.constant 0 : index
    %123 = vector.load %arg7[%c0_60, %c0_61] : memref<1x32xf32, #tpu.memory_space<vmem>>, vector<1x32xf32>
    %c0_62 = arith.constant 0 : index
    %c0_63 = arith.constant 0 : index
    %124 = vector.load %arg8[%c0_62, %c0_63] : memref<1x32xf32, #tpu.memory_space<vmem>>, vector<1x32xf32>
    %cst_64 = arith.constant dense<0.000000e+00> : vector<8xf32>
    %125 = vector.multi_reduction <add>, %122, %cst_64 [1] : vector<8x32xf32> to vector<8xf32>
    %126 = vector.shape_cast %125 : vector<8xf32> to vector<8x1xf32>
    %cst_65 = arith.constant 3.200000e+01 : f32
    %127 = vector.broadcast %cst_65 : f32 to vector<8x1xf32>
    %128 = arith.divf %126, %127 : vector<8x1xf32>
    %129 = vector.broadcast %128 : vector<8x1xf32> to vector<8x32xf32>
    %130 = arith.subf %122, %129 : vector<8x32xf32>
    %131 = arith.mulf %130, %130 : vector<8x32xf32>
    %cst_66 = arith.constant dense<0.000000e+00> : vector<8xf32>
    %132 = vector.multi_reduction <add>, %131, %cst_66 [1] : vector<8x32xf32> to vector<8xf32>
    %133 = vector.shape_cast %132 : vector<8xf32> to vector<8x1xf32>
    %cst_67 = arith.constant 3.200000e+01 : f32
    %134 = vector.broadcast %cst_67 : f32 to vector<8x1xf32>
    %135 = arith.divf %133, %134 : vector<8x1xf32>
    %136 = vector.broadcast %128 : vector<8x1xf32> to vector<8x32xf32>
    %137 = arith.subf %122, %136 : vector<8x32xf32>
    %cst_68 = arith.constant 9.99999974E-6 : f32
    %138 = vector.broadcast %cst_68 : f32 to vector<8x1xf32>
    %139 = arith.addf %135, %138 : vector<8x1xf32>
    %140 = math.rsqrt %139 : vector<8x1xf32>
    %141 = vector.broadcast %140 : vector<8x1xf32> to vector<8x32xf32>
    %142 = arith.mulf %137, %141 : vector<8x32xf32>
    %143 = vector.broadcast %123 : vector<1x32xf32> to vector<8x32xf32>
    %144 = arith.mulf %142, %143 : vector<8x32xf32>
    %145 = vector.broadcast %124 : vector<1x32xf32> to vector<8x32xf32>
    %146 = arith.addf %144, %145 : vector<8x32xf32>
    %147 = arith.truncf %146 : vector<8x32xf32> to vector<8x32xbf16>
    %c0_69 = arith.constant 0 : index
    %c0_70 = arith.constant 0 : index
    %c0_71 = arith.constant 0 : index
    %148 = vector.load %arg9[%c0_69, %c0_70, %c0_71] : memref<1x8x32xbf16, #tpu.memory_space<vmem>>, vector<1x8x32xbf16>
    %149 = vector.shape_cast %148 : vector<1x8x32xbf16> to vector<8x32xbf16>
    %150 = vector.shape_cast %147 : vector<8x32xbf16> to vector<1x8x32xbf16>
    tpu.vector_store %arg9[%c0_69, %c0_70, %c0_71], %150 {strides = array<i32>} : memref<1x8x32xbf16, #tpu.memory_space<vmem>>, vector<1x8x32xbf16>,
    return
  }
  func.func @transform_0(%arg0: i32, %arg1: i32) -> (i32, i32, i32) {
    %c0_i32 = arith.constant 0 : i32
    %c0_i32_0 = arith.constant 0 : i32
    return %arg0, %arg1, %c0_i32 : i32, i32, i32
  }
  func.func @transform_1(%arg0: i32, %arg1: i32) -> (i32, i32) {
    %c0_i32 = arith.constant 0 : i32
    %c0_i32_0 = arith.constant 0 : i32
    %c0_i32_1 = arith.constant 0 : i32
    return %c0_i32, %c0_i32_0 : i32, i32
  }
  func.func @transform_2(%arg0: i32, %arg1: i32) -> (i32, i32) {
    %c0_i32 = arith.constant 0 : i32
    %c0_i32_0 = arith.constant 0 : i32
    %c0_i32_1 = arith.constant 0 : i32
    return %c0_i32, %c0_i32_0 : i32, i32
  }
  func.func @transform_3(%arg0: i32, %arg1: i32) -> (i32, i32) {
    %c0_i32 = arith.constant 0 : i32
    %c0_i32_0 = arith.constant 0 : i32
    %c0_i32_1 = arith.constant 0 : i32
    return %c0_i32, %c0_i32_0 : i32, i32
  }
  func.func @transform_4(%arg0: i32, %arg1: i32) -> (i32, i32) {
    %c0_i32 = arith.constant 0 : i32
    %c0_i32_0 = arith.constant 0 : i32
    %c0_i32_1 = arith.constant 0 : i32
    return %c0_i32, %c0_i32_0 : i32, i32
  }
  func.func @transform_5(%arg0: i32, %arg1: i32) -> (i32, i32) {
    %c0_i32 = arith.constant 0 : i32
    %c0_i32_0 = arith.constant 0 : i32
    %c0_i32_1 = arith.constant 0 : i32
    return %c0_i32, %c0_i32_0 : i32, i32
  }
  func.func @transform_6(%arg0: i32, %arg1: i32) -> (i32, i32) {
    %c0_i32 = arith.constant 0 : i32
    %c0_i32_0 = arith.constant 0 : i32
    %c0_i32_1 = arith.constant 0 : i32
    return %c0_i32, %c0_i32_0 : i32, i32
  }
  func.func @transform_7(%arg0: i32, %arg1: i32) -> (i32, i32, i32) {
    %c0_i32 = arith.constant 0 : i32
    %c0_i32_0 = arith.constant 0 : i32
    return %arg0, %arg1, %c0_i32 : i32, i32, i32
  }
}

module attributes {stable_mosaic.version = 11 : i64} {
  func.func @_ffn_block_kernel(%arg0: i32, %arg1: memref<16x32xbf16, #tpu.memory_space<vmem>>, %arg2: memref<32x64xbf16, #tpu.memory_space<vmem>>, %arg3: memref<1x64xf32, #tpu.memory_space<vmem>>, %arg4: memref<64x32xbf16, #tpu.memory_space<vmem>>, %arg5: memref<1x32xf32, #tpu.memory_space<vmem>>, %arg6: memref<1x32xf32, #tpu.memory_space<vmem>>, %arg7: memref<1x32xf32, #tpu.memory_space<vmem>>, %arg8: memref<16x32xbf16, #tpu.memory_space<vmem>>) attributes {dimension_semantics = [#tpu.dimension_semantics<parallel>], iteration_bounds = array<i64: 1>, scalar_prefetch = 0 : i64, scratch_operands = 0 : i64, tpu.core_type = #tpu.core_type<tc>, window_params = [{transform_indices = @transform_0, window_bounds = array<i64: 16, 32>}, {pipeline_mode = #tpu.pipeline_mode<synchronous>, transform_indices = @transform_1, window_bounds = array<i64: 32, 64>}, {pipeline_mode = #tpu.pipeline_mode<synchronous>, transform_indices = @transform_2, window_bounds = array<i64: 1, 64>}, {pipeline_mode = #tpu.pipeline_mode<synchronous>, transform_indices = @transform_3, window_bounds = array<i64: 64, 32>}, {pipeline_mode = #tpu.pipeline_mode<synchronous>, transform_indices = @transform_4, window_bounds = array<i64: 1, 32>}, {pipeline_mode = #tpu.pipeline_mode<synchronous>, transform_indices = @transform_5, window_bounds = array<i64: 1, 32>}, {pipeline_mode = #tpu.pipeline_mode<synchronous>, transform_indices = @transform_6, window_bounds = array<i64: 1, 32>}, {transform_indices = @transform_7, window_bounds = array<i64: 16, 32>}]} {
    %c0 = arith.constant 0 : index
    %c0_0 = arith.constant 0 : index
    %0 = vector.load %arg1[%c0, %c0_0] : memref<16x32xbf16, #tpu.memory_space<vmem>>, vector<16x32xbf16>
    %1 = arith.extf %0 : vector<16x32xbf16> to vector<16x32xf32>
    %c0_1 = arith.constant 0 : index
    %c0_2 = arith.constant 0 : index
    %2 = vector.load %arg2[%c0_1, %c0_2] : memref<32x64xbf16, #tpu.memory_space<vmem>>, vector<32x64xbf16>
    %cst = arith.constant dense<0.000000e+00> : vector<16x64xf32>
    %3 = tpu.matmul %0, %2, %cst {dimension_numbers = #tpu.dot_dimension_numbers<[1], [0], [0], [1], [0, 0, 1, 1], [], []>} : vector<16x32xbf16>, vector<32x64xbf16>, vector<16x64xf32> -> vector<16x64xf32>
    %c0_3 = arith.constant 0 : index
    %c0_4 = arith.constant 0 : index
    %4 = vector.load %arg3[%c0_3, %c0_4] : memref<1x64xf32, #tpu.memory_space<vmem>>, vector<1x64xf32>
    %5 = vector.broadcast %4 : vector<1x64xf32> to vector<16x64xf32>
    %6 = arith.addf %3, %5 : vector<16x64xf32>
    %cst_5 = arith.constant 0.000000e+00 : f32
    %7 = vector.broadcast %cst_5 : f32 to vector<16x64xf32>
    %8 = arith.maximumf %6, %7 : vector<16x64xf32>
    %9 = arith.truncf %8 : vector<16x64xf32> to vector<16x64xbf16>
    %c0_6 = arith.constant 0 : index
    %c0_7 = arith.constant 0 : index
    %10 = vector.load %arg4[%c0_6, %c0_7] : memref<64x32xbf16, #tpu.memory_space<vmem>>, vector<64x32xbf16>
    %cst_8 = arith.constant dense<0.000000e+00> : vector<16x32xf32>
    %11 = tpu.matmul %9, %10, %cst_8 {dimension_numbers = #tpu.dot_dimension_numbers<[1], [0], [0], [1], [0, 0, 1, 1], [], []>} : vector<16x64xbf16>, vector<64x32xbf16>, vector<16x32xf32> -> vector<16x32xf32>
    %c0_9 = arith.constant 0 : index
    %c0_10 = arith.constant 0 : index
    %12 = vector.load %arg5[%c0_9, %c0_10] : memref<1x32xf32, #tpu.memory_space<vmem>>, vector<1x32xf32>
    %13 = vector.broadcast %12 : vector<1x32xf32> to vector<16x32xf32>
    %14 = arith.addf %11, %13 : vector<16x32xf32>
    %15 = arith.addf %1, %14 : vector<16x32xf32>
    %c0_11 = arith.constant 0 : index
    %c0_12 = arith.constant 0 : index
    %16 = vector.load %arg6[%c0_11, %c0_12] : memref<1x32xf32, #tpu.memory_space<vmem>>, vector<1x32xf32>
    %c0_13 = arith.constant 0 : index
    %c0_14 = arith.constant 0 : index
    %17 = vector.load %arg7[%c0_13, %c0_14] : memref<1x32xf32, #tpu.memory_space<vmem>>, vector<1x32xf32>
    %cst_15 = arith.constant dense<0.000000e+00> : vector<16xf32>
    %18 = vector.multi_reduction <add>, %15, %cst_15 [1] : vector<16x32xf32> to vector<16xf32>
    %19 = vector.shape_cast %18 : vector<16xf32> to vector<16x1xf32>
    %cst_16 = arith.constant 3.200000e+01 : f32
    %20 = vector.broadcast %cst_16 : f32 to vector<16x1xf32>
    %21 = arith.divf %19, %20 : vector<16x1xf32>
    %22 = vector.broadcast %21 : vector<16x1xf32> to vector<16x32xf32>
    %23 = arith.subf %15, %22 : vector<16x32xf32>
    %24 = arith.mulf %23, %23 : vector<16x32xf32>
    %cst_17 = arith.constant dense<0.000000e+00> : vector<16xf32>
    %25 = vector.multi_reduction <add>, %24, %cst_17 [1] : vector<16x32xf32> to vector<16xf32>
    %26 = vector.shape_cast %25 : vector<16xf32> to vector<16x1xf32>
    %cst_18 = arith.constant 3.200000e+01 : f32
    %27 = vector.broadcast %cst_18 : f32 to vector<16x1xf32>
    %28 = arith.divf %26, %27 : vector<16x1xf32>
    %29 = vector.broadcast %21 : vector<16x1xf32> to vector<16x32xf32>
    %30 = arith.subf %15, %29 : vector<16x32xf32>
    %cst_19 = arith.constant 9.99999974E-6 : f32
    %31 = vector.broadcast %cst_19 : f32 to vector<16x1xf32>
    %32 = arith.addf %28, %31 : vector<16x1xf32>
    %33 = math.rsqrt %32 : vector<16x1xf32>
    %34 = vector.broadcast %33 : vector<16x1xf32> to vector<16x32xf32>
    %35 = arith.mulf %30, %34 : vector<16x32xf32>
    %36 = vector.broadcast %16 : vector<1x32xf32> to vector<16x32xf32>
    %37 = arith.mulf %35, %36 : vector<16x32xf32>
    %38 = vector.broadcast %17 : vector<1x32xf32> to vector<16x32xf32>
    %39 = arith.addf %37, %38 : vector<16x32xf32>
    %40 = arith.truncf %39 : vector<16x32xf32> to vector<16x32xbf16>
    %c0_20 = arith.constant 0 : index
    %c0_21 = arith.constant 0 : index
    %41 = vector.load %arg8[%c0_20, %c0_21] : memref<16x32xbf16, #tpu.memory_space<vmem>>, vector<16x32xbf16>
    tpu.vector_store %arg8[%c0_20, %c0_21], %40 {strides = array<i32>} : memref<16x32xbf16, #tpu.memory_space<vmem>>, vector<16x32xbf16>,
    return
  }
  func.func @transform_0(%arg0: i32) -> (i32, i32) {
    %c0_i32 = arith.constant 0 : i32
    %c0_i32_0 = arith.constant 0 : i32
    return %arg0, %c0_i32 : i32, i32
  }
  func.func @transform_1(%arg0: i32) -> (i32, i32) {
    %c0_i32 = arith.constant 0 : i32
    %c0_i32_0 = arith.constant 0 : i32
    %c0_i32_1 = arith.constant 0 : i32
    return %c0_i32, %c0_i32_0 : i32, i32
  }
  func.func @transform_2(%arg0: i32) -> (i32, i32) {
    %c0_i32 = arith.constant 0 : i32
    %c0_i32_0 = arith.constant 0 : i32
    %c0_i32_1 = arith.constant 0 : i32
    return %c0_i32, %c0_i32_0 : i32, i32
  }
  func.func @transform_3(%arg0: i32) -> (i32, i32) {
    %c0_i32 = arith.constant 0 : i32
    %c0_i32_0 = arith.constant 0 : i32
    %c0_i32_1 = arith.constant 0 : i32
    return %c0_i32, %c0_i32_0 : i32, i32
  }
  func.func @transform_4(%arg0: i32) -> (i32, i32) {
    %c0_i32 = arith.constant 0 : i32
    %c0_i32_0 = arith.constant 0 : i32
    %c0_i32_1 = arith.constant 0 : i32
    return %c0_i32, %c0_i32_0 : i32, i32
  }
  func.func @transform_5(%arg0: i32) -> (i32, i32) {
    %c0_i32 = arith.constant 0 : i32
    %c0_i32_0 = arith.constant 0 : i32
    %c0_i32_1 = arith.constant 0 : i32
    return %c0_i32, %c0_i32_0 : i32, i32
  }
  func.func @transform_6(%arg0: i32) -> (i32, i32) {
    %c0_i32 = arith.constant 0 : i32
    %c0_i32_0 = arith.constant 0 : i32
    %c0_i32_1 = arith.constant 0 : i32
    return %c0_i32, %c0_i32_0 : i32, i32
  }
  func.func @transform_7(%arg0: i32) -> (i32, i32) {
    %c0_i32 = arith.constant 0 : i32
    %c0_i32_0 = arith.constant 0 : i32
    return %arg0, %c0_i32 : i32, i32
  }
}

module attributes {stable_mosaic.version = 11 : i64} {
  func.func @_attn_block_kernel(%arg0: i32, %arg1: i32, %arg2: memref<1x8x32xbf16, #tpu.memory_space<vmem>>, %arg3: memref<32x96xbf16, #tpu.memory_space<vmem>>, %arg4: memref<1x96xf32, #tpu.memory_space<vmem>>, %arg5: memref<32x32xbf16, #tpu.memory_space<vmem>>, %arg6: memref<1x32xf32, #tpu.memory_space<vmem>>, %arg7: memref<1x32xf32, #tpu.memory_space<vmem>>, %arg8: memref<1x32xf32, #tpu.memory_space<vmem>>, %arg9: memref<1x8x32xbf16, #tpu.memory_space<vmem>>, %arg10: memref<2x16x16xf32, #tpu.memory_space<vmem>>, %arg11: memref<2x1x16xf32, #tpu.memory_space<vmem>>) attributes {dimension_semantics = [#tpu.dimension_semantics<parallel>, #tpu.dimension_semantics<arbitrary>], iteration_bounds = array<i64: 2, 1>, scalar_prefetch = 0 : i64, scratch_operands = 2 : i64, tpu.core_type = #tpu.core_type<tc>, window_params = [{transform_indices = @transform_0, window_bounds = array<i64: 1, 8, 32>}, {pipeline_mode = #tpu.pipeline_mode<synchronous>, transform_indices = @transform_1, window_bounds = array<i64: 32, 96>}, {pipeline_mode = #tpu.pipeline_mode<synchronous>, transform_indices = @transform_2, window_bounds = array<i64: 1, 96>}, {pipeline_mode = #tpu.pipeline_mode<synchronous>, transform_indices = @transform_3, window_bounds = array<i64: 32, 32>}, {pipeline_mode = #tpu.pipeline_mode<synchronous>, transform_indices = @transform_4, window_bounds = array<i64: 1, 32>}, {pipeline_mode = #tpu.pipeline_mode<synchronous>, transform_indices = @transform_5, window_bounds = array<i64: 1, 32>}, {pipeline_mode = #tpu.pipeline_mode<synchronous>, transform_indices = @transform_6, window_bounds = array<i64: 1, 32>}, {transform_indices = @transform_7, window_bounds = array<i64: 1, 8, 32>}]} {
    %c0_i32 = arith.constant 0 : i32
    %0 = arith.cmpi eq, %arg1, %c0_i32 : i32
    %1 = arith.extui %0 : i1 to i32
    %c0_i32_0 = arith.constant 0 : i32
    %2 = arith.cmpi ne, %1, %c0_i32_0 : i32
    scf.if %2 {
      %cst_72 = arith.constant 0.000000e+00 : f32
      %151 = vector.broadcast %cst_72 : f32 to vector<2x16x16xf32>
      %c0_73 = arith.constant 0 : index
      %c0_74 = arith.constant 0 : index
      %c0_75 = arith.constant 0 : index
      %152 = vector.load %arg10[%c0_73, %c0_74, %c0_75] : memref<2x16x16xf32, #tpu.memory_space<vmem>>, vector<2x16x16xf32>
      tpu.vector_store %arg10[%c0_73, %c0_74, %c0_75], %151 {strides = array<i32>} : memref<2x16x16xf32, #tpu.memory_space<vmem>>, vector<2x16x16xf32>,
      %cst_76 = arith.constant 0.000000e+00 : f32
      %153 = vector.broadcast %cst_76 : f32 to vector<2x1x16xf32>
      %c0_77 = arith.constant 0 : index
      %c0_78 = arith.constant 0 : index
      %c0_79 = arith.constant 0 : index
      %154 = vector.load %arg11[%c0_77, %c0_78, %c0_79] : memref<2x1x16xf32, #tpu.memory_space<vmem>>, vector<2x1x16xf32>
      tpu.vector_store %arg11[%c0_77, %c0_78, %c0_79], %153 {strides = array<i32>} : memref<2x1x16xf32, #tpu.memory_space<vmem>>, vector<2x1x16xf32>,
    } else {
    }
    %c0 = arith.constant 0 : index
    %c0_1 = arith.constant 0 : index
    %c0_2 = arith.constant 0 : index
    %3 = vector.load %arg2[%c0, %c0_1, %c0_2] : memref<1x8x32xbf16, #tpu.memory_space<vmem>>, vector<1x8x32xbf16>
    %4 = vector.shape_cast %3 : vector<1x8x32xbf16> to vector<8x32xbf16>
    %5 = arith.extf %4 : vector<8x32xbf16> to vector<8x32xf32>
    %c0_3 = arith.constant 0 : index
    %c0_4 = arith.constant 0 : index
    %6 = vector.load %arg3[%c0_3, %c0_4] : memref<32x96xbf16, #tpu.memory_space<vmem>>, vector<32x96xbf16>
    %cst = arith.constant dense<0.000000e+00> : vector<8x96xf32>
    %7 = tpu.matmul %4, %6, %cst {dimension_numbers = #tpu.dot_dimension_numbers<[1], [0], [0], [1], [0, 0, 1, 1], [], []>} : vector<8x32xbf16>, vector<32x96xbf16>, vector<8x96xf32> -> vector<8x96xf32>
    %c0_5 = arith.constant 0 : index
    %c0_6 = arith.constant 0 : index
    %8 = vector.load %arg4[%c0_5, %c0_6] : memref<1x96xf32, #tpu.memory_space<vmem>>, vector<1x96xf32>
    %9 = vector.broadcast %8 : vector<1x96xf32> to vector<8x96xf32>
    %10 = arith.addf %7, %9 : vector<8x96xf32>
    %11 = vector.extract_strided_slice %10 {offsets = [0, 0], sizes = [8, 32], strides = [1, 1]} : vector<8x96xf32> to vector<8x32xf32>
    %12 = vector.extract_strided_slice %10 {offsets = [0, 32], sizes = [8, 32], strides = [1, 1]} : vector<8x96xf32> to vector<8x32xf32>
    %13 = vector.extract_strided_slice %10 {offsets = [0, 64], sizes = [8, 32], strides = [1, 1]} : vector<8x96xf32> to vector<8x32xf32>
    %cst_7 = arith.constant 0.000000e+00 : f32
    %14 = vector.broadcast %cst_7 : f32 to vector<8x32xf32>
    %15 = arith.cmpf ogt, %11, %14 : vector<8x32xf32>
    %cst_8 = arith.constant 1.000000e+00 : f32
    %16 = vector.broadcast %cst_8 : f32 to vector<8x32xf32>
    %17 = arith.addf %11, %16 : vector<8x32xf32>
    %18 = math.exp %11 : vector<8x32xf32>
    %19 = arith.select %15, %17, %18 : vector<8x32xi1>, vector<8x32xf32>
    %cst_9 = arith.constant 0.000000e+00 : f32
    %20 = vector.broadcast %cst_9 : f32 to vector<8x32xf32>
    %21 = arith.cmpf ogt, %12, %20 : vector<8x32xf32>
    %cst_10 = arith.constant 1.000000e+00 : f32
    %22 = vector.broadcast %cst_10 : f32 to vector<8x32xf32>
    %23 = arith.addf %12, %22 : vector<8x32xf32>
    %24 = math.exp %12 : vector<8x32xf32>
    %25 = arith.select %21, %23, %24 : vector<8x32xi1>, vector<8x32xf32>
    %26 = arith.truncf %19 : vector<8x32xf32> to vector<8x32xbf16>
    %27 = arith.truncf %25 : vector<8x32xf32> to vector<8x32xbf16>
    %28 = arith.truncf %13 : vector<8x32xf32> to vector<8x32xbf16>
    %29 = tpu.iota {dimensions = array<i32: 0>} : vector<8x8xi32>
    %30 = tpu.iota {dimensions = array<i32: 1>} : vector<8x8xi32>
    %31 = arith.cmpi sle, %30, %29 : vector<8x8xi32>
    %cst_11 = arith.constant 0.000000e+00 : f32
    %32 = vector.broadcast %cst_11 : f32 to vector<8x32xf32>
    %33 = vector.extract_strided_slice %26 {offsets = [0, 0], sizes = [8, 16], strides = [1, 1]} : vector<8x32xbf16> to vector<8x16xbf16>
    %34 = vector.extract_strided_slice %27 {offsets = [0, 0], sizes = [8, 16], strides = [1, 1]} : vector<8x32xbf16> to vector<8x16xbf16>
    %35 = vector.extract_strided_slice %28 {offsets = [0, 0], sizes = [8, 16], strides = [1, 1]} : vector<8x32xbf16> to vector<8x16xbf16>
    %c0_12 = arith.constant 0 : index
    %c0_13 = arith.constant 0 : index
    %c0_14 = arith.constant 0 : index
    %36 = vector.load %arg10[%c0_12, %c0_13, %c0_14] : memref<2x16x16xf32, #tpu.memory_space<vmem>>, vector<1x16x16xf32>
    %37 = vector.shape_cast %36 : vector<1x16x16xf32> to vector<16x16xf32>
    %c0_15 = arith.constant 0 : index
    %c0_16 = arith.constant 0 : index
    %c0_17 = arith.constant 0 : index
    %38 = vector.load %arg11[%c0_15, %c0_16, %c0_17] : memref<2x1x16xf32, #tpu.memory_space<vmem>>, vector<1x1x16xf32>
    %39 = vector.shape_cast %38 : vector<1x1x16xf32> to vector<1x16xf32>
    "tpu.trace_start"() <{level = 10 : i32, message = "qd,kd->qk"}> : () -> ()
    %cst_18 = arith.constant dense<0.000000e+00> : vector<8x8xf32>
    %40 = tpu.matmul %33, %34, %cst_18 {dimension_numbers = #tpu.dot_dimension_numbers<[1], [1], [0], [0], [0, 0, 1, 0], [], []>} : vector<8x16xbf16>, vector<8x16xbf16>, vector<8x8xf32> -> vector<8x8xf32>
    %cst_19 = arith.constant 0.000000e+00 : f32
    "tpu.trace_stop"() : () -> ()
    %41 = vector.broadcast %cst_19 : f32 to vector<8x8xf32>
    %42 = arith.select %31, %40, %41 : vector<8x8xi1>, vector<8x8xf32>
    %43 = arith.truncf %42 : vector<8x8xf32> to vector<8x8xbf16>
    "tpu.trace_start"() <{level = 10 : i32, message = "qk,kd->qd"}> : () -> ()
    %cst_20 = arith.constant dense<0.000000e+00> : vector<8x16xf32>
    %44 = tpu.matmul %43, %35, %cst_20 {dimension_numbers = #tpu.dot_dimension_numbers<[1], [0], [0], [1], [0, 0, 1, 1], [], []>} : vector<8x8xbf16>, vector<8x16xbf16>, vector<8x16xf32> -> vector<8x16xf32>
    "tpu.trace_stop"() : () -> ()
    %45 = arith.truncf %37 : vector<16x16xf32> to vector<16x16xbf16>
    "tpu.trace_start"() <{level = 10 : i32, message = "qd,de->qe"}> : () -> ()
    %cst_21 = arith.constant dense<0.000000e+00> : vector<8x16xf32>
    %46 = tpu.matmul %33, %45, %cst_21 {dimension_numbers = #tpu.dot_dimension_numbers<[1], [0], [0], [1], [0, 0, 1, 1], [], []>} : vector<8x16xbf16>, vector<16x16xbf16>, vector<8x16xf32> -> vector<8x16xf32>
    "tpu.trace_stop"() : () -> ()
    %47 = arith.addf %44, %46 : vector<8x16xf32>
    %cst_22 = arith.constant dense<0.000000e+00> : vector<8xf32>
    %48 = vector.multi_reduction <add>, %42, %cst_22 [1] : vector<8x8xf32> to vector<8xf32>
    %49 = vector.shape_cast %48 : vector<8xf32> to vector<8x1xf32>
    %50 = vector.extract_strided_slice %19 {offsets = [0, 0], sizes = [8, 16], strides = [1, 1]} : vector<8x32xf32> to vector<8x16xf32>
    %51 = vector.broadcast %39 : vector<1x16xf32> to vector<8x16xf32>
    %52 = arith.mulf %50, %51 : vector<8x16xf32>
    %cst_23 = arith.constant dense<0.000000e+00> : vector<8xf32>
    %53 = vector.multi_reduction <add>, %52, %cst_23 [1] : vector<8x16xf32> to vector<8xf32>
    %54 = vector.shape_cast %53 : vector<8xf32> to vector<8x1xf32>
    %55 = arith.addf %49, %54 : vector<8x1xf32>
    %cst_24 = arith.constant 9.99999997E-7 : f32
    %56 = vector.broadcast %cst_24 : f32 to vector<8x1xf32>
    %57 = arith.addf %55, %56 : vector<8x1xf32>
    %58 = vector.broadcast %57 : vector<8x1xf32> to vector<8x16xf32>
    %59 = arith.divf %47, %58 : vector<8x16xf32>
    %60 = arith.truncf %59 : vector<8x16xf32> to vector<8x16xbf16>
    %c0_25 = arith.constant 0 : index
    %c0_26 = arith.constant 0 : index
    %61 = vector.load %arg5[%c0_25, %c0_26] : memref<32x32xbf16, #tpu.memory_space<vmem>>, vector<16x32xbf16>
    %cst_27 = arith.constant dense<0.000000e+00> : vector<8x32xf32>
    %62 = tpu.matmul %60, %61, %cst_27 {dimension_numbers = #tpu.dot_dimension_numbers<[1], [0], [0], [1], [0, 0, 1, 1], [], []>} : vector<8x16xbf16>, vector<16x32xbf16>, vector<8x32xf32> -> vector<8x32xf32>
    %63 = arith.addf %32, %62 : vector<8x32xf32>
    "tpu.trace_start"() <{level = 10 : i32, message = "kd,ke->de"}> : () -> ()
    %cst_28 = arith.constant dense<0.000000e+00> : vector<16x16xf32>
    %64 = tpu.matmul %34, %35, %cst_28 {dimension_numbers = #tpu.dot_dimension_numbers<[0], [0], [1], [1], [0, 1, 1, 1], [], []>} : vector<8x16xbf16>, vector<8x16xbf16>, vector<16x16xf32> -> vector<16x16xf32>
    "tpu.trace_stop"() : () -> ()
    %65 = arith.addf %37, %64 : vector<16x16xf32>
    %c0_29 = arith.constant 0 : index
    %c0_30 = arith.constant 0 : index
    %c0_31 = arith.constant 0 : index
    %66 = vector.load %arg10[%c0_29, %c0_30, %c0_31] : memref<2x16x16xf32, #tpu.memory_space<vmem>>, vector<1x16x16xf32>
    %67 = vector.shape_cast %66 : vector<1x16x16xf32> to vector<16x16xf32>
    %68 = vector.shape_cast %65 : vector<16x16xf32> to vector<1x16x16xf32>
    tpu.vector_store %arg10[%c0_29, %c0_30, %c0_31], %68 {strides = array<i32>} : memref<2x16x16xf32, #tpu.memory_space<vmem>>, vector<1x16x16xf32>,
    %69 = vector.extract_strided_slice %25 {offsets = [0, 0], sizes = [8, 16], strides = [1, 1]} : vector<8x32xf32> to vector<8x16xf32>
    %cst_32 = arith.constant dense<0.000000e+00> : vector<16xf32>
    %70 = vector.multi_reduction <add>, %69, %cst_32 [0] : vector<8x16xf32> to vector<16xf32>
    %71 = vector.shape_cast %70 : vector<16xf32> to vector<1x16xf32>
    %72 = arith.addf %39, %71 : vector<1x16xf32>
    %c0_33 = arith.constant 0 : index
    %c0_34 = arith.constant 0 : index
    %c0_35 = arith.constant 0 : index
    %73 = vector.load %arg11[%c0_33, %c0_34, %c0_35] : memref<2x1x16xf32, #tpu.memory_space<vmem>>, vector<1x1x16xf32>
    %74 = vector.shape_cast %73 : vector<1x1x16xf32> to vector<1x16xf32>
    %75 = vector.shape_cast %72 : vector<1x16xf32> to vector<1x1x16xf32>
    tpu.vector_store %arg11[%c0_33, %c0_34, %c0_35], %75 {strides = array<i32>} : memref<2x1x16xf32, #tpu.memory_space<vmem>>, vector<1x1x16xf32>,
    %76 = vector.extract_strided_slice %26 {offsets = [0, 16], sizes = [8, 16], strides = [1, 1]} : vector<8x32xbf16> to vector<8x16xbf16>
    %77 = vector.extract_strided_slice %27 {offsets = [0, 16], sizes = [8, 16], strides = [1, 1]} : vector<8x32xbf16> to vector<8x16xbf16>
    %78 = vector.extract_strided_slice %28 {offsets = [0, 16], sizes = [8, 16], strides = [1, 1]} : vector<8x32xbf16> to vector<8x16xbf16>
    %c1 = arith.constant 1 : index
    %c0_36 = arith.constant 0 : index
    %c0_37 = arith.constant 0 : index
    %79 = vector.load %arg10[%c1, %c0_36, %c0_37] : memref<2x16x16xf32, #tpu.memory_space<vmem>>, vector<1x16x16xf32>
    %80 = vector.shape_cast %79 : vector<1x16x16xf32> to vector<16x16xf32>
    %c1_38 = arith.constant 1 : index
    %c0_39 = arith.constant 0 : index
    %c0_40 = arith.constant 0 : index
    %81 = vector.load %arg11[%c1_38, %c0_39, %c0_40] : memref<2x1x16xf32, #tpu.memory_space<vmem>>, vector<1x1x16xf32>
    %82 = vector.shape_cast %81 : vector<1x1x16xf32> to vector<1x16xf32>
    "tpu.trace_start"() <{level = 10 : i32, message = "qd,kd->qk"}> : () -> ()
    %cst_41 = arith.constant dense<0.000000e+00> : vector<8x8xf32>
    %83 = tpu.matmul %76, %77, %cst_41 {dimension_numbers = #tpu.dot_dimension_numbers<[1], [1], [0], [0], [0, 0, 1, 0], [], []>} : vector<8x16xbf16>, vector<8x16xbf16>, vector<8x8xf32> -> vector<8x8xf32>
    %cst_42 = arith.constant 0.000000e+00 : f32
    "tpu.trace_stop"() : () -> ()
    %84 = vector.broadcast %cst_42 : f32 to vector<8x8xf32>
    %85 = arith.select %31, %83, %84 : vector<8x8xi1>, vector<8x8xf32>
    %86 = arith.truncf %85 : vector<8x8xf32> to vector<8x8xbf16>
    "tpu.trace_start"() <{level = 10 : i32, message = "qk,kd->qd"}> : () -> ()
    %cst_43 = arith.constant dense<0.000000e+00> : vector<8x16xf32>
    %87 = tpu.matmul %86, %78, %cst_43 {dimension_numbers = #tpu.dot_dimension_numbers<[1], [0], [0], [1], [0, 0, 1, 1], [], []>} : vector<8x8xbf16>, vector<8x16xbf16>, vector<8x16xf32> -> vector<8x16xf32>
    "tpu.trace_stop"() : () -> ()
    %88 = arith.truncf %80 : vector<16x16xf32> to vector<16x16xbf16>
    "tpu.trace_start"() <{level = 10 : i32, message = "qd,de->qe"}> : () -> ()
    %cst_44 = arith.constant dense<0.000000e+00> : vector<8x16xf32>
    %89 = tpu.matmul %76, %88, %cst_44 {dimension_numbers = #tpu.dot_dimension_numbers<[1], [0], [0], [1], [0, 0, 1, 1], [], []>} : vector<8x16xbf16>, vector<16x16xbf16>, vector<8x16xf32> -> vector<8x16xf32>
    "tpu.trace_stop"() : () -> ()
    %90 = arith.addf %87, %89 : vector<8x16xf32>
    %cst_45 = arith.constant dense<0.000000e+00> : vector<8xf32>
    %91 = vector.multi_reduction <add>, %85, %cst_45 [1] : vector<8x8xf32> to vector<8xf32>
    %92 = vector.shape_cast %91 : vector<8xf32> to vector<8x1xf32>
    %93 = vector.extract_strided_slice %19 {offsets = [0, 16], sizes = [8, 16], strides = [1, 1]} : vector<8x32xf32> to vector<8x16xf32>
    %94 = vector.broadcast %82 : vector<1x16xf32> to vector<8x16xf32>
    %95 = arith.mulf %93, %94 : vector<8x16xf32>
    %cst_46 = arith.constant dense<0.000000e+00> : vector<8xf32>
    %96 = vector.multi_reduction <add>, %95, %cst_46 [1] : vector<8x16xf32> to vector<8xf32>
    %97 = vector.shape_cast %96 : vector<8xf32> to vector<8x1xf32>
    %98 = arith.addf %92, %97 : vector<8x1xf32>
    %cst_47 = arith.constant 9.99999997E-7 : f32
    %99 = vector.broadcast %cst_47 : f32 to vector<8x1xf32>
    %100 = arith.addf %98, %99 : vector<8x1xf32>
    %101 = vector.broadcast %100 : vector<8x1xf32> to vector<8x16xf32>
    %102 = arith.divf %90, %101 : vector<8x16xf32>
    %103 = arith.truncf %102 : vector<8x16xf32> to vector<8x16xbf16>
    %c16 = arith.constant 16 : index
    %c0_48 = arith.constant 0 : index
    %104 = vector.load %arg5[%c16, %c0_48] : memref<32x32xbf16, #tpu.memory_space<vmem>>, vector<16x32xbf16>
    %cst_49 = arith.constant dense<0.000000e+00> : vector<8x32xf32>
    %105 = tpu.matmul %103, %104, %cst_49 {dimension_numbers = #tpu.dot_dimension_numbers<[1], [0], [0], [1], [0, 0, 1, 1], [], []>} : vector<8x16xbf16>, vector<16x32xbf16>, vector<8x32xf32> -> vector<8x32xf32>
    %106 = arith.addf %63, %105 : vector<8x32xf32>
    "tpu.trace_start"() <{level = 10 : i32, message = "kd,ke->de"}> : () -> ()
    %cst_50 = arith.constant dense<0.000000e+00> : vector<16x16xf32>
    %107 = tpu.matmul %77, %78, %cst_50 {dimension_numbers = #tpu.dot_dimension_numbers<[0], [0], [1], [1], [0, 1, 1, 1], [], []>} : vector<8x16xbf16>, vector<8x16xbf16>, vector<16x16xf32> -> vector<16x16xf32>
    "tpu.trace_stop"() : () -> ()
    %108 = arith.addf %80, %107 : vector<16x16xf32>
    %c1_51 = arith.constant 1 : index
    %c0_52 = arith.constant 0 : index
    %c0_53 = arith.constant 0 : index
    %109 = vector.load %arg10[%c1_51, %c0_52, %c0_53] : memref<2x16x16xf32, #tpu.memory_space<vmem>>, vector<1x16x16xf32>
    %110 = vector.shape_cast %109 : vector<1x16x16xf32> to vector<16x16xf32>
    %111 = vector.shape_cast %108 : vector<16x16xf32> to vector<1x16x16xf32>
    tpu.vector_store %arg10[%c1_51, %c0_52, %c0_53], %111 {strides = array<i32>} : memref<2x16x16xf32, #tpu.memory_space<vmem>>, vector<1x16x16xf32>,
    %112 = vector.extract_strided_slice %25 {offsets = [0, 16], sizes = [8, 16], strides = [1, 1]} : vector<8x32xf32> to vector<8x16xf32>
    %cst_54 = arith.constant dense<0.000000e+00> : vector<16xf32>
    %113 = vector.multi_reduction <add>, %112, %cst_54 [0] : vector<8x16xf32> to vector<16xf32>
    %114 = vector.shape_cast %113 : vector<16xf32> to vector<1x16xf32>
    %115 = arith.addf %82, %114 : vector<1x16xf32>
    %c1_55 = arith.constant 1 : index
    %c0_56 = arith.constant 0 : index
    %c0_57 = arith.constant 0 : index
    %116 = vector.load %arg11[%c1_55, %c0_56, %c0_57] : memref<2x1x16xf32, #tpu.memory_space<vmem>>, vector<1x1x16xf32>
    %117 = vector.shape_cast %116 : vector<1x1x16xf32> to vector<1x16xf32>
    %118 = vector.shape_cast %115 : vector<1x16xf32> to vector<1x1x16xf32>
    tpu.vector_store %arg11[%c1_55, %c0_56, %c0_57], %118 {strides = array<i32>} : memref<2x1x16xf32, #tpu.memory_space<vmem>>, vector<1x1x16xf32>,
    %119 = arith.addf %5, %106 : vector<8x32xf32>
    %c0_58 = arith.constant 0 : index
    %c0_59 = arith.constant 0 : index
    %120 = vector.load %arg6[%c0_58, %c0_59] : memref<1x32xf32, #tpu.memory_space<vmem>>, vector<1x32xf32>
    %121 = vector.broadcast %120 : vector<1x32xf32> to vector<8x32xf32>
    %122 = arith.addf %119, %121 : vector<8x32xf32>
    %c0_60 = arith.constant 0 : index
    %c0_61 = arith.constant 0 : index
    %123 = vector.load %arg7[%c0_60, %c0_61] : memref<1x32xf32, #tpu.memory_space<vmem>>, vector<1x32xf32>
    %c0_62 = arith.constant 0 : index
    %c0_63 = arith.constant 0 : index
    %124 = vector.load %arg8[%c0_62, %c0_63] : memref<1x32xf32, #tpu.memory_space<vmem>>, vector<1x32xf32>
    %cst_64 = arith.constant dense<0.000000e+00> : vector<8xf32>
    %125 = vector.multi_reduction <add>, %122, %cst_64 [1] : vector<8x32xf32> to vector<8xf32>
    %126 = vector.shape_cast %125 : vector<8xf32> to vector<8x1xf32>
    %cst_65 = arith.constant 3.200000e+01 : f32
    %127 = vector.broadcast %cst_65 : f32 to vector<8x1xf32>
    %128 = arith.divf %126, %127 : vector<8x1xf32>
    %129 = vector.broadcast %128 : vector<8x1xf32> to vector<8x32xf32>
    %130 = arith.subf %122, %129 : vector<8x32xf32>
    %131 = arith.mulf %130, %130 : vector<8x32xf32>
    %cst_66 = arith.constant dense<0.000000e+00> : vector<8xf32>
    %132 = vector.multi_reduction <add>, %131, %cst_66 [1] : vector<8x32xf32> to vector<8xf32>
    %133 = vector.shape_cast %132 : vector<8xf32> to vector<8x1xf32>
    %cst_67 = arith.constant 3.200000e+01 : f32
    %134 = vector.broadcast %cst_67 : f32 to vector<8x1xf32>
    %135 = arith.divf %133, %134 : vector<8x1xf32>
    %136 = vector.broadcast %128 : vector<8x1xf32> to vector<8x32xf32>
    %137 = arith.subf %122, %136 : vector<8x32xf32>
    %cst_68 = arith.constant 9.99999974E-6 : f32
    %138 = vector.broadcast %cst_68 : f32 to vector<8x1xf32>
    %139 = arith.addf %135, %138 : vector<8x1xf32>
    %140 = math.rsqrt %139 : vector<8x1xf32>
    %141 = vector.broadcast %140 : vector<8x1xf32> to vector<8x32xf32>
    %142 = arith.mulf %137, %141 : vector<8x32xf32>
    %143 = vector.broadcast %123 : vector<1x32xf32> to vector<8x32xf32>
    %144 = arith.mulf %142, %143 : vector<8x32xf32>
    %145 = vector.broadcast %124 : vector<1x32xf32> to vector<8x32xf32>
    %146 = arith.addf %144, %145 : vector<8x32xf32>
    %147 = arith.truncf %146 : vector<8x32xf32> to vector<8x32xbf16>
    %c0_69 = arith.constant 0 : index
    %c0_70 = arith.constant 0 : index
    %c0_71 = arith.constant 0 : index
    %148 = vector.load %arg9[%c0_69, %c0_70, %c0_71] : memref<1x8x32xbf16, #tpu.memory_space<vmem>>, vector<1x8x32xbf16>
    %149 = vector.shape_cast %148 : vector<1x8x32xbf16> to vector<8x32xbf16>
    %150 = vector.shape_cast %147 : vector<8x32xbf16> to vector<1x8x32xbf16>
    tpu.vector_store %arg9[%c0_69, %c0_70, %c0_71], %150 {strides = array<i32>} : memref<1x8x32xbf16, #tpu.memory_space<vmem>>, vector<1x8x32xbf16>,
    return
  }
  func.func @transform_0(%arg0: i32, %arg1: i32) -> (i32, i32, i32) {
    %c0_i32 = arith.constant 0 : i32
    %c0_i32_0 = arith.constant 0 : i32
    return %arg0, %arg1, %c0_i32 : i32, i32, i32
  }
  func.func @transform_1(%arg0: i32, %arg1: i32) -> (i32, i32) {
    %c0_i32 = arith.constant 0 : i32
    %c0_i32_0 = arith.constant 0 : i32
    %c0_i32_1 = arith.constant 0 : i32
    return %c0_i32, %c0_i32_0 : i32, i32
  }
  func.func @transform_2(%arg0: i32, %arg1: i32) -> (i32, i32) {
    %c0_i32 = arith.constant 0 : i32
    %c0_i32_0 = arith.constant 0 : i32
    %c0_i32_1 = arith.constant 0 : i32
    return %c0_i32, %c0_i32_0 : i32, i32
  }
  func.func @transform_3(%arg0: i32, %arg1: i32) -> (i32, i32) {
    %c0_i32 = arith.constant 0 : i32
    %c0_i32_0 = arith.constant 0 : i32
    %c0_i32_1 = arith.constant 0 : i32
    return %c0_i32, %c0_i32_0 : i32, i32
  }
  func.func @transform_4(%arg0: i32, %arg1: i32) -> (i32, i32) {
    %c0_i32 = arith.constant 0 : i32
    %c0_i32_0 = arith.constant 0 : i32
    %c0_i32_1 = arith.constant 0 : i32
    return %c0_i32, %c0_i32_0 : i32, i32
  }
  func.func @transform_5(%arg0: i32, %arg1: i32) -> (i32, i32) {
    %c0_i32 = arith.constant 0 : i32
    %c0_i32_0 = arith.constant 0 : i32
    %c0_i32_1 = arith.constant 0 : i32
    return %c0_i32, %c0_i32_0 : i32, i32
  }
  func.func @transform_6(%arg0: i32, %arg1: i32) -> (i32, i32) {
    %c0_i32 = arith.constant 0 : i32
    %c0_i32_0 = arith.constant 0 : i32
    %c0_i32_1 = arith.constant 0 : i32
    return %c0_i32, %c0_i32_0 : i32, i32
  }
  func.func @transform_7(%arg0: i32, %arg1: i32) -> (i32, i32, i32) {
    %c0_i32 = arith.constant 0 : i32
    %c0_i32_0 = arith.constant 0 : i32
    return %arg0, %arg1, %c0_i32 : i32, i32, i32
  }
}

module attributes {stable_mosaic.version = 11 : i64} {
  func.func @_presoftmax_ce_kernel(%arg0: i32, %arg1: memref<8x32xbf16, #tpu.memory_space<vmem>>, %arg2: memref<32x16xbf16, #tpu.memory_space<vmem>>, %arg3: memref<1x16xf32, #tpu.memory_space<vmem>>, %arg4: memref<8x1xi32, #tpu.memory_space<vmem>>, %arg5: memref<8x1xf32, #tpu.memory_space<vmem>>, %arg6: memref<8x16xf32, #tpu.memory_space<vmem>>, %arg7: memref<8x1xf32, #tpu.memory_space<vmem>>) attributes {dimension_semantics = [#tpu.dimension_semantics<parallel>], iteration_bounds = array<i64: 1>, scalar_prefetch = 0 : i64, scratch_operands = 0 : i64, tpu.core_type = #tpu.core_type<tc>, window_params = [{transform_indices = @transform_0, window_bounds = array<i64: 8, 32>}, {pipeline_mode = #tpu.pipeline_mode<synchronous>, transform_indices = @transform_1, window_bounds = array<i64: 32, 16>}, {pipeline_mode = #tpu.pipeline_mode<synchronous>, transform_indices = @transform_2, window_bounds = array<i64: 1, 16>}, {transform_indices = @transform_3, window_bounds = array<i64: 8, 1>}, {transform_indices = @transform_4, window_bounds = array<i64: 8, 1>}, {transform_indices = @transform_5, window_bounds = array<i64: 8, 16>}, {transform_indices = @transform_6, window_bounds = array<i64: 8, 1>}]} {
    %c0 = arith.constant 0 : index
    %c0_0 = arith.constant 0 : index
    %0 = vector.load %arg1[%c0, %c0_0] : memref<8x32xbf16, #tpu.memory_space<vmem>>, vector<8x32xbf16>
    %c0_1 = arith.constant 0 : index
    %c0_2 = arith.constant 0 : index
    %1 = vector.load %arg2[%c0_1, %c0_2] : memref<32x16xbf16, #tpu.memory_space<vmem>>, vector<32x16xbf16>
    %cst = arith.constant dense<0.000000e+00> : vector<8x16xf32>
    %2 = tpu.matmul %0, %1, %cst {dimension_numbers = #tpu.dot_dimension_numbers<[1], [0], [0], [1], [0, 0, 1, 1], [], []>} : vector<8x32xbf16>, vector<32x16xbf16>, vector<8x16xf32> -> vector<8x16xf32>
    %c0_3 = arith.constant 0 : index
    %c0_4 = arith.constant 0 : index
    %3 = vector.load %arg3[%c0_3, %c0_4] : memref<1x16xf32, #tpu.memory_space<vmem>>, vector<1x16xf32>
    %4 = vector.broadcast %3 : vector<1x16xf32> to vector<8x16xf32>
    %5 = arith.addf %2, %4 : vector<8x16xf32>
    %c0_5 = arith.constant 0 : index
    %c0_6 = arith.constant 0 : index
    %6 = vector.load %arg6[%c0_5, %c0_6] : memref<8x16xf32, #tpu.memory_space<vmem>>, vector<8x16xf32>
    tpu.vector_store %arg6[%c0_5, %c0_6], %5 {strides = array<i32>} : memref<8x16xf32, #tpu.memory_space<vmem>>, vector<8x16xf32>,
    %cst_7 = arith.constant dense<0xFF800000> : vector<8xf32>
    %7 = vector.multi_reduction <maximumf>, %5, %cst_7 [1] : vector<8x16xf32> to vector<8xf32>
    %8 = vector.shape_cast %7 : vector<8xf32> to vector<8x1xf32>
    %9 = vector.broadcast %8 : vector<8x1xf32> to vector<8x16xf32>
    %10 = arith.subf %5, %9 : vector<8x16xf32>
    %11 = math.exp %10 : vector<8x16xf32>
    %cst_8 = arith.constant dense<0.000000e+00> : vector<8xf32>
    %12 = vector.multi_reduction <add>, %11, %cst_8 [1] : vector<8x16xf32> to vector<8xf32>
    %13 = vector.shape_cast %12 : vector<8xf32> to vector<8x1xf32>
    %14 = math.log %13 : vector<8x1xf32>
    %15 = arith.addf %8, %14 : vector<8x1xf32>
    %16 = tpu.iota {dimensions = array<i32: 1>} : vector<8x16xi32>
    %c0_9 = arith.constant 0 : index
    %c0_10 = arith.constant 0 : index
    %17 = vector.load %arg4[%c0_9, %c0_10] : memref<8x1xi32, #tpu.memory_space<vmem>>, vector<8x1xi32>
    %18 = vector.broadcast %17 : vector<8x1xi32> to vector<8x16xi32>
    %19 = arith.cmpi eq, %16, %18 : vector<8x16xi32>
    %cst_11 = arith.constant 0.000000e+00 : f32
    %20 = vector.broadcast %cst_11 : f32 to vector<8x16xf32>
    %21 = arith.select %19, %5, %20 : vector<8x16xi1>, vector<8x16xf32>
    %cst_12 = arith.constant dense<0.000000e+00> : vector<8xf32>
    %22 = vector.multi_reduction <add>, %21, %cst_12 [1] : vector<8x16xf32> to vector<8xf32>
    %23 = vector.shape_cast %22 : vector<8xf32> to vector<8x1xf32>
    %cst_13 = arith.constant dense<0.000000e+00> : vector<8xf32>
    %24 = vector.multi_reduction <add>, %5, %cst_13 [1] : vector<8x16xf32> to vector<8xf32>
    %25 = vector.shape_cast %24 : vector<8xf32> to vector<8x1xf32>
    %26 = arith.subf %15, %23 : vector<8x1xf32>
    %cst_14 = arith.constant 0.899999976 : f32
    %27 = vector.broadcast %cst_14 : f32 to vector<8x1xf32>
    %28 = arith.mulf %27, %26 : vector<8x1xf32>
    %cst_15 = arith.constant 1.600000e+01 : f32
    %29 = vector.broadcast %cst_15 : f32 to vector<8x1xf32>
    %30 = arith.mulf %29, %15 : vector<8x1xf32>
    %31 = arith.subf %30, %25 : vector<8x1xf32>
    %cst_16 = arith.constant 6.250000e-03 : f32
    %32 = vector.broadcast %cst_16 : f32 to vector<8x1xf32>
    %33 = arith.mulf %32, %31 : vector<8x1xf32>
    %34 = arith.addf %28, %33 : vector<8x1xf32>
    %c0_17 = arith.constant 0 : index
    %c0_18 = arith.constant 0 : index
    %35 = vector.load %arg5[%c0_17, %c0_18] : memref<8x1xf32, #tpu.memory_space<vmem>>, vector<8x1xf32>
    %36 = arith.mulf %34, %35 : vector<8x1xf32>
    %c0_19 = arith.constant 0 : index
    %c0_20 = arith.constant 0 : index
    %37 = vector.load %arg7[%c0_19, %c0_20] : memref<8x1xf32, #tpu.memory_space<vmem>>, vector<8x1xf32>
    tpu.vector_store %arg7[%c0_19, %c0_20], %36 {strides = array<i32>} : memref<8x1xf32, #tpu.memory_space<vmem>>, vector<8x1xf32>,
    return
  }
  func.func @transform_0(%arg0: i32) -> (i32, i32) {
    %c0_i32 = arith.constant 0 : i32
    %c0_i32_0 = arith.constant 0 : i32
    return %arg0, %c0_i32 : i32, i32
  }
  func.func @transform_1(%arg0: i32) -> (i32, i32) {
    %c0_i32 = arith.constant 0 : i32
    %c0_i32_0 = arith.constant 0 : i32
    %c0_i32_1 = arith.constant 0 : i32
    return %c0_i32, %c0_i32_0 : i32, i32
  }
  func.func @transform_2(%arg0: i32) -> (i32, i32) {
    %c0_i32 = arith.constant 0 : i32
    %c0_i32_0 = arith.constant 0 : i32
    %c0_i32_1 = arith.constant 0 : i32
    return %c0_i32, %c0_i32_0 : i32, i32
  }
  func.func @transform_3(%arg0: i32) -> (i32, i32) {
    %c0_i32 = arith.constant 0 : i32
    %c0_i32_0 = arith.constant 0 : i32
    return %arg0, %c0_i32 : i32, i32
  }
  func.func @transform_4(%arg0: i32) -> (i32, i32) {
    %c0_i32 = arith.constant 0 : i32
    %c0_i32_0 = arith.constant 0 : i32
    return %arg0, %c0_i32 : i32, i32
  }
  func.func @transform_5(%arg0: i32) -> (i32, i32) {
    %c0_i32 = arith.constant 0 : i32
    %c0_i32_0 = arith.constant 0 : i32
    return %arg0, %c0_i32 : i32, i32
  }
  func.func @transform_6(%arg0: i32) -> (i32, i32) {
    %c0_i32 = arith.constant 0 : i32
    %c0_i32_0 = arith.constant 0 : i32
    return %arg0, %c0_i32 : i32, i32
  }
}

module attributes {stable_mosaic.version = 11 : i64} {
  func.func @_diag_cross_block_kernel(%arg0: i32, %arg1: memref<16x32xbf16, #tpu.memory_space<vmem>>, %arg2: memref<16x32xbf16, #tpu.memory_space<vmem>>, %arg3: memref<32x32xbf16, #tpu.memory_space<vmem>>, %arg4: memref<1x32xf32, #tpu.memory_space<vmem>>, %arg5: memref<32x32xbf16, #tpu.memory_space<vmem>>, %arg6: memref<1x32xf32, #tpu.memory_space<vmem>>, %arg7: memref<1x32xf32, #tpu.memory_space<vmem>>, %arg8: memref<1x32xf32, #tpu.memory_space<vmem>>, %arg9: memref<16x32xbf16, #tpu.memory_space<vmem>>) attributes {dimension_semantics = [#tpu.dimension_semantics<parallel>], iteration_bounds = array<i64: 1>, scalar_prefetch = 0 : i64, scratch_operands = 0 : i64, tpu.core_type = #tpu.core_type<tc>, window_params = [{transform_indices = @transform_0, window_bounds = array<i64: 16, 32>}, {transform_indices = @transform_1, window_bounds = array<i64: 16, 32>}, {pipeline_mode = #tpu.pipeline_mode<synchronous>, transform_indices = @transform_2, window_bounds = array<i64: 32, 32>}, {pipeline_mode = #tpu.pipeline_mode<synchronous>, transform_indices = @transform_3, window_bounds = array<i64: 1, 32>}, {pipeline_mode = #tpu.pipeline_mode<synchronous>, transform_indices = @transform_4, window_bounds = array<i64: 32, 32>}, {pipeline_mode = #tpu.pipeline_mode<synchronous>, transform_indices = @transform_5, window_bounds = array<i64: 1, 32>}, {pipeline_mode = #tpu.pipeline_mode<synchronous>, transform_indices = @transform_6, window_bounds = array<i64: 1, 32>}, {pipeline_mode = #tpu.pipeline_mode<synchronous>, transform_indices = @transform_7, window_bounds = array<i64: 1, 32>}, {transform_indices = @transform_8, window_bounds = array<i64: 16, 32>}]} {
    %c0 = arith.constant 0 : index
    %c0_0 = arith.constant 0 : index
    %0 = vector.load %arg1[%c0, %c0_0] : memref<16x32xbf16, #tpu.memory_space<vmem>>, vector<16x32xbf16>
    %1 = arith.extf %0 : vector<16x32xbf16> to vector<16x32xf32>
    %c0_1 = arith.constant 0 : index
    %c0_2 = arith.constant 0 : index
    %2 = vector.load %arg2[%c0_1, %c0_2] : memref<16x32xbf16, #tpu.memory_space<vmem>>, vector<16x32xbf16>
    %c0_3 = arith.constant 0 : index
    %c0_4 = arith.constant 0 : index
    %3 = vector.load %arg3[%c0_3, %c0_4] : memref<32x32xbf16, #tpu.memory_space<vmem>>, vector<32x32xbf16>
    %cst = arith.constant dense<0.000000e+00> : vector<16x32xf32>
    %4 = tpu.matmul %2, %3, %cst {dimension_numbers = #tpu.dot_dimension_numbers<[1], [0], [0], [1], [0, 0, 1, 1], [], []>} : vector<16x32xbf16>, vector<32x32xbf16>, vector<16x32xf32> -> vector<16x32xf32>
    %c0_5 = arith.constant 0 : index
    %c0_6 = arith.constant 0 : index
    %5 = vector.load %arg4[%c0_5, %c0_6] : memref<1x32xf32, #tpu.memory_space<vmem>>, vector<1x32xf32>
    %6 = vector.broadcast %5 : vector<1x32xf32> to vector<16x32xf32>
    %7 = arith.addf %4, %6 : vector<16x32xf32>
    %8 = arith.truncf %7 : vector<16x32xf32> to vector<16x32xbf16>
    %c0_7 = arith.constant 0 : index
    %c0_8 = arith.constant 0 : index
    %9 = vector.load %arg5[%c0_7, %c0_8] : memref<32x32xbf16, #tpu.memory_space<vmem>>, vector<32x32xbf16>
    %cst_9 = arith.constant dense<0.000000e+00> : vector<16x32xf32>
    %10 = tpu.matmul %8, %9, %cst_9 {dimension_numbers = #tpu.dot_dimension_numbers<[1], [0], [0], [1], [0, 0, 1, 1], [], []>} : vector<16x32xbf16>, vector<32x32xbf16>, vector<16x32xf32> -> vector<16x32xf32>
    %c0_10 = arith.constant 0 : index
    %c0_11 = arith.constant 0 : index
    %11 = vector.load %arg6[%c0_10, %c0_11] : memref<1x32xf32, #tpu.memory_space<vmem>>, vector<1x32xf32>
    %12 = vector.broadcast %11 : vector<1x32xf32> to vector<16x32xf32>
    %13 = arith.addf %10, %12 : vector<16x32xf32>
    %14 = arith.addf %1, %13 : vector<16x32xf32>
    %c0_12 = arith.constant 0 : index
    %c0_13 = arith.constant 0 : index
    %15 = vector.load %arg7[%c0_12, %c0_13] : memref<1x32xf32, #tpu.memory_space<vmem>>, vector<1x32xf32>
    %c0_14 = arith.constant 0 : index
    %c0_15 = arith.constant 0 : index
    %16 = vector.load %arg8[%c0_14, %c0_15] : memref<1x32xf32, #tpu.memory_space<vmem>>, vector<1x32xf32>
    %cst_16 = arith.constant dense<0.000000e+00> : vector<16xf32>
    %17 = vector.multi_reduction <add>, %14, %cst_16 [1] : vector<16x32xf32> to vector<16xf32>
    %18 = vector.shape_cast %17 : vector<16xf32> to vector<16x1xf32>
    %cst_17 = arith.constant 3.200000e+01 : f32
    %19 = vector.broadcast %cst_17 : f32 to vector<16x1xf32>
    %20 = arith.divf %18, %19 : vector<16x1xf32>
    %21 = vector.broadcast %20 : vector<16x1xf32> to vector<16x32xf32>
    %22 = arith.subf %14, %21 : vector<16x32xf32>
    %23 = arith.mulf %22, %22 : vector<16x32xf32>
    %cst_18 = arith.constant dense<0.000000e+00> : vector<16xf32>
    %24 = vector.multi_reduction <add>, %23, %cst_18 [1] : vector<16x32xf32> to vector<16xf32>
    %25 = vector.shape_cast %24 : vector<16xf32> to vector<16x1xf32>
    %cst_19 = arith.constant 3.200000e+01 : f32
    %26 = vector.broadcast %cst_19 : f32 to vector<16x1xf32>
    %27 = arith.divf %25, %26 : vector<16x1xf32>
    %28 = vector.broadcast %20 : vector<16x1xf32> to vector<16x32xf32>
    %29 = arith.subf %14, %28 : vector<16x32xf32>
    %cst_20 = arith.constant 9.99999974E-6 : f32
    %30 = vector.broadcast %cst_20 : f32 to vector<16x1xf32>
    %31 = arith.addf %27, %30 : vector<16x1xf32>
    %32 = math.rsqrt %31 : vector<16x1xf32>
    %33 = vector.broadcast %32 : vector<16x1xf32> to vector<16x32xf32>
    %34 = arith.mulf %29, %33 : vector<16x32xf32>
    %35 = vector.broadcast %15 : vector<1x32xf32> to vector<16x32xf32>
    %36 = arith.mulf %34, %35 : vector<16x32xf32>
    %37 = vector.broadcast %16 : vector<1x32xf32> to vector<16x32xf32>
    %38 = arith.addf %36, %37 : vector<16x32xf32>
    %39 = arith.truncf %38 : vector<16x32xf32> to vector<16x32xbf16>
    %c0_21 = arith.constant 0 : index
    %c0_22 = arith.constant 0 : index
    %40 = vector.load %arg9[%c0_21, %c0_22] : memref<16x32xbf16, #tpu.memory_space<vmem>>, vector<16x32xbf16>
    tpu.vector_store %arg9[%c0_21, %c0_22], %39 {strides = array<i32>} : memref<16x32xbf16, #tpu.memory_space<vmem>>, vector<16x32xbf16>,
    return
  }
  func.func @transform_0(%arg0: i32) -> (i32, i32) {
    %c0_i32 = arith.constant 0 : i32
    %c0_i32_0 = arith.constant 0 : i32
    return %arg0, %c0_i32 : i32, i32
  }
  func.func @transform_1(%arg0: i32) -> (i32, i32) {
    %c0_i32 = arith.constant 0 : i32
    %c0_i32_0 = arith.constant 0 : i32
    return %arg0, %c0_i32 : i32, i32
  }
  func.func @transform_2(%arg0: i32) -> (i32, i32) {
    %c0_i32 = arith.constant 0 : i32
    %c0_i32_0 = arith.constant 0 : i32
    %c0_i32_1 = arith.constant 0 : i32
    return %c0_i32, %c0_i32_0 : i32, i32
  }
  func.func @transform_3(%arg0: i32) -> (i32, i32) {
    %c0_i32 = arith.constant 0 : i32
    %c0_i32_0 = arith.constant 0 : i32
    %c0_i32_1 = arith.constant 0 : i32
    return %c0_i32, %c0_i32_0 : i32, i32
  }
  func.func @transform_4(%arg0: i32) -> (i32, i32) {
    %c0_i32 = arith.constant 0 : i32
    %c0_i32_0 = arith.constant 0 : i32
    %c0_i32_1 = arith.constant 0 : i32
    return %c0_i32, %c0_i32_0 : i32, i32
  }
  func.func @transform_5(%arg0: i32) -> (i32, i32) {
    %c0_i32 = arith.constant 0 : i32
    %c0_i32_0 = arith.constant 0 : i32
    %c0_i32_1 = arith.constant 0 : i32
    return %c0_i32, %c0_i32_0 : i32, i32
  }
  func.func @transform_6(%arg0: i32) -> (i32, i32) {
    %c0_i32 = arith.constant 0 : i32
    %c0_i32_0 = arith.constant 0 : i32
    %c0_i32_1 = arith.constant 0 : i32
    return %c0_i32, %c0_i32_0 : i32, i32
  }
  func.func @transform_7(%arg0: i32) -> (i32, i32) {
    %c0_i32 = arith.constant 0 : i32
    %c0_i32_0 = arith.constant 0 : i32
    %c0_i32_1 = arith.constant 0 : i32
    return %c0_i32, %c0_i32_0 : i32, i32
  }
  func.func @transform_8(%arg0: i32) -> (i32, i32) {
    %c0_i32 = arith.constant 0 : i32
    %c0_i32_0 = arith.constant 0 : i32
    return %arg0, %c0_i32 : i32, i32
  }
}

</mosaic_0001>

<bundles_post_ra>
// kernel: run.13
= control target key start
LH: loop header
LB: loop body
LE: loop exit
PB: predicated region body
PF: predicated region fallthrough
CT: control target
= control target key end

     0   :  { %vm56_vm0 = vcmask 261120   ;;  %vm113_vm1 = vcmask 523264   ;;  %v253_v27 = vmov 32.0   ;;  %vm198_vm7 = vcmask 257024   ;;  %s341_s1 = inlined_call_operand.vmem [shape: bf16[32,64], index: 1, kind: input, shape index: {}]   ;;  %s342_s2 = inlined_call_operand.vmem [shape: f32[1,64], index: 2, kind: input, shape index: {}]   ;;  %s343_s0 = inlined_call_operand.vmem [shape: bf16[16,32], index: 0, kind: input, shape index: {}]   ;;  %s344_s4 = inlined_call_operand.vmem [shape: f32[1,32], index: 4, kind: input, shape index: {}]   ;;  %s345_s3 = inlined_call_operand.vmem [shape: bf16[64,32], index: 3, kind: input, shape index: {}]   ;;  %s346_s5 = inlined_call_operand.vmem [shape: f32[1,32], index: 5, kind: input, shape index: {}]   ;;  %s347_s6 = inlined_call_operand.vmem [shape: f32[1,32], index: 6, kind: input, shape index: {}]   ;;  %s348_s7 = inlined_call_operand.vmem [shape: bf16[16,32], index: 7, kind: output, shape index: {}]  }
   0x1   :  { %v237_v0 = vld [vmem:[%s341_s1 + $0x8] sm:$0xff]  ;;  %v236_v1 = vld [vmem:[%s341_s1] sm:$0xff]  ;;  %v241_v3 = vld [vmem:[%s345_s3 + $0x18] sm:$0xff]  ;;  %247 = vrcp.f32 %v253_v27 }
   0x2   :  { %66 = vmatpush.bf16.msra.mxu0 %v237_v0  ;;  %v235_v2 = vld [vmem:[%s343_s0] sm:$0xff]  ;;  %121 = vmatpush.bf16.msra.mxu1 %v241_v3  ;;  %v240_v4 = vld [vmem:[%s345_s3 + $0x10] sm:$0xff]  ;;  %v239_v5 = vld [vmem:[%s345_s3 + $0x8] sm:$0xff] }
   0x3   :  { %v238_v6 = vld [vmem:[%s345_s3] sm:$0xff] }
   0x4   :  { %v243_v8 = vld [vmem:[%s342_s2] ss:$0 sm:$0xff] }
   0x5   :  { %v27_v15 = vld [vmem:[%s343_s0] sm:$0xff]  }
   0x6   :  { %67 = vmatpush.bf16.msra.mxu0 %v236_v1  ;;  %122 = vmatpush.bf16.msra.mxu1 %v240_v4  ;;  %v244_v16 = vld [vmem:[%s344_s4] ss:$0 sm:$0xff]  ;;  %v29_v17 = vunpack.c.l.bf16 %v27_v15  ;;  %v30_v22 = vunpack.c.h.bf16 %v27_v15 }
   0x7   :  { %v248_v28 = vpop.eup %247  ;;  %v245_v58 = vld [vmem:[%s346_s5] ss:$0 sm:$0xff] }
   0x8   :  { %v142_v29 = vmul.f32 32.0, %v248_v28  ;;  %vm146_vm2 = vweird.f32 %v248_v28  ;;  %v246_v61 = vld [vmem:[%s347_s6] ss:$0 sm:$0xff] }
   0x9   :  { %217 = vmatmul.msk.bf16.vlgmr.msra.gmra.mxu0 %vm56_vm0, %v235_v2 }
   0xa   :  { %123 = vmatpush.bf16.msra.mxu1 %v239_v5  ;;  %v143_v30 = vsub.f32 1.0, %v142_v29 }
   0xc   :  { %v144_v31 = vmul.f32 %v248_v28, %v143_v30 }
   0xe   :  { %124 = vmatpush.bf16.msra.mxu1 %v238_v6  ;;  %v145_v32 = vadd.f32 %v248_v28, %v144_v31 }
  0x10   :  { %v147_v33 = vsel %vm146_vm2, %v248_v28, %v145_v32 }
  0x86   :  { %v69_v7 = vpop.f32.mrf.mxu0 }
  0x87   :  { %v70_v9 = vadd.f32 %v243_v8, %v69_v7 }
  0x89   :  { %v74_v12 = vmax.f32 %v70_v9, 0.0 }
  0x8e   :  { %v71_v10 = vpop.f32.mrf.mxu0 }
  0x8f   :  { %v72_v11 = vadd.f32 %v243_v8, %v71_v10 }
  0x91   :  { %v75_v13 = vmax.f32 %v72_v11, 0.0 }
  0x93   :  { %v76_v14 = vpack.c.bf16 %v75_v13, %v74_v12 }
  0x95   :  { %234 = vmatmul.msk.bf16.vlgmr.msra.gmra.mxu1 %vm113_vm1, %v76_v14 }
 0x112   :  { %v126_v18 = vpop.f32.mrf.mxu1 }
 0x113   :  { %v127_v19 = vadd.f32 %v244_v16, %v126_v18 }
 0x115   :  { %v131_v20 = vadd.f32 %v127_v19, %v29_v17 }
 0x117   :  { %v135_v21 = vsel %vm56_vm0, %v131_v20, 0.0 }
 0x118   :  { %136 = vadd.xlane.f32.xlu0 %v135_v21 }
 0x11a   :  { %v128_v23 = vpop.f32.mrf.mxu1 }
 0x11b   :  { %v129_v24 = vadd.f32 %v244_v16, %v128_v23 }
 0x11d   :  { %v132_v25 = vadd.f32 %v129_v24, %v30_v22 }
 0x11f   :  { %v138_v26 = vsel %vm56_vm0, %v132_v25, 0.0 }
 0x120   :  { %139 = vadd.xlane.f32.xlu0 %v138_v26 }
 0x18b   :  { %v137_v34 = vpop.xlane.xlu0 %136 }
 0x18c   :  { %v148_v35 = vmul.f32 %v147_v33, %v137_v34 }
 0x18e   :  { %v150_v36 = vsub.f32 %v131_v20, %v148_v35 }
 0x190   :  { %v152_v37 = vmul.f32 %v150_v36, %v150_v36 }
 0x192   :  { %v154_v38 = vsel %vm56_vm0, %v152_v37, 0.0 }
 0x193   :  { %155 = vadd.xlane.f32.xlu1 %v154_v38  ;;  %v140_v39 = vpop.xlane.xlu0 %139 }
 0x194   :  { %v149_v40 = vmul.f32 %v147_v33, %v140_v39 }
 0x196   :  { %v151_v41 = vsub.f32 %v132_v25, %v149_v40 }
 0x198   :  { %v153_v42 = vmul.f32 %v151_v41, %v151_v41 }
 0x19a   :  { %v157_v43 = vsel %vm56_vm0, %v153_v42, 0.0 }
 0x19b   :  { %158 = vadd.xlane.f32.xlu1 %v157_v43 }
 0x206   :  { %v156_v44 = vpop.xlane.xlu1 %155 }
 0x207   :  { %v160_v45 = vmul.f32 %v156_v44, %v147_v33 }
 0x209   :  { %v162_v46 = vadd.f32 1e-05, %v160_v45 }
 0x20b   :  { %249 = vrsqrt.f32 %v162_v46  ;;  %vm170_vm4 = vweird.f32 %v162_v46 }
 0x20e   :  { %v159_v47 = vpop.xlane.xlu1 %158 }
 0x20f   :  { %v161_v48 = vmul.f32 %v159_v47, %v147_v33 }
 0x211   :  { %v250_v49 = vpop.eup %249  ;;  %v163_v50 = vadd.f32 1e-05, %v161_v48 }
 0x212   :  { %v165_v51 = vmul.f32 %v250_v49, %v162_v46  ;;  %vm171_vm3 = vweird.f32 %v250_v49 }
 0x213   :  { %251 = vrsqrt.f32 %v163_v50  ;;  %vm172_vm5 = vmor %vm170_vm4, %vm171_vm3  ;;  %vm180_vm8 = vweird.f32 %v163_v50 }
 0x214   :  { %v166_v52 = vmul.f32 %v250_v49, %v165_v51 }
 0x216   :  { %v167_v53 = vmul.f32 0.5, %v166_v52 }
 0x218   :  { %v168_v54 = vsub.f32 1.5, %v167_v53 }
 0x219   :  { %v252_v55 = vpop.eup %251 }
 0x21a   :  { %v169_v56 = vmul.f32 %v250_v49, %v168_v54  ;;  %v175_v57 = vmul.f32 %v252_v55, %v163_v50  ;;  %vm181_vm6 = vweird.f32 %v252_v55 }
 0x21b   :  { %vm182_vm9 = vmor %vm180_vm8, %vm181_vm6 }
 0x21c   :  { %v173_v59 = vsel %vm172_vm5, %v250_v49, %v169_v56  ;;  %v176_v60 = vmul.f32 %v252_v55, %v175_v57 }
 0x21d   :  { %v184_v62 = vmul.f32 %v173_v59, %v150_v36 }
 0x21e   :  { %v177_v63 = vmul.f32 0.5, %v176_v60 }
 0x21f   :  { %v189_v0 = vmul.f32 %v245_v58, %v184_v62 }
 0x220   :  { %v178_v1 = vsub.f32 1.5, %v177_v63 }
 0x221   :  { %v194_v2 = vadd.f32 %v246_v61, %v189_v0 }
 0x222   :  { %v179_v3 = vmul.f32 %v252_v55, %v178_v1 }
 0x223   :  { %v196_v4 = vpack.c.bf16 %v194_v2, %v194_v2 }
 0x224   :  { %v183_v5 = vsel %vm182_vm9, %v252_v55, %v179_v3 }
 0x225   :  { %199 = vst.msk [vmem:[%s348_s7] sm:$0xf] %vm198_vm7, %v196_v4  ;;  %v185_v6 = vmul.f32 %v183_v5, %v151_v41 }
 0x227   :  { %v190_v7 = vmul.f32 %v245_v58, %v185_v6 }
 0x229   :  { %v195_v8 = vadd.f32 %v246_v61, %v190_v7 }
 0x22b   :  { %v197_v9 = vpack.c.bf16 %v195_v8, %v195_v8 }
 0x22d   :  { %200 = vst.msk [vmem:[%s348_s7 + $0x4] sm:$0xf] %vm198_vm7, %v197_v9 }

// kernel: run.17
= control target key start
LH: loop header
LB: loop body
LE: loop exit
PB: predicated region body
PF: predicated region fallthrough
CT: control target
= control target key end

     0   :  { %vm61_vm0 = vcmask 261120   ;;  %v233_v23 = vmov 32.0   ;;  %vm184_vm6 = vcmask 257024   ;;  %s321_s2 = inlined_call_operand.vmem [shape: bf16[32,32], index: 2, kind: input, shape index: {}]   ;;  %s322_s3 = inlined_call_operand.vmem [shape: f32[1,32], index: 3, kind: input, shape index: {}]   ;;  %s323_s1 = inlined_call_operand.vmem [shape: bf16[16,32], index: 1, kind: input, shape index: {}]   ;;  %s324_s5 = inlined_call_operand.vmem [shape: f32[1,32], index: 5, kind: input, shape index: {}]   ;;  %s325_s4 = inlined_call_operand.vmem [shape: bf16[32,32], index: 4, kind: input, shape index: {}]   ;;  %s326_s0 = inlined_call_operand.vmem [shape: bf16[16,32], index: 0, kind: input, shape index: {}]   ;;  %s327_s6 = inlined_call_operand.vmem [shape: f32[1,32], index: 6, kind: input, shape index: {}]   ;;  %s328_s7 = inlined_call_operand.vmem [shape: f32[1,32], index: 7, kind: input, shape index: {}]   ;;  %s329_s8 = inlined_call_operand.vmem [shape: bf16[16,32], index: 8, kind: output, shape index: {}]  }
   0x1   :  { %v215_v0 = vld [vmem:[%s321_s2 + $0x8] sm:$0xff]  ;;  %v214_v1 = vld [vmem:[%s321_s2] sm:$0xff]  ;;  %227 = vrcp.f32 %v233_v23 }
   0x2   :  { %71 = vmatpush.bf16.msra.mxu0 %v215_v0  ;;  %v213_v2 = vld [vmem:[%s323_s1] sm:$0xff]  ;;  %v217_v3 = vld [vmem:[%s325_s4 + $0x8] sm:$0xff] }
   0x3   :  { %109 = vmatpush.bf16.msra.mxu1 %v217_v3  ;;  %v216_v4 = vld [vmem:[%s325_s4] sm:$0xff] }
   0x4   :  { %v223_v6 = vld [vmem:[%s322_s3] ss:$0 sm:$0xff] }
   0x5   :  { %v219_v11 = vld [vmem:[%s326_s0] sm:$0xff]  }
   0x6   :  { %72 = vmatpush.bf16.msra.mxu0 %v214_v1  ;;  %v224_v12 = vld [vmem:[%s324_s5] ss:$0 sm:$0xff]  ;;  %v220_v13 = vunpack.c.l.bf16 %v219_v11  ;;  %v221_v18 = vunpack.c.h.bf16 %v219_v11 }
   0x7   :  { %110 = vmatpush.bf16.msra.mxu1 %v216_v4  ;;  %v228_v24 = vpop.eup %227  ;;  %v225_v54 = vld [vmem:[%s327_s6] ss:$0 sm:$0xff] }
   0x8   :  { %v128_v25 = vmul.f32 32.0, %v228_v24  ;;  %vm132_vm1 = vweird.f32 %v228_v24  ;;  %v226_v57 = vld [vmem:[%s328_s7] ss:$0 sm:$0xff] }
   0x9   :  { %203 = vmatmul.msk.bf16.vlgmr.msra.gmra.mxu0 %vm61_vm0, %v213_v2 }
   0xa   :  { %v129_v26 = vsub.f32 1.0, %v128_v25 }
   0xc   :  { %v130_v27 = vmul.f32 %v228_v24, %v129_v26 }
   0xe   :  { %v131_v28 = vadd.f32 %v228_v24, %v130_v27 }
  0x10   :  { %v133_v29 = vsel %vm132_vm1, %v228_v24, %v131_v28 }
  0x86   :  { %v74_v5 = vpop.f32.mrf.mxu0 }
  0x87   :  { %v75_v8 = vadd.f32 %v223_v6, %v74_v5 }
  0x8e   :  { %v76_v7 = vpop.f32.mrf.mxu0 }
  0x8f   :  { %v77_v9 = vadd.f32 %v223_v6, %v76_v7 }
  0x91   :  { %v79_v10 = vpack.c.bf16 %v77_v9, %v75_v8 }
  0x93   :  { %212 = vmatmul.msk.bf16.vlgmr.msra.gmra.mxu1 %vm61_vm0, %v79_v10 }
 0x110   :  { %v112_v14 = vpop.f32.mrf.mxu1 }
 0x111   :  { %v113_v15 = vadd.f32 %v224_v12, %v112_v14 }
 0x113   :  { %v117_v16 = vadd.f32 %v220_v13, %v113_v15 }
 0x115   :  { %v121_v17 = vsel %vm61_vm0, %v117_v16, 0.0 }
 0x116   :  { %122 = vadd.xlane.f32.xlu0 %v121_v17 }
 0x118   :  { %v114_v19 = vpop.f32.mrf.mxu1 }
 0x119   :  { %v115_v20 = vadd.f32 %v224_v12, %v114_v19 }
 0x11b   :  { %v118_v21 = vadd.f32 %v221_v18, %v115_v20 }
 0x11d   :  { %v124_v22 = vsel %vm61_vm0, %v118_v21, 0.0 }
 0x11e   :  { %125 = vadd.xlane.f32.xlu0 %v124_v22 }
 0x189   :  { %v123_v30 = vpop.xlane.xlu0 %122 }
 0x18a   :  { %v134_v31 = vmul.f32 %v133_v29, %v123_v30 }
 0x18c   :  { %v136_v32 = vsub.f32 %v117_v16, %v134_v31 }
 0x18e   :  { %v138_v33 = vmul.f32 %v136_v32, %v136_v32 }
 0x190   :  { %v140_v34 = vsel %vm61_vm0, %v138_v33, 0.0 }
 0x191   :  { %141 = vadd.xlane.f32.xlu1 %v140_v34  ;;  %v126_v35 = vpop.xlane.xlu0 %125 }
 0x192   :  { %v135_v36 = vmul.f32 %v133_v29, %v126_v35 }
 0x194   :  { %v137_v37 = vsub.f32 %v118_v21, %v135_v36 }
 0x196   :  { %v139_v38 = vmul.f32 %v137_v37, %v137_v37 }
 0x198   :  { %v143_v39 = vsel %vm61_vm0, %v139_v38, 0.0 }
 0x199   :  { %144 = vadd.xlane.f32.xlu1 %v143_v39 }
 0x204   :  { %v142_v40 = vpop.xlane.xlu1 %141 }
 0x205   :  { %v146_v41 = vmul.f32 %v142_v40, %v133_v29 }
 0x207   :  { %v148_v42 = vadd.f32 1e-05, %v146_v41 }
 0x209   :  { %229 = vrsqrt.f32 %v148_v42  ;;  %vm156_vm3 = vweird.f32 %v148_v42 }
 0x20c   :  { %v145_v43 = vpop.xlane.xlu1 %144 }
 0x20d   :  { %v147_v44 = vmul.f32 %v145_v43, %v133_v29 }
 0x20f   :  { %v230_v45 = vpop.eup %229  ;;  %v149_v46 = vadd.f32 1e-05, %v147_v44 }
 0x210   :  { %v151_v47 = vmul.f32 %v230_v45, %v148_v42  ;;  %vm157_vm2 = vweird.f32 %v230_v45 }
 0x211   :  { %231 = vrsqrt.f32 %v149_v46  ;;  %vm158_vm4 = vmor %vm156_vm3, %vm157_vm2  ;;  %vm166_vm7 = vweird.f32 %v149_v46 }
 0x212   :  { %v152_v48 = vmul.f32 %v230_v45, %v151_v47 }
 0x214   :  { %v153_v49 = vmul.f32 0.5, %v152_v48 }
 0x216   :  { %v154_v50 = vsub.f32 1.5, %v153_v49 }
 0x217   :  { %v232_v51 = vpop.eup %231 }
 0x218   :  { %v155_v52 = vmul.f32 %v230_v45, %v154_v50  ;;  %v161_v53 = vmul.f32 %v232_v51, %v149_v46  ;;  %vm167_vm5 = vweird.f32 %v232_v51 }
 0x219   :  { %vm168_vm8 = vmor %vm166_vm7, %vm167_vm5 }
 0x21a   :  { %v159_v55 = vsel %vm158_vm4, %v230_v45, %v155_v52  ;;  %v162_v56 = vmul.f32 %v232_v51, %v161_v53 }
 0x21b   :  { %v170_v58 = vmul.f32 %v159_v55, %v136_v32 }
 0x21c   :  { %v163_v59 = vmul.f32 0.5, %v162_v56 }
 0x21d   :  { %v175_v60 = vmul.f32 %v225_v54, %v170_v58 }
 0x21e   :  { %v164_v61 = vsub.f32 1.5, %v163_v59 }
 0x21f   :  { %v180_v62 = vadd.f32 %v226_v57, %v175_v60 }
 0x220   :  { %v165_v63 = vmul.f32 %v232_v51, %v164_v61 }
 0x221   :  { %v182_v0 = vpack.c.bf16 %v180_v62, %v180_v62 }
 0x222   :  { %v169_v1 = vsel %vm168_vm8, %v232_v51, %v165_v63 }
 0x223   :  { %185 = vst.msk [vmem:[%s329_s8] sm:$0xf] %vm184_vm6, %v182_v0  ;;  %v171_v2 = vmul.f32 %v169_v1, %v137_v37 }
 0x225   :  { %v176_v3 = vmul.f32 %v225_v54, %v171_v2 }
 0x227   :  { %v181_v4 = vadd.f32 %v226_v57, %v176_v3 }
 0x229   :  { %v183_v5 = vpack.c.bf16 %v181_v4, %v181_v4 }
 0x22b   :  { %186 = vst.msk [vmem:[%s329_s8 + $0x4] sm:$0xf] %vm184_vm6, %v183_v5 }

// kernel: run.12
= control target key start
LH: loop header
LB: loop body
LE: loop exit
PB: predicated region body
PF: predicated region fallthrough
CT: control target
= control target key end

     0   :  { %s1018_s24 = smov 0   ;;  %s1020_s25 = smov 0   ;;  %s1152_s0 = inlined_call_operand.vmem [shape: bf16[2,8,32], index: 0, kind: input, shape index: {}]   ;;  %s1153_s1 = inlined_call_operand.vmem [shape: bf16[32,96], index: 1, kind: input, shape index: {}]   ;;  %s1154_s2 = inlined_call_operand.vmem [shape: f32[1,96], index: 2, kind: input, shape index: {}]   ;;  %s1155_s3 = inlined_call_operand.vmem [shape: bf16[32,32], index: 3, kind: input, shape index: {}]   ;;  %s1156_s4 = inlined_call_operand.vmem [shape: f32[1,32], index: 4, kind: input, shape index: {}]   ;;  %s1157_s5 = inlined_call_operand.vmem [shape: f32[1,32], index: 5, kind: input, shape index: {}]   ;;  %s1158_s6 = inlined_call_operand.vmem [shape: f32[1,32], index: 6, kind: input, shape index: {}]   ;;  %s1159_s7 = inlined_call_operand.vmem [shape: bf16[2,8,32], index: 7, kind: output, shape index: {}]  }
   0x1   :  { %s1022_s26 = smov 0  }
   0x2 LB: > { %s29_s27 = sadd.s32 1, %s964_s25  ;;  %p861_p0 = scmp.ge.s32.totalorder %s968_s26, 1  ;;  %s968_s26 = sphi %s1022_s26, %s17_s26   ;;  %s964_s25 = sphi %s1020_s25, %s1161_s25   ;;  %s960_s24 = sphi %s1018_s24, %s1160_s24  }
   0x3   : > { %p31_p1 = scmp.ge.s32.totalorder %s29_s27, 2  ;;  %p261_p2 = scmp.lt.s32.totalorder %s968_s26, 3 }
   0x5   : > { %s1163_s27 = smov (%p31_p1, %s29_s27), 0  ;;  %p262_p3 = pnand %p861_p0, %p261_p2 }
   0x6   : > { %p300_p4 = scmp.lt.s32.totalorder (!%p262_p3), %s960_s24, 1  ;;  %s971_s15 = smov (!%p262_p3), 48  }
   0x7   : > { %265 = sbr.rel (%p262_p3) target bundleno = 1116 (0x45c), region = 48  ;;  %s972_s16 = smov (!%p262_p3), 16  }
   0x8   : > { %s973_s17 = smov (!%p262_p3), 80   ;;  %s974_s18 = smov (!%p262_p3), 96  }
   0x9   : > { %s975_s19 = smov (!%p262_p3), 112   ;;  %s976_s20 = smov (!%p262_p3), 64  }
   0xc   : > { %v894_v0 = vld [vmem:[%s1153_s1 + $0x8] sm:$0xff]  ;;  %v893_v1 = vld [vmem:[%s1153_s1] sm:$0xff]  ;;  %s1165_s24 = smov (!%p300_p4, %s960_s24), 1  ;;  %vm352_vm0 = vcmask 261120   ;;  %vm322_vm1 = vcmask 130048   ;;  %v970_v3 = vmov 0.0   ;;  %v376_v43 = vlaneseq }
   0xd   : > { %362 = vmatpush.bf16.msra.mxu0 %v894_v0  ;;  %s862_s9 = sshll.u32 %s1165_s24, 2  ;;  %323 = vst.msk [vmem:[#allocation2] sm:$0xff] %vm322_vm1, %v970_v3  ;;  %vm327_vm2 = vcmask 122880   ;;  %v930_v7 = vld [vmem:[%s1154_s2] ss:$0 sm:$0xff]  ;;  %vm434_vm4 = vcmask 1043456  }
   0xe   : > { %s306_s12 = scalar_lea.vmem %s1152_s0, %s862_s9  ;;  %324 = vst.msk [vmem:[#allocation2 + $0x8] sm:$0xff] %vm322_vm1, %v970_v3  ;;  %v377_v44 = vshrl.u32 %v376_v43, 7  ;;  %v379_v45 = vand.u32 127, %v376_v43  ;;  %vm430_vm6 = vcmask 64512   ;;  %vm717_vm7 = vcmask 523648   ;;  %v895_v60 = vld [vmem:[%s1155_s3] sm:$0xff] }
   0xf   : > { %v1050_v2 = vld [vmem:[%s306_s12] sm:$0xf]  ;;  %325 = vst.msk [vmem:[#allocation2 + $0x10] sm:$0xff] %vm322_vm1, %v970_v3  ;;  %vm519_vm12 = vcmask 392448  }
  0x10   : > { %326 = vst.msk [vmem:[#allocation2 + $0x18] sm:$0xff] %vm322_vm1, %v970_v3  ;;  %vm380_vm5 = vcmp.ge.s32.totalorder %v379_v45, %v377_v44 }
  0x11   : > { %363 = vmatpush.bf16.msra.mxu0 %v893_v1  ;;  %329 = vst.msk [vmem:[#allocation3 + $0x1] sm:$0x1] %vm327_vm2, %v970_v3 }
  0x12   : > { %328 = vst.msk [vmem:[#allocation3] sm:$0x1] %vm327_vm2, %v970_v3 }
  0x14   : > { %872 = vmatmul.msk.bf16.vlgmr.msra.gmra.mxu0 %vm352_vm0, %v1050_v2  ;;  %v1060_v4 = vld [vmem:[#allocation2] sm:$0xff] }
  0x15   : > { %v1062_v5 = vld [vmem:[#allocation2 + $0x8] sm:$0xff] }
  0x16   : > { %v411_v6 = vpack.c.bf16 %v1062_v5, %v1060_v4  ;;  %v1078_v25 = vld [vmem:[#allocation2 + $0x10] sm:$0xff] }
  0x17   : > { %v1080_v26 = vld [vmem:[#allocation2 + $0x18] sm:$0xff] }
  0x18   : > { %419 = vmatpush.bf16.msra.mxu2 %v411_v6  ;;  %v931_v19 = vld [vmem:[#allocation3 + $0x1] ss:$0 sm:$0xff]  ;;  %v564_v27 = vpack.c.bf16 %v1080_v26, %v1078_v25 }
  0x19   : > { %v932_v22 = vld [vmem:[#allocation3] ss:$0 sm:$0xff] }
  0x1a   : > { %572 = vmatpush.bf16.msrb.mxu0 %v564_v27 }
  0x91   : > { %v365_v8 = vpop.f32.mrf.mxu0 }
  0x92   : > { %v366_v9 = vadd.f32 %v930_v7, %v365_v8 }
  0x94   : > { %v371_v10 = vmul.f32 1.442695, %v366_v9  ;;  %v375_v11 = vpack.c.bf16 %v366_v9, %v366_v9  ;;  %v370_v15 = vadd.f32 1.0, %v366_v9  ;;  %vm369_vm3 = vcmp.gt.f32.partialorder %v366_v9, 0.0 }
  0x96   : > { %936 = vpow2.f32 %v371_v10  ;;  %v426_v12 = vunpack.c.l.b16 %v375_v11 }
  0x98   : > { %v427_v13 = vpack.c.b16 %v426_v12, %v426_v12 }
  0x99   : > { %v367_v14 = vpop.f32.mrf.mxu0 }
  0x9a   : > { %578 = vrot.lane.b32.xlu2 %v427_v13, %s971_s15  ;;  %s315_s15 = scalar_lea.vmem %s1159_s7, %s862_s9 }
  0x9c   : > { %v937_v16 = vpop.eup %936 }
  0x9d   : > { %v1069_v17 = vsel %vm369_vm3, %v370_v15, %v937_v16 }
  0x9e   : > { %v374_v18 = vpack.c.bf16 %v1069_v17, %v1069_v17  ;;  %v457_v23 = vmul.f32 %v932_v22, %v1069_v17  ;;  %v718_v53 = vsel %vm717_vm7, %v1069_v17, 0.0 }
  0x9f   : > { %v719_v54 = vrot.slane %v718_v53, 4 }
  0xa0   : > { %874 = vmatmul.msk.bf16.vlgmr.msra.gmra.mxu2 %vm322_vm1, %v374_v18  ;;  %v385_v20 = vunpack.c.l.b16 %v374_v18  ;;  %v458_v24 = vsel %vm322_vm1, %v457_v23, 0.0 }
  0xa1   : > { %v720_v55 = vadd.f32 %v719_v54, %v718_v53  ;;  %v383_v53 = vld [vmem:[#allocation3] sm:$0x1] }
  0xa2   : > { %604 = vrot.lane.b32.xlu2 %v931_v19, %s972_s16  ;;  %v386_v21 = vpack.c.b16 %v385_v20, %v385_v20  ;;  %v520_v20 = vsel %vm519_vm12, %v1069_v17, 0.0 }
  0xa3   : > { %v721_v56 = vrot.slane %v720_v55, 2  ;;  %v521_v23 = vrot.slane %v520_v20, 4 }
  0xa4   : > { %541 = vrot.lane.b32.xlu1 %v386_v21, %s973_s17  ;;  %387 = vrot.lane.b32.xlu0 %v386_v21, %s974_s18 }
  0xa5   : > { %v722_v57 = vadd.f32 %v721_v56, %v720_v55 }
  0xa7   : > { %v723_v58 = vrot.slane %v722_v57, 1 }
  0xa9   : > { %v724_v59 = vadd.f32 %v723_v58, %v722_v57 }
  0xac   : > { %539 = vrot.lane.b32.xlu1 %v386_v21, %s975_s19  ;;  %428 = vrot.lane.b32.xlu0 %v427_v13, %s976_s20 }
  0xcb   : > { %459 = vadd.xlane.f32.xlu2 %v458_v24 }
  0xf4   : > { %v579_v28 = vpop.permute.xlu2 %578 }
  0xf5   : > { %v584_v29 = vsel %vm434_vm4, %v579_v28, 0 }
  0xf6   : > { %706 = vmatpush.bf16.msra.mxu0 %v584_v29 }
  0xfc   : > { %v605_v30 = vpop.permute.xlu2 %604 }
  0xfd   : > { %v607_v31 = vmul.f32 %v605_v30, %v1069_v17 }
  0xff   : > { %609 = vrot.lane.b32.xlu0 %v607_v31, %s975_s19 }
 0x116   : > { %v542_v32 = vpop.permute.xlu1 %541  ;;  %v388_v33 = vpop.permute.xlu0 %387 }
 0x117   : > { %v394_v34 = vsel %vm322_vm1, %v388_v33, 0  ;;  %v547_v38 = vsel %vm322_vm1, %v542_v32, 0 }
 0x118   : > { %403 = vmatpush.bf16.xpose.msra.mxu1 %v394_v34 }
 0x11e   : > { %v540_v35 = vpop.permute.xlu1 %539  ;;  %v429_v36 = vpop.permute.xlu0 %428 }
 0x11f   : > { %873 = vmatmul.msk.bf16.vlgmr.msra.gmra.mxu1 %vm322_vm1, %v374_v18  ;;  %878 = vmatmul.msk.bf16.vlgmr.msrb.gmra.mxu0 %vm322_vm1, %v540_v35  ;;  %v436_v37 = vsel %vm434_vm4, %v429_v36, 0 }
 0x120   : > { %593 = vmatpush.bf16.msrb.mxu1 %v584_v29  ;;  %445 = vmatpush.bf16.msra.mxu3 %v436_v37  ;;  %v522_v29 = vadd.f32 %v521_v23, %v520_v20 }
 0x121   : > { %508 = vmatpush.bf16.msrb.mxu2 %v436_v37 }
 0x122   : > { %v523_v31 = vrot.slane %v522_v29, 2 }
 0x123   : > { %v421_v39 = vpop.f32.mrf.mxu2 }
 0x124   : > { %556 = vmatpush.bf16.xpose.msrb.mxu3 %v547_v38 }
 0x12b   : > { %v423_v40 = vpop.f32.mrf.mxu2 }
 0x13e   : > { %v460_v61 = vpop.xlane.xlu2 %459 }
 0x171   : > { %v610_v41 = vpop.permute.xlu0 %609 }
 0x172   : > { %v612_v42 = vsel %vm322_vm1, %v610_v41, 0.0 }
 0x173   : > { %613 = vadd.xlane.f32.xlu2 %v612_v42 }
 0x19c   : > { %v405_v46 = vpop.f32.mrf.mxu1  ;;  %v1092_v47 = vpop.f32.mrf.mxu0  ;;  %680 = vxpose.xlu2.c.b16.start.end [1/1] (short) (narrow) %v542_v32, 16 }
 0x19d   : > { %v409_v48 = vsel %vm380_vm5, %v405_v46, 0.0 }
 0x19e   : > { %v410_v49 = vpack.c.bf16 %v409_v48, %v409_v48  ;;  %v451_v50 = vsel %vm430_vm6, %v409_v48, 0.0 }
 0x19f   : > { %452 = vadd.xlane.f32.xlu1 %v451_v50 }
 0x1a0   : > { %875 = vmatmul.msk.bf16.vlgmr.msra.gmra.mxu3 %vm430_vm6, %v410_v49 }
 0x1a1   : > { %673 = vmatpush.bf16.msra.mxu3 %v895_v60 }
 0x1a4   : > { %v407_v51 = vpop.f32.mrf.mxu1  ;;  %v576_v52 = vpop.f32.mrf.mxu0 }
 0x1b0   : > { %877 = vmatmul.msk.bf16.vlgmr.msrb.gmra.mxu3 %vm322_vm1, %v540_v35  ;;  %v538_v35 = vld [vmem:[#allocation3 + $0x1] sm:$0x1] }
 0x1d9   : > { %482 = vxpose.xlu1.c.b16.start.end [1/1] (short) (narrow) %v388_v33, 16  ;;  %v524_v33 = vadd.f32 %v523_v31, %v522_v29 }
 0x1db   : > { %v525_v34 = vrot.slane %v524_v33, 1 }
 0x1dd   : > { %v526_v17 = vadd.f32 %v525_v34, %v524_v33 }
 0x1e6   : > { %v614_v24 = vpop.xlane.xlu2 %613 }
 0x205   : > { %726 = vrot.lane.b32.xlu2 %v724_v59, %s973_s17 }
 0x212   : > { %v453_v62 = vpop.xlane.xlu1 %452 }
 0x213   : > { %v461_v63 = vadd.f32 %v460_v61, %v453_v62 }
 0x215   : > { %v462_v0 = vadd.f32 1e-06, %v461_v63 }
 0x217   : > { %938 = vrcp.f32 %v462_v0  ;;  %v474_v7 = vand.u32 2147483648, %v462_v0  ;;  %v472_v9 = vand.u32 2147483647, %v462_v0  ;;  %vm468_vm9 = vweird.f32 %v462_v0 }
 0x219   : > { %v475_v12 = vor.u32 1.1754944e-38, %v474_v7  ;;  %vm473_vm11 = vcmp.eq.f32.partialorder %v472_v9, 8.507059e+37  ;;  %v933_v9 = vld [vmem:[%s1156_s4] ss:$0 sm:$0xff] }
 0x21d   : > { %v939_v1 = vpop.eup %938 }
 0x21e   : > { %v464_v3 = vmul.f32 %v939_v1, %v462_v0  ;;  %vm469_vm8 = vweird.f32 %v939_v1 }
 0x21f   : > { %vm470_vm10 = vmor %vm468_vm9, %vm469_vm8 }
 0x220   : > { %v465_v6 = vsub.f32 1.0, %v464_v3 }
 0x222   : > { %v466_v8 = vmul.f32 %v939_v1, %v465_v6 }
 0x223   : > { %v447_v10 = vpop.f32.mrf.mxu3 }
 0x224   : > { %v467_v11 = vadd.f32 %v939_v1, %v466_v8  ;;  %v448_v13 = vadd.f32 %v447_v10, %v421_v39  ;;  %v896_v39 = vld [vmem:[%s1155_s3 + $0x8] sm:$0xff] }
 0x225   : > { %651 = vmatpush.bf16.msra.mxu2 %v896_v39 }
 0x226   : > { %v471_v14 = vsel %vm470_vm10, %v939_v1, %v467_v11 }
 0x227   : > { %v476_v15 = vsel %vm473_vm11, %v475_v12, %v471_v14 }
 0x228   : > { %v477_v16 = vmul.f32 %v476_v15, %v448_v13  ;;  %v977_v13 = vmov 32.0  }
 0x22a   : > { %v478_v18 = vpack.c.bf16 %v477_v16, %v477_v16 }
 0x22b   : > { %v449_v19 = vpop.f32.mrf.mxu3 }
 0x22c   : > { %889 = vmatmul.msk.bf16.vlgmr.msra.gmra.mxu3 %vm322_vm1, %v478_v18 }
 0x233   : > { %v558_v21 = vpop.f32.mrf.mxu3 }
 0x234   : > { %v562_v22 = vsel %vm380_vm5, %v558_v21, 0.0 }
 0x235   : > { %v563_v27 = vpack.c.bf16 %v562_v22, %v562_v22  ;;  %v599_v28 = vsel %vm430_vm6, %v562_v22, 0.0 }
 0x236   : > { %600 = vadd.xlane.f32.xlu0 %v599_v28 }
 0x237   : > { %879 = vmatmul.msk.bf16.vlgmr.msrb.gmra.mxu1 %vm430_vm6, %v563_v27 }
 0x23b   : > { %v560_v30 = vpop.f32.mrf.mxu3 }
 0x23d   : > { %v688_v32 = vpop.trf.xlu2 }
 0x23e   : > { %890 = vmatmul.msk.bf16.vlgmr.msra.gmra.mxu0 %vm430_vm6, %v688_v32 }
 0x24a   : > { %528 = vrot.lane.b32.xlu0 %v526_v17, %s974_s18 }
 0x25f   : > { %v727_v36 = vpop.permute.xlu2 %726 }
 0x260   : > { %v729_v37 = vadd.f32 %v727_v36, %v538_v35 }
 0x262   : > { %730 = vst.msk [vmem:[#allocation3 + $0x1] sm:$0x1] %vm327_vm2, %v729_v37 }
 0x285   : > { %v490_v38 = vpop.trf.xlu1 }
 0x286   : > { %876 = vmatmul.msk.bf16.vlgmr.msrb.gmra.mxu2 %vm430_vm6, %v490_v38  ;;  %v935_v38 = vld [vmem:[%s1158_s6] ss:$0 sm:$0xff] }
 0x2a9   : > { %v601_v40 = vpop.xlane.xlu0 %600 }
 0x2aa   : > { %v615_v41 = vadd.f32 %v614_v24, %v601_v40 }
 0x2ac   : > { %v616_v42 = vadd.f32 1e-06, %v615_v41 }
 0x2ae   : > { %940 = vrcp.f32 %v616_v42  ;;  %v628_v50 = vand.u32 2147483648, %v616_v42  ;;  %v626_v52 = vand.u32 2147483647, %v616_v42  ;;  %vm622_vm14 = vweird.f32 %v616_v42 }
 0x2af   : > { %v675_v43 = vpop.f32.mrf.mxu3  ;;  %942 = vrcp.f32 %v977_v13 }
 0x2b0   : > { %v629_v55 = vor.u32 1.1754944e-38, %v628_v50  ;;  %vm627_vm3 = vcmp.eq.f32.partialorder %v626_v52, 8.507059e+37 }
 0x2b4   : > { %v941_v44 = vpop.eup %940  ;;  %v595_v45 = vpop.f32.mrf.mxu1 }
 0x2b5   : > { %v618_v46 = vmul.f32 %v941_v44, %v616_v42  ;;  %vm623_vm13 = vweird.f32 %v941_v44  ;;  %v596_v58 = vadd.f32 %v595_v45, %v1092_v47  ;;  %v331_v47 = vunpack.c.l.bf16 %v1050_v2  ;;  %v943_v14 = vpop.eup %942 }
 0x2b6   : > { %vm624_vm15 = vmor %vm622_vm14, %vm623_vm13 }
 0x2b7   : > { %v619_v48 = vsub.f32 1.0, %v618_v46  ;;  %v677_v49 = vpop.f32.mrf.mxu3 }
 0x2b9   : > { %v620_v51 = vmul.f32 %v941_v44, %v619_v48 }
 0x2bb   : > { %v621_v54 = vadd.f32 %v941_v44, %v620_v51  ;;  %v708_v24 = vpop.f32.mrf.mxu0 }
 0x2bc   : > { %v597_v56 = vpop.f32.mrf.mxu1  ;;  %v529_v57 = vpop.permute.xlu0 %528  ;;  %v713_v28 = vadd.f32 %v708_v24, %v1078_v25  ;;  %v934_v25 = vld [vmem:[%s1157_s5] ss:$0 sm:$0xff] }
 0x2bd   : > { %v625_v59 = vsel %vm624_vm15, %v941_v44, %v621_v54  ;;  %v531_v60 = vadd.f32 %v529_v57, %v383_v53 }
 0x2be   : > { %v630_v61 = vsel %vm627_vm3, %v629_v55, %v625_v59  ;;  %715 = vst.msk [vmem:[#allocation2 + $0x10] sm:$0xff] %vm322_vm1, %v713_v28 }
 0x2bf   : > { %v631_v62 = vmul.f32 %v630_v61, %v596_v58  ;;  %533 = vst.msk [vmem:[#allocation3] sm:$0x1] %vm327_vm2, %v531_v60  ;;  %vm747_vm2 = vweird.f32 %v943_v14 }
 0x2c1   : > { %v632_v63 = vpack.c.bf16 %v631_v62, %v631_v62 }
 0x2c3   : > { %884 = vmatmul.msk.bf16.vlgmr.msra.gmra.mxu2 %vm322_vm1, %v632_v63  ;;  %v710_v27 = vpop.f32.mrf.mxu0 }
 0x2c4   : > { %v714_v29 = vadd.f32 %v710_v27, %v1080_v26 }
 0x2c6   : > { %716 = vst.msk [vmem:[#allocation2 + $0x18] sm:$0xff] %vm322_vm1, %v714_v29 }
 0x309   : > { %v510_v0 = vpop.f32.mrf.mxu2 }
 0x30a   : > { %v515_v1 = vadd.f32 %v510_v0, %v1060_v4 }
 0x30c   : > { %517 = vst.msk [vmem:[#allocation2] sm:$0xff] %vm322_vm1, %v515_v1 }
 0x311   : > { %v512_v3 = vpop.f32.mrf.mxu2 }
 0x312   : > { %v516_v6 = vadd.f32 %v512_v3, %v1062_v5  ;;  %v743_v5 = vmul.f32 32.0, %v943_v14 }
 0x314   : > { %518 = vst.msk [vmem:[#allocation2 + $0x8] sm:$0xff] %vm322_vm1, %v516_v6  ;;  %v744_v15 = vsub.f32 1.0, %v743_v5  ;;  %vm777_vm1 = vcmask 257024  }
 0x316   : > { %v745_v16 = vmul.f32 %v943_v14, %v744_v15 }
 0x318   : > { %v746_v18 = vadd.f32 %v943_v14, %v745_v16 }
 0x31a   : > { %v748_v2 = vsel %vm747_vm2, %v943_v14, %v746_v18 }
 0x346   : > { %v653_v7 = vpop.f32.mrf.mxu2 }
 0x347   : > { %v676_v8 = vadd.f32 %v675_v43, %v653_v7 }
 0x349   : > { %v731_v10 = vadd.f32 %v676_v8, %v331_v47 }
 0x34b   : > { %v736_v11 = vadd.f32 %v933_v9, %v731_v10 }
 0x34d   : > { %v739_v12 = vsel %vm352_vm0, %v736_v11, 0.0 }
 0x34e   : > { %v655_v4 = vpop.f32.mrf.mxu2  ;;  %740 = vadd.xlane.f32.xlu0 %v739_v12 }
 0x3c1   : > { %v741_v19 = vpop.xlane.xlu0 %740 }
 0x3c2   : > { %v749_v20 = vmul.f32 %v748_v2, %v741_v19 }
 0x3c4   : > { %v750_v21 = vsub.f32 %v736_v11, %v749_v20 }
 0x3c6   : > { %v751_v22 = vmul.f32 %v750_v21, %v750_v21 }
 0x3c8   : > { %v752_v23 = vsel %vm352_vm0, %v751_v22, 0.0 }
 0x3c9   : > { %753 = vadd.xlane.f32.xlu1 %v752_v23 }
 0x43c   : > { %v754_v30 = vpop.xlane.xlu1 %753 }
 0x43d   : > { %v755_v31 = vmul.f32 %v754_v30, %v748_v2 }
 0x43f   : > { %v756_v32 = vadd.f32 1e-05, %v755_v31 }
 0x441   : > { %944 = vrsqrt.f32 %v756_v32  ;;  %vm763_vm4 = vweird.f32 %v756_v32 }
 0x447   : > { %v945_v33 = vpop.eup %944 }
 0x448   : > { %v758_v34 = vmul.f32 %v945_v33, %v756_v32  ;;  %vm764_vm0 = vweird.f32 %v945_v33 }
 0x449   : > { %vm765_vm5 = vmor %vm763_vm4, %vm764_vm0 }
 0x44a   : > { %v759_v17 = vmul.f32 %v945_v33, %v758_v34 }
 0x44c   : > { %v760_v35 = vmul.f32 0.5, %v759_v17 }
 0x44e   : > { %v761_v36 = vsub.f32 1.5, %v760_v35 }
 0x450   : > { %v762_v37 = vmul.f32 %v945_v33, %v761_v36 }
 0x452   : > { %v766_v26 = vsel %vm765_vm5, %v945_v33, %v762_v37 }
 0x453   : > { %v767_v39 = vmul.f32 %v766_v26, %v750_v21 }
 0x455   : > { %v771_v40 = vmul.f32 %v934_v25, %v767_v39 }
 0x457   : > { %v775_v41 = vadd.f32 %v935_v38, %v771_v40 }
 0x459   : > { %v776_v42 = vpack.c.bf16 %v775_v41, %v775_v41 }
 0x45b   : > { %778 = vst.msk [vmem:[%s315_s15] sm:$0xf] %vm777_vm1, %v776_v42 }
 0x45c PF: > { %s17_s26 = sadd.s32 1, %s968_s26   ;;  %s1160_s24 = smov %s964_s25 }
 0x45d   : > { %p14_p5 = scmp.ge.s32.totalorder %s17_s26, 4   ;;  %s1161_s25 = smov %s1163_s27 }
 0x45f   :  { %16 = sbr.rel (!%p14_p5) target bundleno = 2 (0x2), region = 84 }

// kernel: run.16
= control target key start
LH: loop header
LB: loop body
LE: loop exit
PB: predicated region body
PF: predicated region fallthrough
CT: control target
= control target key end

     0   :  { %s1002_s24 = smov 0   ;;  %s1004_s25 = smov 0   ;;  %s1136_s0 = inlined_call_operand.vmem [shape: bf16[2,8,32], index: 0, kind: input, shape index: {}]   ;;  %s1137_s1 = inlined_call_operand.vmem [shape: bf16[32,96], index: 1, kind: input, shape index: {}]   ;;  %s1138_s2 = inlined_call_operand.vmem [shape: f32[1,96], index: 2, kind: input, shape index: {}]   ;;  %s1139_s3 = inlined_call_operand.vmem [shape: bf16[32,32], index: 3, kind: input, shape index: {}]   ;;  %s1140_s4 = inlined_call_operand.vmem [shape: f32[1,32], index: 4, kind: input, shape index: {}]   ;;  %s1141_s5 = inlined_call_operand.vmem [shape: f32[1,32], index: 5, kind: input, shape index: {}]   ;;  %s1142_s6 = inlined_call_operand.vmem [shape: f32[1,32], index: 6, kind: input, shape index: {}]   ;;  %s1143_s7 = inlined_call_operand.vmem [shape: bf16[2,8,32], index: 7, kind: output, shape index: {}]  }
   0x1   :  { %s1006_s26 = smov 0  }
   0x2 LB: > { %s29_s27 = sadd.s32 1, %s948_s25  ;;  %p845_p0 = scmp.ge.s32.totalorder %s952_s26, 1  ;;  %s952_s26 = sphi %s1006_s26, %s17_s26   ;;  %s948_s25 = sphi %s1004_s25, %s1145_s25   ;;  %s944_s24 = sphi %s1002_s24, %s1144_s24  }
   0x3   : > { %p31_p1 = scmp.ge.s32.totalorder %s29_s27, 2  ;;  %p255_p2 = scmp.lt.s32.totalorder %s952_s26, 3 }
   0x5   : > { %s1147_s27 = smov (%p31_p1, %s29_s27), 0  ;;  %p256_p3 = pnand %p845_p0, %p255_p2 }
   0x6   : > { %p291_p4 = scmp.lt.s32.totalorder (!%p256_p3), %s944_s24, 1  ;;  %s955_s15 = smov (!%p256_p3), 48  }
   0x7   : > { %259 = sbr.rel (%p256_p3) target bundleno = 1116 (0x45c), region = 48  ;;  %s956_s16 = smov (!%p256_p3), 16  }
   0x8   : > { %s957_s17 = smov (!%p256_p3), 80   ;;  %s958_s18 = smov (!%p256_p3), 96  }
   0x9   : > { %s959_s19 = smov (!%p256_p3), 112   ;;  %s960_s20 = smov (!%p256_p3), 64  }
   0xc   : > { %v878_v0 = vld [vmem:[%s1137_s1 + $0x8] sm:$0xff]  ;;  %v877_v1 = vld [vmem:[%s1137_s1] sm:$0xff]  ;;  %s1149_s24 = smov (!%p291_p4, %s944_s24), 1  ;;  %vm340_vm0 = vcmask 261120   ;;  %vm310_vm1 = vcmask 130048   ;;  %v954_v3 = vmov 0.0   ;;  %v364_v43 = vlaneseq }
   0xd   : > { %350 = vmatpush.bf16.msra.mxu0 %v878_v0  ;;  %s846_s9 = sshll.u32 %s1149_s24, 2  ;;  %311 = vst.msk [vmem:[#allocation2] sm:$0xff] %vm310_vm1, %v954_v3  ;;  %vm315_vm2 = vcmask 122880   ;;  %v914_v7 = vld [vmem:[%s1138_s2] ss:$0 sm:$0xff]  ;;  %vm422_vm4 = vcmask 1043456  }
   0xe   : > { %s297_s12 = scalar_lea.vmem %s1136_s0, %s846_s9  ;;  %312 = vst.msk [vmem:[#allocation2 + $0x8] sm:$0xff] %vm310_vm1, %v954_v3  ;;  %v365_v44 = vshrl.u32 %v364_v43, 7  ;;  %v367_v45 = vand.u32 127, %v364_v43  ;;  %vm418_vm6 = vcmask 64512   ;;  %vm705_vm7 = vcmask 523648   ;;  %v879_v60 = vld [vmem:[%s1139_s3] sm:$0xff] }
   0xf   : > { %v1034_v2 = vld [vmem:[%s297_s12] sm:$0xf]  ;;  %313 = vst.msk [vmem:[#allocation2 + $0x10] sm:$0xff] %vm310_vm1, %v954_v3  ;;  %vm507_vm12 = vcmask 392448  }
  0x10   : > { %314 = vst.msk [vmem:[#allocation2 + $0x18] sm:$0xff] %vm310_vm1, %v954_v3  ;;  %vm368_vm5 = vcmp.le.s32.totalorder %v367_v45, %v365_v44 }
  0x11   : > { %351 = vmatpush.bf16.msra.mxu0 %v877_v1  ;;  %317 = vst.msk [vmem:[#allocation3 + $0x1] sm:$0x1] %vm315_vm2, %v954_v3 }
  0x12   : > { %316 = vst.msk [vmem:[#allocation3] sm:$0x1] %vm315_vm2, %v954_v3 }
  0x14   : > { %856 = vmatmul.msk.bf16.vlgmr.msra.gmra.mxu0 %vm340_vm0, %v1034_v2  ;;  %v1044_v4 = vld [vmem:[#allocation2] sm:$0xff] }
  0x15   : > { %v1046_v5 = vld [vmem:[#allocation2 + $0x8] sm:$0xff] }
  0x16   : > { %v399_v6 = vpack.c.bf16 %v1046_v5, %v1044_v4  ;;  %v1062_v25 = vld [vmem:[#allocation2 + $0x10] sm:$0xff] }
  0x17   : > { %v1064_v26 = vld [vmem:[#allocation2 + $0x18] sm:$0xff] }
  0x18   : > { %407 = vmatpush.bf16.msra.mxu2 %v399_v6  ;;  %v915_v19 = vld [vmem:[#allocation3 + $0x1] ss:$0 sm:$0xff]  ;;  %v552_v27 = vpack.c.bf16 %v1064_v26, %v1062_v25 }
  0x19   : > { %v916_v22 = vld [vmem:[#allocation3] ss:$0 sm:$0xff] }
  0x1a   : > { %560 = vmatpush.bf16.msrb.mxu0 %v552_v27 }
  0x91   : > { %v353_v8 = vpop.f32.mrf.mxu0 }
  0x92   : > { %v354_v9 = vadd.f32 %v914_v7, %v353_v8 }
  0x94   : > { %v359_v10 = vmul.f32 1.442695, %v354_v9  ;;  %v363_v11 = vpack.c.bf16 %v354_v9, %v354_v9  ;;  %v358_v15 = vadd.f32 1.0, %v354_v9  ;;  %vm357_vm3 = vcmp.gt.f32.partialorder %v354_v9, 0.0 }
  0x96   : > { %920 = vpow2.f32 %v359_v10  ;;  %v414_v12 = vunpack.c.l.b16 %v363_v11 }
  0x98   : > { %v415_v13 = vpack.c.b16 %v414_v12, %v414_v12 }
  0x99   : > { %v355_v14 = vpop.f32.mrf.mxu0 }
  0x9a   : > { %566 = vrot.lane.b32.xlu2 %v415_v13, %s955_s15  ;;  %s304_s15 = scalar_lea.vmem %s1143_s7, %s846_s9 }
  0x9c   : > { %v921_v16 = vpop.eup %920 }
  0x9d   : > { %v1053_v17 = vsel %vm357_vm3, %v358_v15, %v921_v16 }
  0x9e   : > { %v362_v18 = vpack.c.bf16 %v1053_v17, %v1053_v17  ;;  %v445_v23 = vmul.f32 %v916_v22, %v1053_v17  ;;  %v706_v53 = vsel %vm705_vm7, %v1053_v17, 0.0 }
  0x9f   : > { %v707_v54 = vrot.slane %v706_v53, 4 }
  0xa0   : > { %858 = vmatmul.msk.bf16.vlgmr.msra.gmra.mxu2 %vm310_vm1, %v362_v18  ;;  %v373_v20 = vunpack.c.l.b16 %v362_v18  ;;  %v446_v24 = vsel %vm310_vm1, %v445_v23, 0.0 }
  0xa1   : > { %v708_v55 = vadd.f32 %v707_v54, %v706_v53  ;;  %v371_v53 = vld [vmem:[#allocation3] sm:$0x1] }
  0xa2   : > { %592 = vrot.lane.b32.xlu2 %v915_v19, %s956_s16  ;;  %v374_v21 = vpack.c.b16 %v373_v20, %v373_v20  ;;  %v508_v20 = vsel %vm507_vm12, %v1053_v17, 0.0 }
  0xa3   : > { %v709_v56 = vrot.slane %v708_v55, 2  ;;  %v509_v23 = vrot.slane %v508_v20, 4 }
  0xa4   : > { %529 = vrot.lane.b32.xlu1 %v374_v21, %s957_s17  ;;  %375 = vrot.lane.b32.xlu0 %v374_v21, %s958_s18 }
  0xa5   : > { %v710_v57 = vadd.f32 %v709_v56, %v708_v55 }
  0xa7   : > { %v711_v58 = vrot.slane %v710_v57, 1 }
  0xa9   : > { %v712_v59 = vadd.f32 %v711_v58, %v710_v57 }
  0xac   : > { %527 = vrot.lane.b32.xlu1 %v374_v21, %s959_s19  ;;  %416 = vrot.lane.b32.xlu0 %v415_v13, %s960_s20 }
  0xcb   : > { %447 = vadd.xlane.f32.xlu2 %v446_v24 }
  0xf4   : > { %v567_v28 = vpop.permute.xlu2 %566 }
  0xf5   : > { %v572_v29 = vsel %vm422_vm4, %v567_v28, 0 }
  0xf6   : > { %694 = vmatpush.bf16.msra.mxu0 %v572_v29 }
  0xfc   : > { %v593_v30 = vpop.permute.xlu2 %592 }
  0xfd   : > { %v595_v31 = vmul.f32 %v593_v30, %v1053_v17 }
  0xff   : > { %597 = vrot.lane.b32.xlu0 %v595_v31, %s959_s19 }
 0x116   : > { %v530_v32 = vpop.permute.xlu1 %529  ;;  %v376_v33 = vpop.permute.xlu0 %375 }
 0x117   : > { %v382_v34 = vsel %vm310_vm1, %v376_v33, 0  ;;  %v535_v38 = vsel %vm310_vm1, %v530_v32, 0 }
 0x118   : > { %391 = vmatpush.bf16.xpose.msra.mxu1 %v382_v34 }
 0x11e   : > { %v528_v35 = vpop.permute.xlu1 %527  ;;  %v417_v36 = vpop.permute.xlu0 %416 }
 0x11f   : > { %857 = vmatmul.msk.bf16.vlgmr.msra.gmra.mxu1 %vm310_vm1, %v362_v18  ;;  %862 = vmatmul.msk.bf16.vlgmr.msrb.gmra.mxu0 %vm310_vm1, %v528_v35  ;;  %v424_v37 = vsel %vm422_vm4, %v417_v36, 0 }
 0x120   : > { %581 = vmatpush.bf16.msrb.mxu1 %v572_v29  ;;  %433 = vmatpush.bf16.msra.mxu3 %v424_v37  ;;  %v510_v29 = vadd.f32 %v509_v23, %v508_v20 }
 0x121   : > { %496 = vmatpush.bf16.msrb.mxu2 %v424_v37 }
 0x122   : > { %v511_v31 = vrot.slane %v510_v29, 2 }
 0x123   : > { %v409_v39 = vpop.f32.mrf.mxu2 }
 0x124   : > { %544 = vmatpush.bf16.xpose.msrb.mxu3 %v535_v38 }
 0x12b   : > { %v411_v40 = vpop.f32.mrf.mxu2 }
 0x13e   : > { %v448_v61 = vpop.xlane.xlu2 %447 }
 0x171   : > { %v598_v41 = vpop.permute.xlu0 %597 }
 0x172   : > { %v600_v42 = vsel %vm310_vm1, %v598_v41, 0.0 }
 0x173   : > { %601 = vadd.xlane.f32.xlu2 %v600_v42 }
 0x19c   : > { %v393_v46 = vpop.f32.mrf.mxu1  ;;  %v1076_v47 = vpop.f32.mrf.mxu0  ;;  %668 = vxpose.xlu2.c.b16.start.end [1/1] (short) (narrow) %v530_v32, 16 }
 0x19d   : > { %v397_v48 = vsel %vm368_vm5, %v393_v46, 0.0 }
 0x19e   : > { %v398_v49 = vpack.c.bf16 %v397_v48, %v397_v48  ;;  %v439_v50 = vsel %vm418_vm6, %v397_v48, 0.0 }
 0x19f   : > { %440 = vadd.xlane.f32.xlu1 %v439_v50 }
 0x1a0   : > { %859 = vmatmul.msk.bf16.vlgmr.msra.gmra.mxu3 %vm418_vm6, %v398_v49 }
 0x1a1   : > { %661 = vmatpush.bf16.msra.mxu3 %v879_v60 }
 0x1a4   : > { %v395_v51 = vpop.f32.mrf.mxu1  ;;  %v564_v52 = vpop.f32.mrf.mxu0 }
 0x1b0   : > { %861 = vmatmul.msk.bf16.vlgmr.msrb.gmra.mxu3 %vm310_vm1, %v528_v35  ;;  %v526_v35 = vld [vmem:[#allocation3 + $0x1] sm:$0x1] }
 0x1d9   : > { %470 = vxpose.xlu1.c.b16.start.end [1/1] (short) (narrow) %v376_v33, 16  ;;  %v512_v33 = vadd.f32 %v511_v31, %v510_v29 }
 0x1db   : > { %v513_v34 = vrot.slane %v512_v33, 1 }
 0x1dd   : > { %v514_v17 = vadd.f32 %v513_v34, %v512_v33 }
 0x1e6   : > { %v602_v24 = vpop.xlane.xlu2 %601 }
 0x205   : > { %714 = vrot.lane.b32.xlu2 %v712_v59, %s957_s17 }
 0x212   : > { %v441_v62 = vpop.xlane.xlu1 %440 }
 0x213   : > { %v449_v63 = vadd.f32 %v448_v61, %v441_v62 }
 0x215   : > { %v450_v0 = vadd.f32 1e-06, %v449_v63 }
 0x217   : > { %922 = vrcp.f32 %v450_v0  ;;  %v462_v7 = vand.u32 2147483648, %v450_v0  ;;  %v460_v9 = vand.u32 2147483647, %v450_v0  ;;  %vm456_vm9 = vweird.f32 %v450_v0 }
 0x219   : > { %v463_v12 = vor.u32 1.1754944e-38, %v462_v7  ;;  %vm461_vm11 = vcmp.eq.f32.partialorder %v460_v9, 8.507059e+37  ;;  %v917_v9 = vld [vmem:[%s1140_s4] ss:$0 sm:$0xff] }
 0x21d   : > { %v923_v1 = vpop.eup %922 }
 0x21e   : > { %v452_v3 = vmul.f32 %v923_v1, %v450_v0  ;;  %vm457_vm8 = vweird.f32 %v923_v1 }
 0x21f   : > { %vm458_vm10 = vmor %vm456_vm9, %vm457_vm8 }
 0x220   : > { %v453_v6 = vsub.f32 1.0, %v452_v3 }
 0x222   : > { %v454_v8 = vmul.f32 %v923_v1, %v453_v6 }
 0x223   : > { %v435_v10 = vpop.f32.mrf.mxu3 }
 0x224   : > { %v455_v11 = vadd.f32 %v923_v1, %v454_v8  ;;  %v436_v13 = vadd.f32 %v435_v10, %v409_v39  ;;  %v880_v39 = vld [vmem:[%s1139_s3 + $0x8] sm:$0xff] }
 0x225   : > { %639 = vmatpush.bf16.msra.mxu2 %v880_v39 }
 0x226   : > { %v459_v14 = vsel %vm458_vm10, %v923_v1, %v455_v11 }
 0x227   : > { %v464_v15 = vsel %vm461_vm11, %v463_v12, %v459_v14 }
 0x228   : > { %v465_v16 = vmul.f32 %v464_v15, %v436_v13  ;;  %v961_v13 = vmov 32.0  }
 0x22a   : > { %v466_v18 = vpack.c.bf16 %v465_v16, %v465_v16 }
 0x22b   : > { %v437_v19 = vpop.f32.mrf.mxu3 }
 0x22c   : > { %873 = vmatmul.msk.bf16.vlgmr.msra.gmra.mxu3 %vm310_vm1, %v466_v18 }
 0x233   : > { %v546_v21 = vpop.f32.mrf.mxu3 }
 0x234   : > { %v550_v22 = vsel %vm368_vm5, %v546_v21, 0.0 }
 0x235   : > { %v551_v27 = vpack.c.bf16 %v550_v22, %v550_v22  ;;  %v587_v28 = vsel %vm418_vm6, %v550_v22, 0.0 }
 0x236   : > { %588 = vadd.xlane.f32.xlu0 %v587_v28 }
 0x237   : > { %863 = vmatmul.msk.bf16.vlgmr.msrb.gmra.mxu1 %vm418_vm6, %v551_v27 }
 0x23b   : > { %v548_v30 = vpop.f32.mrf.mxu3 }
 0x23d   : > { %v676_v32 = vpop.trf.xlu2 }
 0x23e   : > { %874 = vmatmul.msk.bf16.vlgmr.msra.gmra.mxu0 %vm418_vm6, %v676_v32 }
 0x24a   : > { %516 = vrot.lane.b32.xlu0 %v514_v17, %s958_s18 }
 0x25f   : > { %v715_v36 = vpop.permute.xlu2 %714 }
 0x260   : > { %v717_v37 = vadd.f32 %v715_v36, %v526_v35 }
 0x262   : > { %718 = vst.msk [vmem:[#allocation3 + $0x1] sm:$0x1] %vm315_vm2, %v717_v37 }
 0x285   : > { %v478_v38 = vpop.trf.xlu1 }
 0x286   : > { %860 = vmatmul.msk.bf16.vlgmr.msrb.gmra.mxu2 %vm418_vm6, %v478_v38  ;;  %v919_v38 = vld [vmem:[%s1142_s6] ss:$0 sm:$0xff] }
 0x2a9   : > { %v589_v40 = vpop.xlane.xlu0 %588 }
 0x2aa   : > { %v603_v41 = vadd.f32 %v602_v24, %v589_v40 }
 0x2ac   : > { %v604_v42 = vadd.f32 1e-06, %v603_v41 }
 0x2ae   : > { %924 = vrcp.f32 %v604_v42  ;;  %v616_v50 = vand.u32 2147483648, %v604_v42  ;;  %v614_v52 = vand.u32 2147483647, %v604_v42  ;;  %vm610_vm14 = vweird.f32 %v604_v42 }
 0x2af   : > { %v663_v43 = vpop.f32.mrf.mxu3  ;;  %926 = vrcp.f32 %v961_v13 }
 0x2b0   : > { %v617_v55 = vor.u32 1.1754944e-38, %v616_v50  ;;  %vm615_vm3 = vcmp.eq.f32.partialorder %v614_v52, 8.507059e+37 }
 0x2b4   : > { %v925_v44 = vpop.eup %924  ;;  %v583_v45 = vpop.f32.mrf.mxu1 }
 0x2b5   : > { %v606_v46 = vmul.f32 %v925_v44, %v604_v42  ;;  %vm611_vm13 = vweird.f32 %v925_v44  ;;  %v584_v58 = vadd.f32 %v583_v45, %v1076_v47  ;;  %v319_v47 = vunpack.c.l.bf16 %v1034_v2  ;;  %v927_v14 = vpop.eup %926 }
 0x2b6   : > { %vm612_vm15 = vmor %vm610_vm14, %vm611_vm13 }
 0x2b7   : > { %v607_v48 = vsub.f32 1.0, %v606_v46  ;;  %v665_v49 = vpop.f32.mrf.mxu3 }
 0x2b9   : > { %v608_v51 = vmul.f32 %v925_v44, %v607_v48 }
 0x2bb   : > { %v609_v54 = vadd.f32 %v925_v44, %v608_v51  ;;  %v696_v24 = vpop.f32.mrf.mxu0 }
 0x2bc   : > { %v585_v56 = vpop.f32.mrf.mxu1  ;;  %v517_v57 = vpop.permute.xlu0 %516  ;;  %v701_v28 = vadd.f32 %v696_v24, %v1062_v25  ;;  %v918_v25 = vld [vmem:[%s1141_s5] ss:$0 sm:$0xff] }
 0x2bd   : > { %v613_v59 = vsel %vm612_vm15, %v925_v44, %v609_v54  ;;  %v519_v60 = vadd.f32 %v517_v57, %v371_v53 }
 0x2be   : > { %v618_v61 = vsel %vm615_vm3, %v617_v55, %v613_v59  ;;  %703 = vst.msk [vmem:[#allocation2 + $0x10] sm:$0xff] %vm310_vm1, %v701_v28 }
 0x2bf   : > { %v619_v62 = vmul.f32 %v618_v61, %v584_v58  ;;  %521 = vst.msk [vmem:[#allocation3] sm:$0x1] %vm315_vm2, %v519_v60  ;;  %vm735_vm2 = vweird.f32 %v927_v14 }
 0x2c1   : > { %v620_v63 = vpack.c.bf16 %v619_v62, %v619_v62 }
 0x2c3   : > { %868 = vmatmul.msk.bf16.vlgmr.msra.gmra.mxu2 %vm310_vm1, %v620_v63  ;;  %v698_v27 = vpop.f32.mrf.mxu0 }
 0x2c4   : > { %v702_v29 = vadd.f32 %v698_v27, %v1064_v26 }
 0x2c6   : > { %704 = vst.msk [vmem:[#allocation2 + $0x18] sm:$0xff] %vm310_vm1, %v702_v29 }
 0x309   : > { %v498_v0 = vpop.f32.mrf.mxu2 }
 0x30a   : > { %v503_v1 = vadd.f32 %v498_v0, %v1044_v4 }
 0x30c   : > { %505 = vst.msk [vmem:[#allocation2] sm:$0xff] %vm310_vm1, %v503_v1 }
 0x311   : > { %v500_v3 = vpop.f32.mrf.mxu2 }
 0x312   : > { %v504_v6 = vadd.f32 %v500_v3, %v1046_v5  ;;  %v731_v5 = vmul.f32 32.0, %v927_v14 }
 0x314   : > { %506 = vst.msk [vmem:[#allocation2 + $0x8] sm:$0xff] %vm310_vm1, %v504_v6  ;;  %v732_v15 = vsub.f32 1.0, %v731_v5  ;;  %vm765_vm1 = vcmask 257024  }
 0x316   : > { %v733_v16 = vmul.f32 %v927_v14, %v732_v15 }
 0x318   : > { %v734_v18 = vadd.f32 %v927_v14, %v733_v16 }
 0x31a   : > { %v736_v2 = vsel %vm735_vm2, %v927_v14, %v734_v18 }
 0x346   : > { %v641_v7 = vpop.f32.mrf.mxu2 }
 0x347   : > { %v664_v8 = vadd.f32 %v663_v43, %v641_v7 }
 0x349   : > { %v719_v10 = vadd.f32 %v664_v8, %v319_v47 }
 0x34b   : > { %v724_v11 = vadd.f32 %v917_v9, %v719_v10 }
 0x34d   : > { %v727_v12 = vsel %vm340_vm0, %v724_v11, 0.0 }
 0x34e   : > { %v643_v4 = vpop.f32.mrf.mxu2  ;;  %728 = vadd.xlane.f32.xlu0 %v727_v12 }
 0x3c1   : > { %v729_v19 = vpop.xlane.xlu0 %728 }
 0x3c2   : > { %v737_v20 = vmul.f32 %v736_v2, %v729_v19 }
 0x3c4   : > { %v738_v21 = vsub.f32 %v724_v11, %v737_v20 }
 0x3c6   : > { %v739_v22 = vmul.f32 %v738_v21, %v738_v21 }
 0x3c8   : > { %v740_v23 = vsel %vm340_vm0, %v739_v22, 0.0 }
 0x3c9   : > { %741 = vadd.xlane.f32.xlu1 %v740_v23 }
 0x43c   : > { %v742_v30 = vpop.xlane.xlu1 %741 }
 0x43d   : > { %v743_v31 = vmul.f32 %v742_v30, %v736_v2 }
 0x43f   : > { %v744_v32 = vadd.f32 1e-05, %v743_v31 }
 0x441   : > { %928 = vrsqrt.f32 %v744_v32  ;;  %vm751_vm4 = vweird.f32 %v744_v32 }
 0x447   : > { %v929_v33 = vpop.eup %928 }
 0x448   : > { %v746_v34 = vmul.f32 %v929_v33, %v744_v32  ;;  %vm752_vm0 = vweird.f32 %v929_v33 }
 0x449   : > { %vm753_vm5 = vmor %vm751_vm4, %vm752_vm0 }
 0x44a   : > { %v747_v17 = vmul.f32 %v929_v33, %v746_v34 }
 0x44c   : > { %v748_v35 = vmul.f32 0.5, %v747_v17 }
 0x44e   : > { %v749_v36 = vsub.f32 1.5, %v748_v35 }
 0x450   : > { %v750_v37 = vmul.f32 %v929_v33, %v749_v36 }
 0x452   : > { %v754_v26 = vsel %vm753_vm5, %v929_v33, %v750_v37 }
 0x453   : > { %v755_v39 = vmul.f32 %v754_v26, %v738_v21 }
 0x455   : > { %v759_v40 = vmul.f32 %v918_v25, %v755_v39 }
 0x457   : > { %v763_v41 = vadd.f32 %v919_v38, %v759_v40 }
 0x459   : > { %v764_v42 = vpack.c.bf16 %v763_v41, %v763_v41 }
 0x45b   : > { %766 = vst.msk [vmem:[%s304_s15] sm:$0xf] %vm765_vm1, %v764_v42 }
 0x45c PF: > { %s17_s26 = sadd.s32 1, %s952_s26   ;;  %s1144_s24 = smov %s948_s25 }
 0x45d   : > { %p14_p5 = scmp.ge.s32.totalorder %s17_s26, 4   ;;  %s1145_s25 = smov %s1147_s27 }
 0x45f   :  { %16 = sbr.rel (!%p14_p5) target bundleno = 2 (0x2), region = 84 }

// kernel: squeeze.1
= control target key start
LH: loop header
LB: loop body
LE: loop exit
PB: predicated region body
PF: predicated region fallthrough
CT: control target
= control target key end

     0   :  { %s34_s8 = smov 125   ;;  %s35_s9 = smov 126   ;;  %vm7_vm0 = vcmask 7168   ;;  %s61_s0 = inlined_call_operand.vmem [shape: s32[2,4], index: 0, kind: input, shape index: {}]   ;;  %s62_s1 = inlined_call_operand.vmem [shape: s32[8,1], index: 1, kind: output, shape index: {}]  }
   0x1   :  { %v4_v0 = vld [vmem:[%s61_s0] sm:$0x3]  ;;  %s33_s0 = smov 127  }
   0x2   :  { %5 = vst [vmem:[#allocation0] sm:$0x3] %v4_v0 }
   0x9   :  { %v9_v1 = vld [vmem:[#allocation0] sm:$0x3]  }
   0xa   :  { %v21_v2 = vld [vmem:[#allocation0] sm:$0x3]   ;;  %10 = vrot.lane.b32.xlu0 %v9_v1, %s33_s0 }
   0xb   :  { %22 = vrot.lane.b32.xlu1 %v21_v2, %s34_s8  ;;  %v15_v3 = vld [vmem:[#allocation0] sm:$0x3]  }
   0xc   :  { %v6_v4 = vld [vmem:[#allocation0] sm:$0x3]  }
   0xd   :  { %8 = vst.msk [vmem:[%s62_s1] ss:$4 sm:$0x3] %vm7_vm0, %v6_v4  }
  0x12   :  { %16 = vrot.lane.b32.xlu0 %v15_v3, %s35_s9 }
  0x7c   :  { %v11_v5 = vpop.permute.xlu0 %10  }
  0x7d   :  { %v23_v6 = vpop.permute.xlu1 %22   ;;  %27 = vst.msk [vmem:[%s62_s1 + $0x1] ss:$4 sm:$0x3] %vm7_vm0, %v11_v5  }
  0x7e   :  { %29 = vst.msk [vmem:[%s62_s1 + $0x3] ss:$4 sm:$0x3] %vm7_vm0, %v23_v6  }
  0x84   :  { %v17_v7 = vpop.permute.xlu0 %16  }
  0x85   :  { %28 = vst.msk [vmem:[%s62_s1 + $0x2] ss:$4 sm:$0x3] %vm7_vm0, %v17_v7  }

// kernel: run.18
= control target key start
LH: loop header
LB: loop body
LE: loop exit
PB: predicated region body
PF: predicated region fallthrough
CT: control target
= control target key end

     0   :  { %12 = vsyncpa [#allocation3], 0  ;;  %s466_s0 = inlined_call_operand.vmem [shape: bf16[16,32], index: 0, kind: input, shape index: {}]   ;;  %s467_s1 = inlined_call_operand.vmem [shape: bf16[32,64], index: 1, kind: input, shape index: {}]   ;;  %s468_s2 = inlined_call_operand.vmem [shape: f32[1,64], index: 2, kind: input, shape index: {}]   ;;  %s469_s3 = inlined_call_operand.vmem [shape: bf16[64,32], index: 3, kind: input, shape index: {}]   ;;  %s470_s4 = inlined_call_operand.hbm [shape: f32[1,32], index: 4, kind: input, shape index: {}]   ;;  %s471_s5 = inlined_call_operand.hbm [shape: f32[1,32], index: 5, kind: input, shape index: {}]   ;;  %s472_s6 = inlined_call_operand.hbm [shape: f32[1,32], index: 6, kind: input, shape index: {}]   ;;  %s473_s7 = inlined_call_operand.vmem [shape: bf16[16,32], index: 7, kind: output, shape index: {}]  }
   0x1   :  { %13 = vsyncpa [#allocation5], 0  ;;  %s38_s26 = sshll.u32 %s471_s5, 4  ;;  %s375_s27 = smov [#allocation4]   ;;  %s39_s26 = int_to_ptr.hbm [resolvable:$true] %s38_s26 }
   0x2   :  { %s40_s28 = sshll.u32 %s375_s27, 4  ;;  %s27_s8 = sshll.u32 %s470_s4, 4  ;;  %s41_s28 = int_to_ptr.vmem [resolvable:$true] %s40_s28  ;;  %s28_s8 = int_to_ptr.hbm [resolvable:$true] %s27_s8 }
   0x3   :  { %43 = dma.hbm_to_vmem [thread:$0]  %s39_s26, 16, %s41_s28, [#allocation5]  }
   0x4   :  { %s376_s9 = smov [#allocation2]   ;;  %s49_s13 = sshll.u32 %s472_s6, 4  ;;  %s50_s13 = int_to_ptr.hbm [resolvable:$true] %s49_s13 }
   0x5   :  { %s29_s10 = sshll.u32 %s376_s9, 4  ;;  %s377_s5 = smov [#allocation6]   ;;  %s30_s10 = int_to_ptr.vmem [resolvable:$true] %s29_s10 }
   0x6   :  { %32 = dma.hbm_to_vmem [thread:$0]  %s28_s8, 16, %s30_s10, [#allocation3]  }
   0x7   :  { %s51_s14 = sshll.u32 %s377_s5, 4  ;;  %s52_s14 = int_to_ptr.vmem [resolvable:$true] %s51_s14 }
   0x8   :  { %54 = dma.hbm_to_vmem [thread:$0]  %s50_s13, 16, %s52_s14, [#allocation5]  }
   0x9   :  { %371 = dma.done.wait [#allocation3], 16  }
   0xa   :  { %372 = vsyncadd [#allocation3], 4294967280 }
   0xb   :  { %373 = dma.done.wait [#allocation5], 32  }
   0xc   :  { %374 = vsyncadd [#allocation5], 4294967264  ;;  %v280_v0 = vld [vmem:[%s467_s1 + $0x8] sm:$0xff]  ;;  %v279_v1 = vld [vmem:[%s467_s1] sm:$0xff]  ;;  %vm97_vm0 = vcmask 261120   ;;  %vm154_vm1 = vcmask 523264  }
   0xd   :  { %107 = vmatpush.bf16.msra.mxu0 %v280_v0  ;;  %v278_v2 = vld [vmem:[%s466_s0] sm:$0xff]  ;;  %v284_v3 = vld [vmem:[%s469_s3 + $0x18] sm:$0xff]  ;;  %v283_v4 = vld [vmem:[%s469_s3 + $0x10] sm:$0xff]  ;;  %v378_v27 = vmov 32.0   ;;  %vm239_vm7 = vcmask 257024  }
   0xe   :  { %162 = vmatpush.bf16.msra.mxu1 %v284_v3  ;;  %v282_v5 = vld [vmem:[%s469_s3 + $0x8] sm:$0xff]  ;;  %v281_v6 = vld [vmem:[%s469_s3] sm:$0xff]  ;;  %293 = vrcp.f32 %v378_v27 }
   0xf   :  { %v289_v8 = vld [vmem:[%s468_s2] ss:$0 sm:$0xff]  ;;  %v291_v58 = vld [vmem:[#allocation4] ss:$0 sm:$0xff]  ;;  %v292_v61 = vld [vmem:[#allocation6] ss:$0 sm:$0xff] }
  0x10   :  { %v68_v15 = vld [vmem:[%s466_s0] sm:$0xff]  }
  0x11   :  { %108 = vmatpush.bf16.msra.mxu0 %v279_v1  ;;  %v290_v16 = vld [vmem:[#allocation2] ss:$0 sm:$0xff]  ;;  %v70_v17 = vunpack.c.l.bf16 %v68_v15  ;;  %v71_v22 = vunpack.c.h.bf16 %v68_v15 }
  0x12   :  { %163 = vmatpush.bf16.msra.mxu1 %v283_v4 }
  0x14   :  { %260 = vmatmul.msk.bf16.vlgmr.msra.gmra.mxu0 %vm97_vm0, %v278_v2  ;;  %v294_v28 = vpop.eup %293 }
  0x15   :  { %v183_v29 = vmul.f32 32.0, %v294_v28  ;;  %vm187_vm2 = vweird.f32 %v294_v28 }
  0x16   :  { %164 = vmatpush.bf16.msra.mxu1 %v282_v5 }
  0x17   :  { %v184_v30 = vsub.f32 1.0, %v183_v29 }
  0x19   :  { %v185_v31 = vmul.f32 %v294_v28, %v184_v30 }
  0x1a   :  { %165 = vmatpush.bf16.msra.mxu1 %v281_v6 }
  0x1b   :  { %v186_v32 = vadd.f32 %v294_v28, %v185_v31 }
  0x1d   :  { %v188_v33 = vsel %vm187_vm2, %v294_v28, %v186_v32 }
  0x91   :  { %v110_v7 = vpop.f32.mrf.mxu0 }
  0x92   :  { %v111_v9 = vadd.f32 %v289_v8, %v110_v7 }
  0x94   :  { %v115_v12 = vmax.f32 %v111_v9, 0.0 }
  0x99   :  { %v112_v10 = vpop.f32.mrf.mxu0 }
  0x9a   :  { %v113_v11 = vadd.f32 %v289_v8, %v112_v10 }
  0x9c   :  { %v116_v13 = vmax.f32 %v113_v11, 0.0 }
  0x9e   :  { %v117_v14 = vpack.c.bf16 %v116_v13, %v115_v12 }
  0xa0   :  { %277 = vmatmul.msk.bf16.vlgmr.msra.gmra.mxu1 %vm154_vm1, %v117_v14 }
 0x11d   :  { %v167_v18 = vpop.f32.mrf.mxu1 }
 0x11e   :  { %v168_v19 = vadd.f32 %v290_v16, %v167_v18 }
 0x120   :  { %v172_v20 = vadd.f32 %v168_v19, %v70_v17 }
 0x122   :  { %v176_v21 = vsel %vm97_vm0, %v172_v20, 0.0 }
 0x123   :  { %177 = vadd.xlane.f32.xlu0 %v176_v21 }
 0x125   :  { %v169_v23 = vpop.f32.mrf.mxu1 }
 0x126   :  { %v170_v24 = vadd.f32 %v290_v16, %v169_v23 }
 0x128   :  { %v173_v25 = vadd.f32 %v170_v24, %v71_v22 }
 0x12a   :  { %v179_v26 = vsel %vm97_vm0, %v173_v25, 0.0 }
 0x12b   :  { %180 = vadd.xlane.f32.xlu0 %v179_v26 }
 0x196   :  { %v178_v34 = vpop.xlane.xlu0 %177 }
 0x197   :  { %v189_v35 = vmul.f32 %v188_v33, %v178_v34 }
 0x199   :  { %v191_v36 = vsub.f32 %v172_v20, %v189_v35 }
 0x19b   :  { %v193_v37 = vmul.f32 %v191_v36, %v191_v36 }
 0x19d   :  { %v195_v38 = vsel %vm97_vm0, %v193_v37, 0.0 }
 0x19e   :  { %196 = vadd.xlane.f32.xlu1 %v195_v38  ;;  %v181_v39 = vpop.xlane.xlu0 %180 }
 0x19f   :  { %v190_v40 = vmul.f32 %v188_v33, %v181_v39 }
 0x1a1   :  { %v192_v41 = vsub.f32 %v173_v25, %v190_v40 }
 0x1a3   :  { %v194_v42 = vmul.f32 %v192_v41, %v192_v41 }
 0x1a5   :  { %v198_v43 = vsel %vm97_vm0, %v194_v42, 0.0 }
 0x1a6   :  { %199 = vadd.xlane.f32.xlu1 %v198_v43 }
 0x211   :  { %v197_v44 = vpop.xlane.xlu1 %196 }
 0x212   :  { %v201_v45 = vmul.f32 %v197_v44, %v188_v33 }
 0x214   :  { %v203_v46 = vadd.f32 1e-05, %v201_v45 }
 0x216   :  { %295 = vrsqrt.f32 %v203_v46  ;;  %vm211_vm4 = vweird.f32 %v203_v46 }
 0x219   :  { %v200_v47 = vpop.xlane.xlu1 %199 }
 0x21a   :  { %v202_v48 = vmul.f32 %v200_v47, %v188_v33 }
 0x21c   :  { %v296_v49 = vpop.eup %295  ;;  %v204_v50 = vadd.f32 1e-05, %v202_v48 }
 0x21d   :  { %v206_v51 = vmul.f32 %v296_v49, %v203_v46  ;;  %vm212_vm3 = vweird.f32 %v296_v49 }
 0x21e   :  { %297 = vrsqrt.f32 %v204_v50  ;;  %vm213_vm5 = vmor %vm211_vm4, %vm212_vm3  ;;  %vm221_vm8 = vweird.f32 %v204_v50 }
 0x21f   :  { %v207_v52 = vmul.f32 %v296_v49, %v206_v51 }
 0x221   :  { %v208_v53 = vmul.f32 0.5, %v207_v52 }
 0x223   :  { %v209_v54 = vsub.f32 1.5, %v208_v53 }
 0x224   :  { %v298_v55 = vpop.eup %297 }
 0x225   :  { %v210_v56 = vmul.f32 %v296_v49, %v209_v54  ;;  %v216_v57 = vmul.f32 %v298_v55, %v204_v50  ;;  %vm222_vm6 = vweird.f32 %v298_v55 }
 0x226   :  { %vm223_vm9 = vmor %vm221_vm8, %vm222_vm6 }
 0x227   :  { %v214_v59 = vsel %vm213_vm5, %v296_v49, %v210_v56  ;;  %v217_v60 = vmul.f32 %v298_v55, %v216_v57 }
 0x228   :  { %v225_v62 = vmul.f32 %v214_v59, %v191_v36 }
 0x229   :  { %v218_v63 = vmul.f32 0.5, %v217_v60 }
 0x22a   :  { %v230_v0 = vmul.f32 %v291_v58, %v225_v62 }
 0x22b   :  { %v219_v1 = vsub.f32 1.5, %v218_v63 }
 0x22c   :  { %v235_v2 = vadd.f32 %v292_v61, %v230_v0 }
 0x22d   :  { %v220_v3 = vmul.f32 %v298_v55, %v219_v1 }
 0x22e   :  { %v237_v4 = vpack.c.bf16 %v235_v2, %v235_v2 }
 0x22f   :  { %v224_v5 = vsel %vm223_vm9, %v298_v55, %v220_v3 }
 0x230   :  { %240 = vst.msk [vmem:[%s473_s7] sm:$0xf] %vm239_vm7, %v237_v4  ;;  %v226_v6 = vmul.f32 %v224_v5, %v192_v41 }
 0x232   :  { %v231_v7 = vmul.f32 %v291_v58, %v226_v6 }
 0x234   :  { %v236_v8 = vadd.f32 %v292_v61, %v231_v7 }
 0x236   :  { %v238_v9 = vpack.c.bf16 %v236_v8, %v236_v8 }
 0x238   :  { %241 = vst.msk [vmem:[%s473_s7 + $0x4] sm:$0xf] %vm239_vm7, %v238_v9 }
 0x239   :  { %246 = vsyncpa [#allocation3], 1 }
 0x23a   :  { %247 = vsyncpa [#allocation5], 1 }

// kernel: run.23
= control target key start
LH: loop header
LB: loop body
LE: loop exit
PB: predicated region body
PF: predicated region fallthrough
CT: control target
= control target key end

     0   :  { %s231_s0 = inlined_call_operand.vmem [shape: bf16[8,32], index: 0, kind: input, shape index: {}]   ;;  %s232_s1 = inlined_call_operand.vmem [shape: bf16[32,16], index: 1, kind: input, shape index: {}]   ;;  %s233_s2 = inlined_call_operand.vmem [shape: f32[1,16], index: 2, kind: input, shape index: {}]   ;;  %s234_s3 = inlined_call_operand.vmem [shape: s32[8,1], index: 3, kind: input, shape index: {}]   ;;  %s235_s4 = inlined_call_operand.vmem [shape: f32[8,1], index: 4, kind: input, shape index: {}]   ;;  %s236_s5 = inlined_call_operand.hbm [shape: f32[8,16], index: 5, kind: output, shape index: {0}]   ;;  %s237_s6 = inlined_call_operand.vmem [shape: f32[8,1], index: 6, kind: output, shape index: {1}]  }
   0x1   :  { %v130_v0 = vld [vmem:[%s232_s1 + $0x8] sm:$0xff] }
   0x2   :  { %12 = vsyncpa [#allocation3], 0  ;;  %55 = vmatpush.bf16.msra.mxu0 %v130_v0  ;;  %v129_v1 = vld [vmem:[%s232_s1] sm:$0xff]  ;;  %vm45_vm0 = vcmask 261120   ;;  %v165_v3 = vmov 0   ;;  %vm62_vm1 = vcmask 130048   ;;  %v76_v16 = vlaneseq }
   0x3   :  { %v24_v2 = vld [vmem:[%s231_s0] sm:$0xf]  ;;  %133 = vset.pattern.permute.xlu0 %v165_v3  ;;  %s107_s8 = sshll.u32 %s236_s5, 4  ;;  %vm98_vm3 = vcmask 7168   ;;  %s108_s8 = int_to_ptr.hbm [resolvable:$true] %s107_s8 }
   0x4   :  { %v134_v4 = vld [vmem:[%s233_s2] ss:$0 sm:$0xff]  ;;  %v77_v17 = vand.u32 127, %v76_v16  ;;  %s166_s2 = smov [#allocation2]  }
   0x5   :  { %v78_v10 = vld [vmem:[%s234_s3] sm:$0xff]  ;;  %s105_s29 = sshll.u32 %s166_s2, 4  ;;  %s106_s29 = int_to_ptr.vmem [resolvable:$true] %s105_s29 }
   0x6   :  { %56 = vmatpush.bf16.msra.mxu0 %v129_v1  ;;  %v96_v32 = vld [vmem:[%s235_s4] sm:$0xff] }
   0x9   :  { %128 = vmatmul.msk.bf16.vlgmr.msra.gmra.mxu0 %vm45_vm0, %v24_v2 }
  0x86   :  { %v58_v5 = vpop.f32.mrf.mxu0 }
  0x87   :  { %v59_v6 = vadd.f32 %v134_v4, %v58_v5 }
  0x89   :  { %v87_v7 = vsel %vm62_vm1, %v59_v6, 0.0  ;;  %63 = vst.msk [vmem:[#allocation2] sm:$0xff] %vm62_vm1, %v59_v6  ;;  %v64_v8 = vsel %vm62_vm1, %v59_v6, -inf }
  0x8a   :  { %88 = vadd.xlane.f32.xlu2 %v87_v7  ;;  %65 = vmax.xlane.f32.xlu0 %v64_v8  ;;  %110 = dma.vmem_to_hbm [thread:$0]  %s106_s29, 128, %s108_s8, [#allocation3]  }
  0x8e   :  { %v60_v9 = vpop.f32.mrf.mxu0 }
  0x9e   :  { %80 = vperm.xlu0 %133, %v78_v10  }
  0xfd   :  { %v66_v11 = vpop.xlane.xlu0 %65  ;;  %v89_v28 = vpop.xlane.xlu2 %88 }
  0xfe   :  { %v67_v12 = vsub.f32 %v59_v6, %v66_v11 }
 0x100   :  { %v68_v13 = vmul.f32 1.442695, %v67_v12 }
 0x102   :  { %135 = vpow2.f32 %v68_v13 }
 0x108   :  { %v136_v14 = vpop.eup %135 }
 0x109   :  { %v70_v15 = vsel %vm62_vm1, %v136_v14, 0.0 }
 0x10a   :  { %71 = vadd.xlane.f32.xlu1 %v70_v15 }
 0x110   :  { %v81_v18 = vpop.permute.xlu0 %80 }
 0x111   :  { %vm82_vm2 = vcmp.eq.s32.totalorder %v77_v17, %v81_v18 }
 0x112   :  { %v83_v19 = vsel %vm82_vm2, %v59_v6, 0.0 }
 0x113   :  { %v84_v20 = vsel %vm62_vm1, %v83_v19, 0.0 }
 0x114   :  { %85 = vadd.xlane.f32.xlu1 %v84_v20 }
 0x17d   :  { %v72_v21 = vpop.xlane.xlu1 %71 }
 0x17e   :  { %137 = vlog2.f32 %v72_v21 }
 0x184   :  { %v138_v22 = vpop.eup %137 }
 0x185   :  { %v74_v23 = vmul.f32 0.6931472, %v138_v22 }
 0x187   :  { %v75_v24 = vadd.f32 %v74_v23, %v66_v11  ;;  %v86_v25 = vpop.xlane.xlu1 %85 }
 0x189   :  { %v92_v26 = vmul.f32 16.0, %v75_v24  ;;  %v90_v27 = vsub.f32 %v75_v24, %v86_v25 }
 0x18b   :  { %v93_v29 = vsub.f32 %v92_v26, %v89_v28  ;;  %v91_v31 = vmul.f32 0.9, %v90_v27 }
 0x18d   :  { %v94_v30 = vmul.f32 0.00625, %v93_v29 }
 0x18f   :  { %v95_v33 = vadd.f32 %v94_v30, %v91_v31 }
 0x191   :  { %v97_v34 = vmul.f32 %v96_v32, %v95_v33 }
 0x193   :  { %99 = vst.msk [vmem:[%s237_s6] sm:$0xff] %vm98_vm3, %v97_v34 }
 0x194   :  { %163 = dma.done.wait [#allocation3], 128  }
 0x195   :  { %164 = vsyncadd [#allocation3], 4294967168 }
 0x196   :  { %119 = vsyncpa [#allocation3], 1 }

// kernel: run.20
= control target key start
LH: loop header
LB: loop body
LE: loop exit
PB: predicated region body
PF: predicated region fallthrough
CT: control target
= control target key end

     0   :  { %13 = vsyncpa [#allocation3], 0  ;;  %s489_s0 = inlined_call_operand.vmem [shape: bf16[16,32], index: 0, kind: input, shape index: {}]   ;;  %s490_s1 = inlined_call_operand.vmem [shape: bf16[16,32], index: 1, kind: input, shape index: {}]   ;;  %s491_s2 = inlined_call_operand.vmem [shape: bf16[32,32], index: 2, kind: input, shape index: {}]   ;;  %s492_s3 = inlined_call_operand.hbm [shape: f32[1,32], index: 3, kind: input, shape index: {}]   ;;  %s493_s4 = inlined_call_operand.vmem [shape: bf16[32,32], index: 4, kind: input, shape index: {}]   ;;  %s494_s5 = inlined_call_operand.hbm [shape: f32[1,32], index: 5, kind: input, shape index: {}]   ;;  %s495_s6 = inlined_call_operand.hbm [shape: f32[1,32], index: 6, kind: input, shape index: {}]   ;;  %s496_s7 = inlined_call_operand.hbm [shape: f32[1,32], index: 7, kind: input, shape index: {}]   ;;  %s497_s8 = inlined_call_operand.vmem [shape: bf16[16,32], index: 8, kind: output, shape index: {}]  }
   0x1   :  { %14 = vsyncpa [#allocation5], 0  ;;  %s40_s29 = sshll.u32 %s494_s5, 4  ;;  %s41_s29 = int_to_ptr.hbm [resolvable:$true] %s40_s29 }
   0x2   :  { %15 = vsyncpa [#allocation8], 0  ;;  %s397_s30 = smov [#allocation4]   ;;  %s27_s12 = sshll.u32 %s492_s3, 4  ;;  %s28_s12 = int_to_ptr.hbm [resolvable:$true] %s27_s12 }
   0x3   :  { %s42_s9 = sshll.u32 %s397_s30, 4  ;;  %s398_s13 = smov [#allocation2]   ;;  %s43_s9 = int_to_ptr.vmem [resolvable:$true] %s42_s9 }
   0x4   :  { %45 = dma.hbm_to_vmem [thread:$0]  %s41_s29, 16, %s43_s9, [#allocation5]  }
   0x5   :  { %s29_s14 = sshll.u32 %s398_s13, 4  ;;  %s51_s17 = sshll.u32 %s495_s6, 4  ;;  %s30_s14 = int_to_ptr.vmem [resolvable:$true] %s29_s14  ;;  %s52_s17 = int_to_ptr.hbm [resolvable:$true] %s51_s17 }
   0x6   :  { %32 = dma.hbm_to_vmem [thread:$0]  %s28_s12, 16, %s30_s14, [#allocation3]  }
   0x7   :  { %s62_s19 = sshll.u32 %s496_s7, 4  ;;  %s399_s20 = smov [#allocation6]   ;;  %s63_s19 = int_to_ptr.hbm [resolvable:$true] %s62_s19 }
   0x8   :  { %s53_s21 = sshll.u32 %s399_s20, 4  ;;  %s400_s3 = smov [#allocation7]   ;;  %s54_s21 = int_to_ptr.vmem [resolvable:$true] %s53_s21 }
   0x9   :  { %56 = dma.hbm_to_vmem [thread:$0]  %s52_s17, 16, %s54_s21, [#allocation5]  }
   0xa   :  { %s64_s22 = sshll.u32 %s400_s3, 4  ;;  %s65_s22 = int_to_ptr.vmem [resolvable:$true] %s64_s22 }
   0xb   :  { %67 = dma.hbm_to_vmem [thread:$0]  %s63_s19, 16, %s65_s22, [#allocation8]  }
   0xc   :  { %391 = dma.done.wait [#allocation3], 16  }
   0xd   :  { %392 = vsyncadd [#allocation3], 4294967280 }
   0xe   :  { %393 = dma.done.wait [#allocation5], 32  }
   0xf   :  { %394 = vsyncadd [#allocation5], 4294967264 }
  0x10   :  { %395 = dma.done.wait [#allocation8], 16  }
  0x11   :  { %396 = vsyncadd [#allocation8], 4294967280  ;;  %v273_v0 = vld [vmem:[%s491_s2 + $0x8] sm:$0xff]  ;;  %v272_v1 = vld [vmem:[%s491_s2] sm:$0xff]  ;;  %vm116_vm0 = vcmask 261120   ;;  %v401_v23 = vmov 32.0  }
  0x12   :  { %126 = vmatpush.bf16.msra.mxu0 %v273_v0  ;;  %v271_v2 = vld [vmem:[%s490_s1] sm:$0xff]  ;;  %v275_v3 = vld [vmem:[%s493_s4 + $0x8] sm:$0xff]  ;;  %289 = vrcp.f32 %v401_v23  ;;  %vm239_vm6 = vcmask 257024  }
  0x13   :  { %164 = vmatpush.bf16.msra.mxu1 %v275_v3  ;;  %v274_v4 = vld [vmem:[%s493_s4] sm:$0xff] }
  0x14   :  { %v285_v6 = vld [vmem:[#allocation2] ss:$0 sm:$0xff]  ;;  %v286_v12 = vld [vmem:[#allocation4] ss:$0 sm:$0xff]  ;;  %v287_v54 = vld [vmem:[#allocation6] ss:$0 sm:$0xff] }
  0x15   :  { %v277_v11 = vld [vmem:[%s489_s0] sm:$0xff]  }
  0x16   :  { %127 = vmatpush.bf16.msra.mxu0 %v272_v1  ;;  %v278_v13 = vunpack.c.l.bf16 %v277_v11  ;;  %v279_v18 = vunpack.c.h.bf16 %v277_v11  ;;  %v288_v57 = vld [vmem:[#allocation7] ss:$0 sm:$0xff] }
  0x17   :  { %165 = vmatpush.bf16.msra.mxu1 %v274_v4 }
  0x18   :  { %v290_v24 = vpop.eup %289 }
  0x19   :  { %261 = vmatmul.msk.bf16.vlgmr.msra.gmra.mxu0 %vm116_vm0, %v271_v2  ;;  %v183_v25 = vmul.f32 32.0, %v290_v24  ;;  %vm187_vm1 = vweird.f32 %v290_v24 }
  0x1b   :  { %v184_v26 = vsub.f32 1.0, %v183_v25 }
  0x1d   :  { %v185_v27 = vmul.f32 %v290_v24, %v184_v26 }
  0x1f   :  { %v186_v28 = vadd.f32 %v290_v24, %v185_v27 }
  0x21   :  { %v188_v29 = vsel %vm187_vm1, %v290_v24, %v186_v28 }
  0x96   :  { %v129_v5 = vpop.f32.mrf.mxu0 }
  0x97   :  { %v130_v8 = vadd.f32 %v285_v6, %v129_v5 }
  0x9e   :  { %v131_v7 = vpop.f32.mrf.mxu0 }
  0x9f   :  { %v132_v9 = vadd.f32 %v285_v6, %v131_v7 }
  0xa1   :  { %v134_v10 = vpack.c.bf16 %v132_v9, %v130_v8 }
  0xa3   :  { %270 = vmatmul.msk.bf16.vlgmr.msra.gmra.mxu1 %vm116_vm0, %v134_v10 }
 0x120   :  { %v167_v14 = vpop.f32.mrf.mxu1 }
 0x121   :  { %v168_v15 = vadd.f32 %v286_v12, %v167_v14 }
 0x123   :  { %v172_v16 = vadd.f32 %v278_v13, %v168_v15 }
 0x125   :  { %v176_v17 = vsel %vm116_vm0, %v172_v16, 0.0 }
 0x126   :  { %177 = vadd.xlane.f32.xlu0 %v176_v17 }
 0x128   :  { %v169_v19 = vpop.f32.mrf.mxu1 }
 0x129   :  { %v170_v20 = vadd.f32 %v286_v12, %v169_v19 }
 0x12b   :  { %v173_v21 = vadd.f32 %v279_v18, %v170_v20 }
 0x12d   :  { %v179_v22 = vsel %vm116_vm0, %v173_v21, 0.0 }
 0x12e   :  { %180 = vadd.xlane.f32.xlu0 %v179_v22 }
 0x199   :  { %v178_v30 = vpop.xlane.xlu0 %177 }
 0x19a   :  { %v189_v31 = vmul.f32 %v188_v29, %v178_v30 }
 0x19c   :  { %v191_v32 = vsub.f32 %v172_v16, %v189_v31 }
 0x19e   :  { %v193_v33 = vmul.f32 %v191_v32, %v191_v32 }
 0x1a0   :  { %v195_v34 = vsel %vm116_vm0, %v193_v33, 0.0 }
 0x1a1   :  { %196 = vadd.xlane.f32.xlu1 %v195_v34  ;;  %v181_v35 = vpop.xlane.xlu0 %180 }
 0x1a2   :  { %v190_v36 = vmul.f32 %v188_v29, %v181_v35 }
 0x1a4   :  { %v192_v37 = vsub.f32 %v173_v21, %v190_v36 }
 0x1a6   :  { %v194_v38 = vmul.f32 %v192_v37, %v192_v37 }
 0x1a8   :  { %v198_v39 = vsel %vm116_vm0, %v194_v38, 0.0 }
 0x1a9   :  { %199 = vadd.xlane.f32.xlu1 %v198_v39 }
 0x214   :  { %v197_v40 = vpop.xlane.xlu1 %196 }
 0x215   :  { %v201_v41 = vmul.f32 %v197_v40, %v188_v29 }
 0x217   :  { %v203_v42 = vadd.f32 1e-05, %v201_v41 }
 0x219   :  { %291 = vrsqrt.f32 %v203_v42  ;;  %vm211_vm3 = vweird.f32 %v203_v42 }
 0x21c   :  { %v200_v43 = vpop.xlane.xlu1 %199 }
 0x21d   :  { %v202_v44 = vmul.f32 %v200_v43, %v188_v29 }
 0x21f   :  { %v292_v45 = vpop.eup %291  ;;  %v204_v46 = vadd.f32 1e-05, %v202_v44 }
 0x220   :  { %v206_v47 = vmul.f32 %v292_v45, %v203_v42  ;;  %vm212_vm2 = vweird.f32 %v292_v45 }
 0x221   :  { %293 = vrsqrt.f32 %v204_v46  ;;  %vm213_vm4 = vmor %vm211_vm3, %vm212_vm2  ;;  %vm221_vm7 = vweird.f32 %v204_v46 }
 0x222   :  { %v207_v48 = vmul.f32 %v292_v45, %v206_v47 }
 0x224   :  { %v208_v49 = vmul.f32 0.5, %v207_v48 }
 0x226   :  { %v209_v50 = vsub.f32 1.5, %v208_v49 }
 0x227   :  { %v294_v51 = vpop.eup %293 }
 0x228   :  { %v210_v52 = vmul.f32 %v292_v45, %v209_v50  ;;  %v216_v53 = vmul.f32 %v294_v51, %v204_v46  ;;  %vm222_vm5 = vweird.f32 %v294_v51 }
 0x229   :  { %vm223_vm8 = vmor %vm221_vm7, %vm222_vm5 }
 0x22a   :  { %v214_v55 = vsel %vm213_vm4, %v292_v45, %v210_v52  ;;  %v217_v56 = vmul.f32 %v294_v51, %v216_v53 }
 0x22b   :  { %v225_v58 = vmul.f32 %v214_v55, %v191_v32 }
 0x22c   :  { %v218_v59 = vmul.f32 0.5, %v217_v56 }
 0x22d   :  { %v230_v60 = vmul.f32 %v287_v54, %v225_v58 }
 0x22e   :  { %v219_v61 = vsub.f32 1.5, %v218_v59 }
 0x22f   :  { %v235_v62 = vadd.f32 %v288_v57, %v230_v60 }
 0x230   :  { %v220_v63 = vmul.f32 %v294_v51, %v219_v61 }
 0x231   :  { %v237_v0 = vpack.c.bf16 %v235_v62, %v235_v62 }
 0x232   :  { %v224_v1 = vsel %vm223_vm8, %v294_v51, %v220_v63 }
 0x233   :  { %240 = vst.msk [vmem:[%s497_s8] sm:$0xf] %vm239_vm6, %v237_v0  ;;  %v226_v2 = vmul.f32 %v224_v1, %v192_v37 }
 0x235   :  { %v231_v3 = vmul.f32 %v287_v54, %v226_v2 }
 0x237   :  { %v236_v4 = vadd.f32 %v288_v57, %v231_v3 }
 0x239   :  { %v238_v5 = vpack.c.bf16 %v236_v4, %v236_v4 }
 0x23b   :  { %241 = vst.msk [vmem:[%s497_s8 + $0x4] sm:$0xf] %vm239_vm6, %v238_v5 }
 0x23c   :  { %246 = vsyncpa [#allocation3], 1 }
 0x23d   :  { %247 = vsyncpa [#allocation5], 1 }
 0x23e   :  { %248 = vsyncpa [#allocation8], 1 }

// kernel: run.19
= control target key start
LH: loop header
LB: loop body
LE: loop exit
PB: predicated region body
PF: predicated region fallthrough
CT: control target
= control target key end

     0   :  { %12 = vsyncpa [#allocation5], 0  ;;  %s1465_s0 = inlined_call_operand.vmem [shape: bf16[2,8,32], index: 0, kind: input, shape index: {}]   ;;  %s1466_s1 = inlined_call_operand.vmem [shape: bf16[32,96], index: 1, kind: input, shape index: {}]   ;;  %s1467_s2 = inlined_call_operand.hbm [shape: f32[1,96], index: 2, kind: input, shape index: {}]   ;;  %s1468_s3 = inlined_call_operand.vmem [shape: bf16[32,32], index: 3, kind: input, shape index: {}]   ;;  %s1469_s4 = inlined_call_operand.hbm [shape: f32[1,32], index: 4, kind: input, shape index: {}]   ;;  %s1470_s5 = inlined_call_operand.hbm [shape: f32[1,32], index: 5, kind: input, shape index: {}]   ;;  %s1471_s6 = inlined_call_operand.hbm [shape: f32[1,32], index: 6, kind: input, shape index: {}]   ;;  %s1472_s7 = inlined_call_operand.vmem [shape: bf16[2,8,32], index: 7, kind: output, shape index: {}]  }
   0x1   :  { %13 = vsyncpa [#allocation7], 0 }
   0x2   :  { %14 = vsyncpa [#allocation10], 0  ;;  %s1288_s24 = smov 0   ;;  %s1290_s25 = smov 0  }
   0x3   :  { %s1292_s26 = smov 0  }
   0x4 LB: > { %s249_s29 = sshll.u32 %s1469_s4, 4  ;;  %s942_s30 = sadd.s32 4294967295, %s1234_s26   ;;  %s1234_s26 = sphi %s1292_s26, %s20_s26   ;;  %s1230_s25 = sphi %s1290_s25, %s1477_s25   ;;  %s1226_s24 = sphi %s1288_s24, %s1476_s24   ;;  %s250_s29 = int_to_ptr.hbm [resolvable:$true] %s249_s29 }
   0x5   : > { %p944_p0 = scmp.ge.s32.totalorder %s1234_s26, 1  ;;  %p219_p1 = scmp.lt.s32.totalorder %s1234_s26, 3 }
   0x6   : > { %p1309_p2 = scmp.eq.s32.totalorder %s942_s30, 0  ;;  %s1236_s10 = smov [#allocation6]  }
   0x7   : > { %p1313_p3 = pnand %p944_p0, %p219_p1  ;;  %s251_s11 = sshll.u32 %s1236_s10, 4  ;;  %s252_s11 = int_to_ptr.vmem [resolvable:$true] %s251_s11 }
   0x8   : > { %s32_s13 = sadd.s32 1, %s1230_s25  ;;  %s234_s16 = sshll.u32 %s1467_s2, 4  ;;  %s235_s16 = int_to_ptr.hbm [resolvable:$true] %s234_s16 }
   0x9   : > { %p1006_p4 = pneg %p1313_p3  ;;  %p34_p6 = scmp.ge.s32.totalorder %s32_s13, 2 }
   0xa   : > { %s261_s19 = sshll.u32 %s1470_s5, 4  ;;  %s1237_s20 = smov [#allocation4]   ;;  %s262_s19 = int_to_ptr.hbm [resolvable:$true] %s261_s19 }
   0xb   : > { %p1321_p5 = pnand %p1309_p2, %p1006_p4  ;;  %s1479_s13 = smov (%p34_p6, %s32_s13), 0 }
   0xc   : > { %s236_s21 = sshll.u32 %s1237_s20, 4  ;;  %s1238_s22 = smov [#allocation8]   ;;  %s237_s21 = int_to_ptr.vmem [resolvable:$true] %s236_s21 }
   0xd   : > { %1012 = dma.hbm_to_vmem [thread:$0]  (!%p1321_p5), %s250_s29, 16, %s252_s11, [#allocation7]  }
   0xe   : > { %1009 = dma.hbm_to_vmem [thread:$0]  (!%p1321_p5), %s235_s16, 16, %s237_s21, [#allocation5]  }
   0xf   : > { %s263_s23 = sshll.u32 %s1238_s22, 4  ;;  %s273_s30 = sshll.u32 %s1471_s6, 4  ;;  %s264_s23 = int_to_ptr.vmem [resolvable:$true] %s263_s23  ;;  %s274_s30 = int_to_ptr.hbm [resolvable:$true] %s273_s30 }
  0x10   : > { %1015 = dma.hbm_to_vmem [thread:$0]  (!%p1321_p5), %s262_s19, 16, %s264_s23, [#allocation7]  }
  0x11   : > { %s1239_s29 = smov [#allocation9]   ;;  %298 = sbr.rel (%p1313_p3) target bundleno = 1131 (0x46b), region = 48 }
  0x12   : > { %s275_s10 = sshll.u32 %s1239_s29, 4  ;;  %s276_s10 = int_to_ptr.vmem [resolvable:$true] %s275_s10 }
  0x13   : > { %1018 = dma.hbm_to_vmem [thread:$0]  (!%p1321_p5), %s274_s30, 16, %s276_s10, [#allocation10]  }
  0x16   : > { %1213 = dma.done.wait (%p1309_p2), [#allocation5], 16  }
  0x17   : > { %1215 = vsyncadd (%p1309_p2), [#allocation5], 4294967280 }
  0x18   : > { %1217 = dma.done.wait (%p1309_p2), [#allocation7], 32  }
  0x19   : > { %1219 = vsyncadd (%p1309_p2), [#allocation7], 4294967264 }
  0x1a   : > { %1221 = dma.done.wait (%p1309_p2), [#allocation10], 16  }
  0x1b   : > { %1223 = vsyncadd (%p1309_p2), [#allocation10], 4294967280  ;;  %p350_p7 = scmp.lt.s32.totalorder %s1226_s24, 1  ;;  %v987_v0 = vld [vmem:[%s1466_s1 + $0x8] sm:$0xff]  ;;  %v986_v1 = vld [vmem:[%s1466_s1] sm:$0xff]  ;;  %vm399_vm0 = vcmask 261120   ;;  %v423_v43 = vlaneseq }
  0x1c   : > { %409 = vmatpush.bf16.msra.mxu0 %v987_v0  ;;  %vm369_vm1 = vcmask 130048   ;;  %v1240_v3 = vmov 0.0   ;;  %vm374_vm2 = vcmask 122880   ;;  %v1064_v7 = vld [vmem:[#allocation4] ss:$0 sm:$0xff]  ;;  %s1241_s18 = smov 48  }
  0x1d   : > { %s1481_s24 = smov (!%p350_p7, %s1226_s24), 1  ;;  %370 = vst.msk [vmem:[#allocation2] sm:$0xff] %vm369_vm1, %v1240_v3  ;;  %s1242_s19 = smov 16   ;;  %vm481_vm4 = vcmask 1043456   ;;  %v424_v44 = vshrl.u32 %v423_v43, 7  ;;  %v426_v45 = vand.u32 127, %v423_v43 }
  0x1e   : > { %s955_s12 = sshll.u32 %s1481_s24, 2  ;;  %371 = vst.msk [vmem:[#allocation2 + $0x8] sm:$0xff] %vm369_vm1, %v1240_v3  ;;  %s1243_s20 = smov 80   ;;  %vm477_vm6 = vcmask 64512   ;;  %vm764_vm7 = vcmask 523648   ;;  %v988_v60 = vld [vmem:[%s1468_s3] sm:$0xff] }
  0x1f   : > { %s356_s17 = scalar_lea.vmem %s1465_s0, %s955_s12  ;;  %372 = vst.msk [vmem:[#allocation2 + $0x10] sm:$0xff] %vm369_vm1, %v1240_v3  ;;  %s1244_s21 = smov 96   ;;  %vm427_vm5 = vcmp.le.s32.totalorder %v426_v45, %v424_v44  ;;  %vm566_vm12 = vcmask 392448  }
  0x20   : > { %410 = vmatpush.bf16.msra.mxu0 %v986_v1  ;;  %v1375_v2 = vld [vmem:[%s356_s17] sm:$0xf]  ;;  %373 = vst.msk [vmem:[#allocation2 + $0x18] sm:$0xff] %vm369_vm1, %v1240_v3  ;;  %s1245_s22 = smov 112   ;;  %s1246_s23 = smov 64  }
  0x21   : > { %376 = vst.msk [vmem:[#allocation3 + $0x1] sm:$0x1] %vm374_vm2, %v1240_v3  ;;  %s363_s11 = scalar_lea.vmem %s1472_s7, %s955_s12 }
  0x22   : > { %375 = vst.msk [vmem:[#allocation3] sm:$0x1] %vm374_vm2, %v1240_v3 }
  0x23   : > { %965 = vmatmul.msk.bf16.vlgmr.msra.gmra.mxu0 %vm399_vm0, %v1375_v2 }
  0x24   : > { %v1385_v4 = vld [vmem:[#allocation2] sm:$0xff] }
  0x25   : > { %v1387_v5 = vld [vmem:[#allocation2 + $0x8] sm:$0xff] }
  0x26   : > { %v458_v6 = vpack.c.bf16 %v1387_v5, %v1385_v4  ;;  %v1400_v25 = vld [vmem:[#allocation2 + $0x10] sm:$0xff] }
  0x27   : > { %v1402_v26 = vld [vmem:[#allocation2 + $0x18] sm:$0xff] }
  0x28   : > { %466 = vmatpush.bf16.msra.mxu2 %v458_v6  ;;  %v1065_v19 = vld [vmem:[#allocation3 + $0x1] ss:$0 sm:$0xff]  ;;  %v611_v27 = vpack.c.bf16 %v1402_v26, %v1400_v25 }
  0x29   : > { %v1066_v22 = vld [vmem:[#allocation3] ss:$0 sm:$0xff] }
  0x2a   : > { %619 = vmatpush.bf16.msrb.mxu0 %v611_v27 }
  0xa0   : > { %v412_v8 = vpop.f32.mrf.mxu0 }
  0xa1   : > { %v413_v9 = vadd.f32 %v1064_v7, %v412_v8 }
  0xa3   : > { %v418_v10 = vmul.f32 1.442695, %v413_v9  ;;  %v422_v11 = vpack.c.bf16 %v413_v9, %v413_v9  ;;  %v417_v15 = vadd.f32 1.0, %v413_v9  ;;  %vm416_vm3 = vcmp.gt.f32.partialorder %v413_v9, 0.0 }
  0xa5   : > { %1070 = vpow2.f32 %v418_v10  ;;  %v473_v12 = vunpack.c.l.b16 %v422_v11 }
  0xa7   : > { %v474_v13 = vpack.c.b16 %v473_v12, %v473_v12 }
  0xa8   : > { %v414_v14 = vpop.f32.mrf.mxu0 }
  0xa9   : > { %625 = vrot.lane.b32.xlu2 %v474_v13, %s1241_s18 }
  0xab   : > { %v1071_v16 = vpop.eup %1070 }
  0xac   : > { %v1391_v17 = vsel %vm416_vm3, %v417_v15, %v1071_v16 }
  0xad   : > { %v421_v18 = vpack.c.bf16 %v1391_v17, %v1391_v17  ;;  %v504_v23 = vmul.f32 %v1066_v22, %v1391_v17  ;;  %v765_v53 = vsel %vm764_vm7, %v1391_v17, 0.0 }
  0xae   : > { %v766_v54 = vrot.slane %v765_v53, 4 }
  0xaf   : > { %967 = vmatmul.msk.bf16.vlgmr.msra.gmra.mxu2 %vm369_vm1, %v421_v18  ;;  %v432_v20 = vunpack.c.l.b16 %v421_v18  ;;  %v505_v24 = vsel %vm369_vm1, %v504_v23, 0.0 }
  0xb0   : > { %v767_v55 = vadd.f32 %v766_v54, %v765_v53  ;;  %v430_v53 = vld [vmem:[#allocation3] sm:$0x1] }
  0xb1   : > { %651 = vrot.lane.b32.xlu2 %v1065_v19, %s1242_s19  ;;  %v433_v21 = vpack.c.b16 %v432_v20, %v432_v20  ;;  %v567_v20 = vsel %vm566_vm12, %v1391_v17, 0.0 }
  0xb2   : > { %v768_v56 = vrot.slane %v767_v55, 2  ;;  %v568_v23 = vrot.slane %v567_v20, 4 }
  0xb3   : > { %588 = vrot.lane.b32.xlu1 %v433_v21, %s1243_s20  ;;  %434 = vrot.lane.b32.xlu0 %v433_v21, %s1244_s21 }
  0xb4   : > { %v769_v57 = vadd.f32 %v768_v56, %v767_v55 }
  0xb6   : > { %v770_v58 = vrot.slane %v769_v57, 1 }
  0xb8   : > { %v771_v59 = vadd.f32 %v770_v58, %v769_v57 }
  0xbb   : > { %586 = vrot.lane.b32.xlu1 %v433_v21, %s1245_s22  ;;  %475 = vrot.lane.b32.xlu0 %v474_v13, %s1246_s23 }
  0xda   : > { %506 = vadd.xlane.f32.xlu2 %v505_v24 }
 0x103   : > { %v626_v28 = vpop.permute.xlu2 %625 }
 0x104   : > { %v631_v29 = vsel %vm481_vm4, %v626_v28, 0 }
 0x105   : > { %753 = vmatpush.bf16.msra.mxu0 %v631_v29 }
 0x10b   : > { %v652_v30 = vpop.permute.xlu2 %651 }
 0x10c   : > { %v654_v31 = vmul.f32 %v652_v30, %v1391_v17 }
 0x10e   : > { %656 = vrot.lane.b32.xlu0 %v654_v31, %s1245_s22 }
 0x125   : > { %v589_v32 = vpop.permute.xlu1 %588  ;;  %v435_v33 = vpop.permute.xlu0 %434 }
 0x126   : > { %v441_v34 = vsel %vm369_vm1, %v435_v33, 0  ;;  %v594_v38 = vsel %vm369_vm1, %v589_v32, 0 }
 0x127   : > { %450 = vmatpush.bf16.xpose.msra.mxu1 %v441_v34 }
 0x12d   : > { %v587_v35 = vpop.permute.xlu1 %586  ;;  %v476_v36 = vpop.permute.xlu0 %475 }
 0x12e   : > { %966 = vmatmul.msk.bf16.vlgmr.msra.gmra.mxu1 %vm369_vm1, %v421_v18  ;;  %971 = vmatmul.msk.bf16.vlgmr.msrb.gmra.mxu0 %vm369_vm1, %v587_v35  ;;  %v483_v37 = vsel %vm481_vm4, %v476_v36, 0 }
 0x12f   : > { %640 = vmatpush.bf16.msrb.mxu1 %v631_v29  ;;  %492 = vmatpush.bf16.msra.mxu3 %v483_v37  ;;  %v569_v29 = vadd.f32 %v568_v23, %v567_v20 }
 0x130   : > { %555 = vmatpush.bf16.msrb.mxu2 %v483_v37 }
 0x131   : > { %v570_v31 = vrot.slane %v569_v29, 2 }
 0x132   : > { %v468_v39 = vpop.f32.mrf.mxu2 }
 0x133   : > { %603 = vmatpush.bf16.xpose.msrb.mxu3 %v594_v38 }
 0x13a   : > { %v470_v40 = vpop.f32.mrf.mxu2 }
 0x14d   : > { %v507_v61 = vpop.xlane.xlu2 %506 }
 0x180   : > { %v657_v41 = vpop.permute.xlu0 %656 }
 0x181   : > { %v659_v42 = vsel %vm369_vm1, %v657_v41, 0.0 }
 0x182   : > { %660 = vadd.xlane.f32.xlu2 %v659_v42 }
 0x1ab   : > { %v452_v46 = vpop.f32.mrf.mxu1  ;;  %727 = vxpose.xlu2.c.b16.start.end [1/1] (short) (narrow) %v589_v32, 16  ;;  %v1414_v47 = vpop.f32.mrf.mxu0 }
 0x1ac   : > { %v456_v48 = vsel %vm427_vm5, %v452_v46, 0.0 }
 0x1ad   : > { %v457_v49 = vpack.c.bf16 %v456_v48, %v456_v48  ;;  %v498_v50 = vsel %vm477_vm6, %v456_v48, 0.0 }
 0x1ae   : > { %499 = vadd.xlane.f32.xlu1 %v498_v50 }
 0x1af   : > { %968 = vmatmul.msk.bf16.vlgmr.msra.gmra.mxu3 %vm477_vm6, %v457_v49 }
 0x1b0   : > { %720 = vmatpush.bf16.msra.mxu3 %v988_v60 }
 0x1b3   : > { %v454_v51 = vpop.f32.mrf.mxu1  ;;  %v623_v52 = vpop.f32.mrf.mxu0 }
 0x1bf   : > { %970 = vmatmul.msk.bf16.vlgmr.msrb.gmra.mxu3 %vm369_vm1, %v587_v35  ;;  %v585_v35 = vld [vmem:[#allocation3 + $0x1] sm:$0x1] }
 0x1e8   : > { %529 = vxpose.xlu1.c.b16.start.end [1/1] (short) (narrow) %v435_v33, 16  ;;  %v571_v33 = vadd.f32 %v570_v31, %v569_v29 }
 0x1ea   : > { %v572_v34 = vrot.slane %v571_v33, 1 }
 0x1ec   : > { %v573_v17 = vadd.f32 %v572_v34, %v571_v33 }
 0x1f5   : > { %v661_v24 = vpop.xlane.xlu2 %660 }
 0x214   : > { %773 = vrot.lane.b32.xlu2 %v771_v59, %s1243_s20 }
 0x221   : > { %v500_v62 = vpop.xlane.xlu1 %499 }
 0x222   : > { %v508_v63 = vadd.f32 %v507_v61, %v500_v62 }
 0x224   : > { %v509_v0 = vadd.f32 1e-06, %v508_v63 }
 0x226   : > { %1072 = vrcp.f32 %v509_v0  ;;  %v521_v7 = vand.u32 2147483648, %v509_v0  ;;  %v519_v9 = vand.u32 2147483647, %v509_v0  ;;  %vm515_vm9 = vweird.f32 %v509_v0 }
 0x228   : > { %v522_v12 = vor.u32 1.1754944e-38, %v521_v7  ;;  %vm520_vm11 = vcmp.eq.f32.partialorder %v519_v9, 8.507059e+37  ;;  %v1067_v9 = vld [vmem:[#allocation6] ss:$0 sm:$0xff] }
 0x22c   : > { %v1073_v1 = vpop.eup %1072 }
 0x22d   : > { %v511_v3 = vmul.f32 %v1073_v1, %v509_v0  ;;  %vm516_vm8 = vweird.f32 %v1073_v1 }
 0x22e   : > { %vm517_vm10 = vmor %vm515_vm9, %vm516_vm8 }
 0x22f   : > { %v512_v6 = vsub.f32 1.0, %v511_v3 }
 0x231   : > { %v513_v8 = vmul.f32 %v1073_v1, %v512_v6 }
 0x232   : > { %v494_v10 = vpop.f32.mrf.mxu3 }
 0x233   : > { %v514_v11 = vadd.f32 %v1073_v1, %v513_v8  ;;  %v495_v13 = vadd.f32 %v494_v10, %v468_v39  ;;  %v989_v39 = vld [vmem:[%s1468_s3 + $0x8] sm:$0xff] }
 0x234   : > { %698 = vmatpush.bf16.msra.mxu2 %v989_v39 }
 0x235   : > { %v518_v14 = vsel %vm517_vm10, %v1073_v1, %v514_v11 }
 0x236   : > { %v523_v15 = vsel %vm520_vm11, %v522_v12, %v518_v14  ;;  %v1247_v14 = vmov 32.0  }
 0x237   : > { %v524_v16 = vmul.f32 %v523_v15, %v495_v13 }
 0x239   : > { %v525_v18 = vpack.c.bf16 %v524_v16, %v524_v16 }
 0x23a   : > { %v496_v19 = vpop.f32.mrf.mxu3 }
 0x23b   : > { %982 = vmatmul.msk.bf16.vlgmr.msra.gmra.mxu3 %vm369_vm1, %v525_v18 }
 0x242   : > { %v605_v21 = vpop.f32.mrf.mxu3 }
 0x243   : > { %v609_v22 = vsel %vm427_vm5, %v605_v21, 0.0 }
 0x244   : > { %v610_v27 = vpack.c.bf16 %v609_v22, %v609_v22  ;;  %v646_v28 = vsel %vm477_vm6, %v609_v22, 0.0 }
 0x245   : > { %647 = vadd.xlane.f32.xlu0 %v646_v28 }
 0x246   : > { %972 = vmatmul.msk.bf16.vlgmr.msrb.gmra.mxu1 %vm477_vm6, %v610_v27 }
 0x24a   : > { %v607_v30 = vpop.f32.mrf.mxu3 }
 0x24c   : > { %v735_v32 = vpop.trf.xlu2 }
 0x24d   : > { %983 = vmatmul.msk.bf16.vlgmr.msra.gmra.mxu0 %vm477_vm6, %v735_v32 }
 0x259   : > { %575 = vrot.lane.b32.xlu0 %v573_v17, %s1244_s21 }
 0x26e   : > { %v774_v36 = vpop.permute.xlu2 %773 }
 0x26f   : > { %v776_v37 = vadd.f32 %v774_v36, %v585_v35 }
 0x271   : > { %777 = vst.msk [vmem:[#allocation3 + $0x1] sm:$0x1] %vm374_vm2, %v776_v37 }
 0x294   : > { %v537_v38 = vpop.trf.xlu1 }
 0x295   : > { %969 = vmatmul.msk.bf16.vlgmr.msrb.gmra.mxu2 %vm477_vm6, %v537_v38  ;;  %v1069_v38 = vld [vmem:[#allocation9] ss:$0 sm:$0xff] }
 0x2b8   : > { %v648_v40 = vpop.xlane.xlu0 %647 }
 0x2b9   : > { %v662_v41 = vadd.f32 %v661_v24, %v648_v40 }
 0x2bb   : > { %v663_v42 = vadd.f32 1e-06, %v662_v41 }
 0x2bd   : > { %1074 = vrcp.f32 %v663_v42  ;;  %v675_v50 = vand.u32 2147483648, %v663_v42  ;;  %v673_v52 = vand.u32 2147483647, %v663_v42  ;;  %vm669_vm14 = vweird.f32 %v663_v42 }
 0x2be   : > { %v722_v43 = vpop.f32.mrf.mxu3  ;;  %1076 = vrcp.f32 %v1247_v14 }
 0x2bf   : > { %v676_v55 = vor.u32 1.1754944e-38, %v675_v50  ;;  %vm674_vm3 = vcmp.eq.f32.partialorder %v673_v52, 8.507059e+37 }
 0x2c3   : > { %v1075_v44 = vpop.eup %1074  ;;  %v642_v45 = vpop.f32.mrf.mxu1 }
 0x2c4   : > { %v665_v46 = vmul.f32 %v1075_v44, %v663_v42  ;;  %vm670_vm13 = vweird.f32 %v1075_v44  ;;  %v643_v58 = vadd.f32 %v642_v45, %v1414_v47  ;;  %v378_v47 = vunpack.c.l.bf16 %v1375_v2 }
 0x2c5   : > { %vm671_vm15 = vmor %vm669_vm14, %vm670_vm13 }
 0x2c6   : > { %v666_v48 = vsub.f32 1.0, %v665_v46  ;;  %v724_v49 = vpop.f32.mrf.mxu3 }
 0x2c8   : > { %v667_v51 = vmul.f32 %v1075_v44, %v666_v48 }
 0x2ca   : > { %v668_v54 = vadd.f32 %v1075_v44, %v667_v51  ;;  %v755_v24 = vpop.f32.mrf.mxu0 }
 0x2cb   : > { %v644_v56 = vpop.f32.mrf.mxu1  ;;  %v576_v57 = vpop.permute.xlu0 %575  ;;  %v760_v28 = vadd.f32 %v755_v24, %v1400_v25  ;;  %v1068_v25 = vld [vmem:[#allocation8] ss:$0 sm:$0xff] }
 0x2cc   : > { %v672_v59 = vsel %vm671_vm15, %v1075_v44, %v668_v54  ;;  %v578_v60 = vadd.f32 %v576_v57, %v430_v53 }
 0x2cd   : > { %v677_v61 = vsel %vm674_vm3, %v676_v55, %v672_v59  ;;  %762 = vst.msk [vmem:[#allocation2 + $0x10] sm:$0xff] %vm369_vm1, %v760_v28 }
 0x2ce   : > { %v678_v62 = vmul.f32 %v677_v61, %v643_v58  ;;  %580 = vst.msk [vmem:[#allocation3] sm:$0x1] %vm374_vm2, %v578_v60 }
 0x2d0   : > { %v679_v63 = vpack.c.bf16 %v678_v62, %v678_v62 }
 0x2d2   : > { %977 = vmatmul.msk.bf16.vlgmr.msra.gmra.mxu2 %vm369_vm1, %v679_v63  ;;  %v757_v27 = vpop.f32.mrf.mxu0 }
 0x2d3   : > { %v761_v29 = vadd.f32 %v757_v27, %v1402_v26 }
 0x2d5   : > { %763 = vst.msk [vmem:[#allocation2 + $0x18] sm:$0xff] %vm369_vm1, %v761_v29 }
 0x318   : > { %v557_v0 = vpop.f32.mrf.mxu2 }
 0x319   : > { %v562_v1 = vadd.f32 %v557_v0, %v1385_v4  ;;  %v1077_v4 = vpop.eup %1076 }
 0x31a   : > { %v790_v15 = vmul.f32 32.0, %v1077_v4  ;;  %vm794_vm2 = vweird.f32 %v1077_v4 }
 0x31b   : > { %564 = vst.msk [vmem:[#allocation2] sm:$0xff] %vm369_vm1, %v562_v1 }
 0x31c   : > { %v791_v16 = vsub.f32 1.0, %v790_v15 }
 0x31e   : > { %v792_v18 = vmul.f32 %v1077_v4, %v791_v16 }
 0x320   : > { %v559_v3 = vpop.f32.mrf.mxu2 }
 0x321   : > { %v563_v6 = vadd.f32 %v559_v3, %v1387_v5  ;;  %v793_v5 = vadd.f32 %v1077_v4, %v792_v18 }
 0x323   : > { %565 = vst.msk [vmem:[#allocation2 + $0x8] sm:$0xff] %vm369_vm1, %v563_v6  ;;  %v795_v19 = vsel %vm794_vm2, %v1077_v4, %v793_v5  ;;  %vm824_vm1 = vcmask 257024  }
 0x355   : > { %v700_v7 = vpop.f32.mrf.mxu2 }
 0x356   : > { %v723_v8 = vadd.f32 %v722_v43, %v700_v7 }
 0x358   : > { %v778_v10 = vadd.f32 %v723_v8, %v378_v47 }
 0x35a   : > { %v783_v11 = vadd.f32 %v1067_v9, %v778_v10 }
 0x35c   : > { %v786_v12 = vsel %vm399_vm0, %v783_v11, 0.0 }
 0x35d   : > { %787 = vadd.xlane.f32.xlu0 %v786_v12  ;;  %v702_v13 = vpop.f32.mrf.mxu2 }
 0x3d0   : > { %v788_v20 = vpop.xlane.xlu0 %787 }
 0x3d1   : > { %v796_v2 = vmul.f32 %v795_v19, %v788_v20 }
 0x3d3   : > { %v797_v21 = vsub.f32 %v783_v11, %v796_v2 }
 0x3d5   : > { %v798_v22 = vmul.f32 %v797_v21, %v797_v21 }
 0x3d7   : > { %v799_v23 = vsel %vm399_vm0, %v798_v22, 0.0 }
 0x3d8   : > { %800 = vadd.xlane.f32.xlu1 %v799_v23 }
 0x44b   : > { %v801_v30 = vpop.xlane.xlu1 %800 }
 0x44c   : > { %v802_v31 = vmul.f32 %v801_v30, %v795_v19 }
 0x44e   : > { %v803_v32 = vadd.f32 1e-05, %v802_v31 }
 0x450   : > { %1078 = vrsqrt.f32 %v803_v32  ;;  %vm810_vm4 = vweird.f32 %v803_v32 }
 0x456   : > { %v1079_v33 = vpop.eup %1078 }
 0x457   : > { %v805_v34 = vmul.f32 %v1079_v33, %v803_v32  ;;  %vm811_vm0 = vweird.f32 %v1079_v33 }
 0x458   : > { %vm812_vm5 = vmor %vm810_vm4, %vm811_vm0 }
 0x459   : > { %v806_v17 = vmul.f32 %v1079_v33, %v805_v34 }
 0x45b   : > { %v807_v35 = vmul.f32 0.5, %v806_v17 }
 0x45d   : > { %v808_v36 = vsub.f32 1.5, %v807_v35 }
 0x45f   : > { %v809_v37 = vmul.f32 %v1079_v33, %v808_v36 }
 0x461   : > { %v813_v26 = vsel %vm812_vm5, %v1079_v33, %v809_v37 }
 0x462   : > { %v814_v39 = vmul.f32 %v813_v26, %v797_v21 }
 0x464   : > { %v818_v40 = vmul.f32 %v1068_v25, %v814_v39 }
 0x466   : > { %v822_v41 = vadd.f32 %v1069_v38, %v818_v40 }
 0x468   : > { %v823_v42 = vpack.c.bf16 %v822_v41, %v822_v41 }
 0x46a   : > { %825 = vst.msk [vmem:[%s363_s11] sm:$0xf] %vm824_vm1, %v823_v42 }
 0x46b PF: > { %s20_s26 = sadd.s32 1, %s1234_s26   ;;  %s1476_s24 = smov %s1230_s25 }
 0x46c   : > { %p17_p8 = scmp.ge.s32.totalorder %s20_s26, 4   ;;  %s1477_s25 = smov %s1479_s13 }
 0x46e   :  { %19 = sbr.rel (!%p17_p8) target bundleno = 4 (0x4), region = 101 }
 0x473   :  { %851 = vsyncpa [#allocation5], 1 }
 0x474   :  { %853 = vsyncpa [#allocation5 + $0x1], 1 }
 0x475   :  { %854 = vsyncpa [#allocation7], 1 }
 0x476   :  { %855 = vsyncpa [#allocation10], 1 }

</bundles_post_ra>
